<compile_context>
chip_gen: v6e
topology: v6e:2x2x1
jax: 0.10.0
libtpu: 0.0.40
codegen_flags: <defaults>
</compile_context>

<pallas_src>
import jax
import jax.numpy as jnp
from jax.experimental import pallas as pl
from jax.experimental.pallas import tpu as pltpu

F_IN = 768 * 2   # 1536
F_HID = 768
F_OUT = 2
F_OUT_PAD = 128  # lane-dense padded logits width
BN_EPS = 1e-5
MAX_TB = 512     # batch tile cap (fp32: ~18 MiB total VMEM incl. double-buffers)


def probe_classifier_kernel(x_ref, w1_ref, shift_ref, w2_ref, b2_ref, out_ref):
    # Layer 1 with BN folded in: relu(x @ W1' + shift')   (MXU + VPU)
    h = jnp.dot(x_ref[...], w1_ref[...], preferred_element_type=jnp.float32)
    h = jnp.maximum(h + shift_ref[...], 0.0)
    # Layer 2, lane-padded to 128 output columns          (MXU)
    out = jnp.dot(h, w2_ref[...], preferred_element_type=jnp.float32)
    out_ref[...] = out + b2_ref[...]


def probe_classifier_forward(x, w1, b1, gamma, beta, run_mean, run_var, w2, b2):
    """x: [B, 1536] float32. Returns logits [B, 2] float32."""
    B = x.shape[0]

    # Fold BatchNorm1d (eval mode) into the first linear.
    inv_std = jax.lax.rsqrt(run_var + BN_EPS)
    scale = gamma * inv_std                                   # [768]
    w1f = (w1 * scale[None, :]).astype(jnp.float32)           # [1536, 768]
    shift = ((b1 - run_mean) * scale + beta).reshape(1, F_HID)

    # Lane-pad the 2-wide second layer to 128 columns.
    w2p = jnp.zeros((F_HID, F_OUT_PAD), jnp.float32).at[:, :F_OUT].set(w2)
    b2p = jnp.zeros((1, F_OUT_PAD), jnp.float32).at[0, :F_OUT].set(b2)

    # Batch tiling: TB multiple of 8 (fp32 sublanes), capped for VMEM.
    tb = min(MAX_TB, max(8, ((B + 7) // 8) * 8))
    b_pad = pl.cdiv(B, tb) * tb
    if b_pad != B:
        x = jnp.pad(x, ((0, b_pad - B), (0, 0)))
    grid = (b_pad // tb,)

    cost = pl.CostEstimate(
        flops=2 * b_pad * (F_IN * F_HID + F_HID * F_OUT_PAD),
        transcendentals=0,
        bytes_accessed=(b_pad * F_IN * 4 + F_IN * F_HID * 4
                        + F_HID * F_OUT_PAD * 4 + b_pad * F_OUT_PAD * 4),
    )

    out = pl.pallas_call(
        probe_classifier_kernel,
        out_shape=jax.ShapeDtypeStruct((b_pad, F_OUT_PAD), jnp.float32),
        grid_spec=pltpu.PrefetchScalarGridSpec(
            num_scalar_prefetch=0,
            grid=grid,
            in_specs=[
                pl.BlockSpec((tb, F_IN), lambda i: (i, 0)),          # x tile
                pl.BlockSpec((F_IN, F_HID), lambda i: (0, 0)),       # W1' (resident)
                pl.BlockSpec((1, F_HID), lambda i: (0, 0)),          # shift'
                pl.BlockSpec((F_HID, F_OUT_PAD), lambda i: (0, 0)),  # W2 (padded)
                pl.BlockSpec((1, F_OUT_PAD), lambda i: (0, 0)),      # b2 (padded)
            ],
            out_specs=pl.BlockSpec((tb, F_OUT_PAD), lambda i: (i, 0)),
        ),
        compiler_params=pltpu.CompilerParams(
            dimension_semantics=("parallel",),        # megacore shard on v7x
            vmem_limit_bytes=48 * 1024 * 1024,        # raise v5e/v6e scoped limit
        ),
        cost_estimate=cost,
    )(x, w1f, shift, w2p, b2p)

    return out[:B, :F_OUT]


def init_params(key):
    """Deterministic synthetic parameters matching the torch module's shapes."""
    k1, k2, k3, k4, k5, k6 = jax.random.split(key, 6)
    # dense: Linear(1536, 768) -> stored as [1536, 768] (x @ W)
    bound1 = 1.0 / jnp.sqrt(jnp.float32(F_IN))
    w1 = jax.random.uniform(k1, (F_IN, F_HID), jnp.float32, -bound1, bound1)
    b1 = jax.random.uniform(k2, (F_HID,), jnp.float32, -bound1, bound1)
    # BatchNorm1d(768): gamma, beta, running_mean, running_var
    gamma = jnp.ones((F_HID,), jnp.float32)
    beta = jnp.zeros((F_HID,), jnp.float32)
    run_mean = 0.1 * jax.random.normal(k3, (F_HID,), jnp.float32)
    run_var = jnp.abs(1.0 + 0.1 * jax.random.normal(k4, (F_HID,), jnp.float32))
    # out_proj: Linear(768, 2) -> stored as [768, 2]
    bound2 = 1.0 / jnp.sqrt(jnp.float32(F_HID))
    w2 = jax.random.uniform(k5, (F_HID, F_OUT), jnp.float32, -bound2, bound2)
    b2 = jax.random.uniform(k6, (F_OUT,), jnp.float32, -bound2, bound2)
    return w1, b1, gamma, beta, run_mean, run_var, w2, b2


def reference_forward(x, w1, b1, gamma, beta, run_mean, run_var, w2, b2):
    """Pure-JAX reference (eval-mode semantics)."""
    h = x @ w1 + b1
    h = (h - run_mean) / jnp.sqrt(run_var + BN_EPS) * gamma + beta
    h = jnp.maximum(h, 0.0)
    return h @ w2 + b2


if __name__ == "__main__":
    key = jax.random.PRNGKey(0)
    kx, kp = jax.random.split(key)

    B = 8
    x = jax.random.normal(kx, (B, F_IN), jnp.float32)
    params = init_params(kp)

    out = probe_classifier_forward(x, *params)
    out = jax.block_until_ready(out)

    ref = reference_forward(x, *params)
    assert out.shape == (B, F_OUT), out.shape
    assert jnp.allclose(out, ref, atol=1e-4, rtol=1e-4), (
        f"max abs err {jnp.max(jnp.abs(out - ref))}")

    # Exercise a non-tile-multiple batch to check the padded-tile path.
    B2 = 13
    x2 = jax.random.normal(jax.random.PRNGKey(1), (B2, F_IN), jnp.float32)
    out2 = jax.block_until_ready(probe_classifier_forward(x2, *params))
    ref2 = reference_forward(x2, *params)
    assert out2.shape == (B2, F_OUT), out2.shape
    assert jnp.allclose(out2, ref2, atol=1e-4, rtol=1e-4), (
        f"max abs err {jnp.max(jnp.abs(out2 - ref2))}")

    print("KERNEL_OK")
</pallas_src>

<mosaic_0001>
module attributes {stable_mosaic.version = 11 : i64} {
  func.func @probe_classifier_kernel(%arg0: i32, %arg1: memref<8x1536xf32, #tpu.memory_space<vmem>>, %arg2: memref<1536x768xf32, #tpu.memory_space<vmem>>, %arg3: memref<1x768xf32, #tpu.memory_space<vmem>>, %arg4: memref<768x128xf32, #tpu.memory_space<vmem>>, %arg5: memref<1x128xf32, #tpu.memory_space<vmem>>, %arg6: memref<8x128xf32, #tpu.memory_space<vmem>>) attributes {dimension_semantics = [#tpu.dimension_semantics<parallel>], iteration_bounds = array<i64: 1>, scalar_prefetch = 0 : i64, scratch_operands = 0 : i64, tpu.core_type = #tpu.core_type<tc>, window_params = [{transform_indices = @transform_0, window_bounds = array<i64: 8, 1536>}, {pipeline_mode = #tpu.pipeline_mode<synchronous>, transform_indices = @transform_1, window_bounds = array<i64: 1536, 768>}, {pipeline_mode = #tpu.pipeline_mode<synchronous>, transform_indices = @transform_2, window_bounds = array<i64: 1, 768>}, {pipeline_mode = #tpu.pipeline_mode<synchronous>, transform_indices = @transform_3, window_bounds = array<i64: 768, 128>}, {pipeline_mode = #tpu.pipeline_mode<synchronous>, transform_indices = @transform_4, window_bounds = array<i64: 1, 128>}, {transform_indices = @transform_5, window_bounds = array<i64: 8, 128>}]} {
    %c0 = arith.constant 0 : index
    %c0_0 = arith.constant 0 : index
    %0 = vector.load %arg1[%c0, %c0_0] : memref<8x1536xf32, #tpu.memory_space<vmem>>, vector<8x1536xf32>
    %c0_1 = arith.constant 0 : index
    %c0_2 = arith.constant 0 : index
    %1 = vector.load %arg2[%c0_1, %c0_2] : memref<1536x768xf32, #tpu.memory_space<vmem>>, vector<1536x768xf32>
    %cst = arith.constant dense<0.000000e+00> : vector<8x768xf32>
    %2 = tpu.matmul %0, %1, %cst {dimension_numbers = #tpu.dot_dimension_numbers<[1], [0], [0], [1], [0, 0, 1, 1], [], []>} : vector<8x1536xf32>, vector<1536x768xf32>, vector<8x768xf32> -> vector<8x768xf32>
    %c0_3 = arith.constant 0 : index
    %c0_4 = arith.constant 0 : index
    %3 = vector.load %arg3[%c0_3, %c0_4] : memref<1x768xf32, #tpu.memory_space<vmem>>, vector<1x768xf32>
    %4 = vector.broadcast %3 : vector<1x768xf32> to vector<8x768xf32>
    %5 = arith.addf %2, %4 : vector<8x768xf32>
    %cst_5 = arith.constant 0.000000e+00 : f32
    %6 = vector.broadcast %cst_5 : f32 to vector<8x768xf32>
    %7 = arith.maximumf %5, %6 : vector<8x768xf32>
    %c0_6 = arith.constant 0 : index
    %c0_7 = arith.constant 0 : index
    %8 = vector.load %arg4[%c0_6, %c0_7] : memref<768x128xf32, #tpu.memory_space<vmem>>, vector<768x128xf32>
    %cst_8 = arith.constant dense<0.000000e+00> : vector<8x128xf32>
    %9 = tpu.matmul %7, %8, %cst_8 {dimension_numbers = #tpu.dot_dimension_numbers<[1], [0], [0], [1], [0, 0, 1, 1], [], []>} : vector<8x768xf32>, vector<768x128xf32>, vector<8x128xf32> -> vector<8x128xf32>
    %c0_9 = arith.constant 0 : index
    %c0_10 = arith.constant 0 : index
    %10 = vector.load %arg5[%c0_9, %c0_10] : memref<1x128xf32, #tpu.memory_space<vmem>>, vector<1x128xf32>
    %11 = vector.broadcast %10 : vector<1x128xf32> to vector<8x128xf32>
    %12 = arith.addf %9, %11 : vector<8x128xf32>
    %c0_11 = arith.constant 0 : index
    %c0_12 = arith.constant 0 : index
    %13 = vector.load %arg6[%c0_11, %c0_12] : memref<8x128xf32, #tpu.memory_space<vmem>>, vector<8x128xf32>
    tpu.vector_store %arg6[%c0_11, %c0_12], %12 {strides = array<i32>} : memref<8x128xf32, #tpu.memory_space<vmem>>, vector<8x128xf32>,
    return
  }
  func.func @transform_0(%arg0: i32) -> (i32, i32) {
    %c0_i32 = arith.constant 0 : i32
    %c0_i32_0 = arith.constant 0 : i32
    return %arg0, %c0_i32 : i32, i32
  }
  func.func @transform_1(%arg0: i32) -> (i32, i32) {
    %c0_i32 = arith.constant 0 : i32
    %c0_i32_0 = arith.constant 0 : i32
    %c0_i32_1 = arith.constant 0 : i32
    return %c0_i32, %c0_i32_0 : i32, i32
  }
  func.func @transform_2(%arg0: i32) -> (i32, i32) {
    %c0_i32 = arith.constant 0 : i32
    %c0_i32_0 = arith.constant 0 : i32
    %c0_i32_1 = arith.constant 0 : i32
    return %c0_i32, %c0_i32_0 : i32, i32
  }
  func.func @transform_3(%arg0: i32) -> (i32, i32) {
    %c0_i32 = arith.constant 0 : i32
    %c0_i32_0 = arith.constant 0 : i32
    %c0_i32_1 = arith.constant 0 : i32
    return %c0_i32, %c0_i32_0 : i32, i32
  }
  func.func @transform_4(%arg0: i32) -> (i32, i32) {
    %c0_i32 = arith.constant 0 : i32
    %c0_i32_0 = arith.constant 0 : i32
    %c0_i32_1 = arith.constant 0 : i32
    return %c0_i32, %c0_i32_0 : i32, i32
  }
  func.func @transform_5(%arg0: i32) -> (i32, i32) {
    %c0_i32 = arith.constant 0 : i32
    %c0_i32_0 = arith.constant 0 : i32
    return %arg0, %c0_i32 : i32, i32
  }
}

</mosaic_0001>

<bundles_post_ra>
// kernel: tpu_custom_call.1
= control target key start
LH: loop header
LB: loop body
LE: loop exit
PB: predicated region body
PF: predicated region fallthrough
CT: control target
= control target key end

     0   :  { %10 = vsyncpa [#allocation3], 0  ;;  %s3290_s0 = inlined_call_operand.hbm [shape: f32[8,1536], index: 0, kind: input, shape index: {}]   ;;  %s3291_s1 = inlined_call_operand.hbm [shape: f32[1536,768], index: 1, kind: input, shape index: {}]   ;;  %s3292_s2 = inlined_call_operand.hbm [shape: f32[1,768], index: 2, kind: input, shape index: {}]   ;;  %s3293_s3 = inlined_call_operand.hbm [shape: f32[768,128], index: 3, kind: input, shape index: {}]   ;;  %s3294_s4 = inlined_call_operand.hbm [shape: f32[1,128], index: 4, kind: input, shape index: {}]   ;;  %s3295_s5 = inlined_call_operand.hbm [shape: f32[8,128], index: 5, kind: output, shape index: {}]  }
   0x1   :  { %11 = vsyncpa [#allocation6], 0 }
   0x2   :  { %12 = vsyncpa [#allocation9], 0 }
   0x3   :  { %13 = vsyncpa [#allocation4], 0  ;;  %s3162_s18 = smov [#allocation5]  }
   0x4   :  { %s29_s19 = sshll.u32 %s3162_s18, 4  ;;  %s30_s19 = int_to_ptr.vmem [resolvable:$true] %s29_s19 }
   0x5   :  { %s3042_s20 = scalar_lea.vmem %s30_s19, 147456  ;;  %p3047_p1 = scmp.lt.s32.totalorder %s30_s19, %s30_s19 }
   0x6   :  { %p3043_p0 = scmp.ne.s32.totalorder %s30_s19, %s3042_s20  ;;  %p3048_p2 = scmp.lt.s32.totalorder %s3042_s20, %s3042_s20 }
   0x8   :  { %p3049_p3 = por %p3048_p2, %p3047_p1 }
   0xa   :  { %p3050_p4 = pnand %p3049_p3, %p3043_p0 }
   0xc   :  { %3053 = shalt.err (!%p3050_p4)
}
   0xd   :  { %s3163_s21 = smov 768   ;;  %s3164_s22 = smov 48  }
   0xe   :  { %35 = dma.hbm_to_vmem [thread:$0]  %s3291_s1, 147456, %s30_s19, [#allocation6], %s3163_s21, %s3163_s21, %s3164_s22  }
   0xf   :  { %s3165_s25 = smov [#allocation8]  }
  0x10   :  { %s51_s26 = sshll.u32 %s3165_s25, 4  ;;  %s52_s26 = int_to_ptr.vmem [resolvable:$true] %s51_s26 }
  0x11   :  { %s3062_s27 = scalar_lea.vmem %s52_s26, 12288  ;;  %p3067_p6 = scmp.lt.s32.totalorder %s52_s26, %s52_s26 }
  0x12   :  { %p3063_p5 = scmp.ne.s32.totalorder %s52_s26, %s3062_s27  ;;  %p3068_p7 = scmp.lt.s32.totalorder %s3062_s27, %s3062_s27 }
  0x14   :  { %p3069_p8 = por %p3068_p7, %p3067_p6 }
  0x16   :  { %p3070_p9 = pnand %p3069_p8, %p3063_p5 }
  0x18   :  { %3073 = shalt.err (!%p3070_p9)
}
  0x19   :  { %s3166_s28 = smov 128   ;;  %s3167_s29 = smov 8  }
  0x1a   :  { %57 = dma.hbm_to_vmem [thread:$0]  %s3293_s3, 12288, %s52_s26, [#allocation9], %s3166_s28, %s3166_s28, %s3167_s29  }
  0x1b   :  { %s3168_s7 = smov [#allocation2]   ;;  %s3169_s9 = smov [#allocation7]  }
  0x1c   :  { %s20_s8 = sshll.u32 %s3168_s7, 4  ;;  %s42_s1 = sshll.u32 %s3169_s9, 4  ;;  %s21_s8 = int_to_ptr.vmem [resolvable:$true] %s20_s8  ;;  %s43_s1 = int_to_ptr.vmem [resolvable:$true] %s42_s1 }
  0x1d   :  { %s3082_s10 = scalar_lea.vmem %s21_s8, 1536  ;;  %p3087_p11 = scmp.lt.s32.totalorder %s21_s8, %s21_s8 }
  0x1e   :  { %p3083_p10 = scmp.ne.s32.totalorder %s21_s8, %s3082_s10  ;;  %p3088_p12 = scmp.lt.s32.totalorder %s3082_s10, %s3082_s10 }
  0x20   :  { %p3089_p13 = por %p3088_p12, %p3087_p11 }
  0x22   :  { %p3090_p0 = pnand %p3089_p13, %p3083_p10 }
  0x24   :  { %3093 = shalt.err (!%p3090_p0)
}
  0x25   :  { %23 = dma.hbm_to_vmem [thread:$0]  %s3290_s0, 1536, %s21_s8, [#allocation3]  }
  0x26   :  { %s3102_s13 = scalar_lea.vmem %s43_s1, 96  ;;  %p3107_p2 = scmp.lt.s32.totalorder %s43_s1, %s43_s1 }
  0x27   :  { %p3103_p1 = scmp.ne.s32.totalorder %s43_s1, %s3102_s13  ;;  %p3108_p3 = scmp.lt.s32.totalorder %s3102_s13, %s3102_s13 }
  0x29   :  { %p3109_p4 = por %p3108_p3, %p3107_p2 }
  0x2b   :  { %p3110_p5 = pnand %p3109_p4, %p3103_p1 }
  0x2d   :  { %3113 = shalt.err (!%p3110_p5)
}
  0x2e   :  { %45 = dma.hbm_to_vmem [thread:$0]  %s3292_s2, 96, %s43_s1, [#allocation6]  }
  0x2f   :  { %s3170_s15 = smov [#allocation10]  }
  0x30   :  { %s64_s16 = sshll.u32 %s3170_s15, 4  ;;  %s65_s16 = int_to_ptr.vmem [resolvable:$true] %s64_s16 }
  0x31   :  { %s3122_s17 = scalar_lea.vmem %s65_s16, 16  ;;  %s3126_s18 = scalar_lea.vmem %s65_s16, 32 }
  0x32   :  { %p3123_p6 = scmp.ne.s32.totalorder %s65_s16, %s3122_s17  ;;  %p3127_p7 = scmp.lt.s32.totalorder %s65_s16, %s65_s16 }
  0x33   :  { %p3128_p8 = scmp.lt.s32.totalorder %s3126_s18, %s3122_s17 }
  0x35   :  { %p3129_p9 = por %p3128_p8, %p3127_p7 }
  0x37   :  { %p3130_p10 = pnand %p3129_p9, %p3123_p6 }
  0x39   :  { %3133 = shalt.err (!%p3130_p10)
}
  0x3a   :  { %67 = dma.hbm_to_vmem [thread:$0]  %s3294_s4, 16, %s65_s16, [#allocation9]  }
  0x3b   :  { %3154 = dma.done.wait [#allocation3], 1536  }
  0x3c   :  { %3155 = vsyncadd [#allocation3], 4294965760 }
  0x3d   :  { %3156 = dma.done.wait [#allocation6], 147552  }
  0x3e   :  { %3157 = vsyncadd [#allocation6], 4294819744 }
  0x3f   :  { %3158 = dma.done.wait [#allocation9], 12304  }
  0x40   :  { %3159 = vsyncadd [#allocation9], 4294954992  ;;  %v186_v0 = vld [vmem:[#allocation5 + $0x2d8] sm:$0xff]  ;;  %v185_v2 = vld [vmem:[#allocation5 + $0x2d0] sm:$0xff]  ;;  %s3171_s2 = smov [#allocation11]  }
  0x41   :  { %v378_v1 = vld [vmem:[#allocation5 + $0x8d8] sm:$0xff]  ;;  %1279 = vmatprep.subr.mxu0 %v186_v0  ;;  %v377_v3 = vld [vmem:[#allocation5 + $0x8d0] sm:$0xff]  ;;  %v180_v4 = vld [vmem:[#allocation5 + $0x2a8] sm:$0xff]  ;;  %s2883_s4 = sshll.u32 %s3171_s2, 4  ;;  %s2884_s4 = int_to_ptr.vmem [resolvable:$true] %s2883_s4 }
  0x42   :  { %1350 = vmatprep.subr.mxu1 %v378_v1  ;;  %v372_v5 = vld [vmem:[#allocation5 + $0x8a8] sm:$0xff]  ;;  %1280 = vmatpush1.msra.mxu0 %v185_v2  ;;  %v179_v6 = vld [vmem:[#allocation5 + $0x2a0] sm:$0xff]  ;;  %v174_v8 = vld [vmem:[#allocation5 + $0x278] sm:$0xff]  ;;  %s3134_s20 = scalar_lea.vmem %s2884_s4, 128  ;;  %p3139_p12 = scmp.lt.s32.totalorder %s2884_s4, %s2884_s4 }
  0x43   :  { %1351 = vmatpush1.msra.mxu1 %v377_v3  ;;  %v371_v7 = vld [vmem:[#allocation5 + $0x8a0] sm:$0xff]  ;;  %1281 = vmatprep.subr.mxu0 %v180_v4  ;;  %v366_v9 = vld [vmem:[#allocation5 + $0x878] sm:$0xff]  ;;  %v173_v10 = vld [vmem:[#allocation5 + $0x270] sm:$0xff]  ;;  %p3135_p11 = scmp.ne.s32.totalorder %s2884_s4, %s3134_s20  ;;  %p3140_p13 = scmp.lt.s32.totalorder %s3134_s20, %s3134_s20 }
  0x44   :  { %1352 = vmatprep.subr.mxu1 %v372_v5  ;;  %v365_v11 = vld [vmem:[#allocation5 + $0x870] sm:$0xff]  ;;  %1282 = vmatpush1.msra.mxu0 %v179_v6  ;;  %v168_v12 = vld [vmem:[#allocation5 + $0x248] sm:$0xff]  ;;  %v167_v14 = vld [vmem:[#allocation5 + $0x240] sm:$0xff] }
  0x45   :  { %1353 = vmatpush1.msra.mxu1 %v371_v7  ;;  %v360_v13 = vld [vmem:[#allocation5 + $0x848] sm:$0xff]  ;;  %1283 = vmatprep.subr.mxu0 %v174_v8  ;;  %v359_v15 = vld [vmem:[#allocation5 + $0x840] sm:$0xff]  ;;  %v162_v16 = vld [vmem:[#allocation5 + $0x218] sm:$0xff]  ;;  %p3141_p0 = por %p3140_p13, %p3139_p12 }
  0x46   :  { %1354 = vmatprep.subr.mxu1 %v366_v9  ;;  %1284 = vmatpush1.msra.mxu0 %v173_v10  ;;  %v354_v17 = vld [vmem:[#allocation5 + $0x818] sm:$0xff]  ;;  %v161_v18 = vld [vmem:[#allocation5 + $0x210] sm:$0xff]  ;;  %v156_v20 = vld [vmem:[#allocation5 + $0x1e8] sm:$0xff] }
  0x47   :  { %1355 = vmatpush1.msra.mxu1 %v365_v11  ;;  %1285 = vmatprep.subr.mxu0 %v168_v12  ;;  %v353_v19 = vld [vmem:[#allocation5 + $0x810] sm:$0xff]  ;;  %v348_v21 = vld [vmem:[#allocation5 + $0x7e8] sm:$0xff]  ;;  %v155_v22 = vld [vmem:[#allocation5 + $0x1e0] sm:$0xff]  ;;  %p3142_p1 = pnand %p3141_p0, %p3135_p11 }
  0x48   :  { %1356 = vmatprep.subr.mxu1 %v360_v13  ;;  %1286 = vmatpush1.msra.mxu0 %v167_v14  ;;  %v347_v23 = vld [vmem:[#allocation5 + $0x7e0] sm:$0xff]  ;;  %v150_v24 = vld [vmem:[#allocation5 + $0x1b8] sm:$0xff]  ;;  %v149_v26 = vld [vmem:[#allocation5 + $0x1b0] sm:$0xff] }
  0x49   :  { %1357 = vmatpush1.msra.mxu1 %v359_v15  ;;  %1287 = vmatprep.subr.mxu0 %v162_v16  ;;  %v342_v25 = vld [vmem:[#allocation5 + $0x7b8] sm:$0xff]  ;;  %v341_v27 = vld [vmem:[#allocation5 + $0x7b0] sm:$0xff]  ;;  %v144_v28 = vld [vmem:[#allocation5 + $0x188] sm:$0xff] }
  0x4a   :  { %1358 = vmatprep.subr.mxu1 %v354_v17  ;;  %1288 = vmatpush1.msra.mxu0 %v161_v18  ;;  %v336_v29 = vld [vmem:[#allocation5 + $0x788] sm:$0xff]  ;;  %v143_v30 = vld [vmem:[#allocation5 + $0x180] sm:$0xff]  ;;  %v138_v32 = vld [vmem:[#allocation5 + $0x158] sm:$0xff] }
  0x4b   :  { %1359 = vmatpush1.msra.mxu1 %v353_v19  ;;  %1289 = vmatprep.subr.mxu0 %v156_v20  ;;  %v335_v31 = vld [vmem:[#allocation5 + $0x780] sm:$0xff]  ;;  %v330_v33 = vld [vmem:[#allocation5 + $0x758] sm:$0xff]  ;;  %v137_v34 = vld [vmem:[#allocation5 + $0x150] sm:$0xff] }
  0x4c   :  { %1360 = vmatprep.subr.mxu1 %v348_v21  ;;  %1290 = vmatpush1.msra.mxu0 %v155_v22  ;;  %v329_v35 = vld [vmem:[#allocation5 + $0x750] sm:$0xff]  ;;  %v132_v36 = vld [vmem:[#allocation5 + $0x128] sm:$0xff]  ;;  %v131_v38 = vld [vmem:[#allocation5 + $0x120] sm:$0xff] }
  0x4d   :  { %1361 = vmatpush1.msra.mxu1 %v347_v23  ;;  %1291 = vmatprep.subr.mxu0 %v150_v24  ;;  %v324_v37 = vld [vmem:[#allocation5 + $0x728] sm:$0xff]  ;;  %v323_v39 = vld [vmem:[#allocation5 + $0x720] sm:$0xff]  ;;  %v126_v40 = vld [vmem:[#allocation5 + $0xf8] sm:$0xff] }
  0x4e   :  { %1362 = vmatprep.subr.mxu1 %v342_v25  ;;  %1292 = vmatpush1.msra.mxu0 %v149_v26  ;;  %v318_v41 = vld [vmem:[#allocation5 + $0x6f8] sm:$0xff]  ;;  %v125_v42 = vld [vmem:[#allocation5 + $0xf0] sm:$0xff]  ;;  %v120_v44 = vld [vmem:[#allocation5 + $0xc8] sm:$0xff] }
  0x4f   :  { %1363 = vmatpush1.msra.mxu1 %v341_v27  ;;  %1293 = vmatprep.subr.mxu0 %v144_v28  ;;  %v317_v43 = vld [vmem:[#allocation5 + $0x6f0] sm:$0xff]  ;;  %v312_v45 = vld [vmem:[#allocation5 + $0x6c8] sm:$0xff]  ;;  %v119_v46 = vld [vmem:[#allocation5 + $0xc0] sm:$0xff] }
  0x50   :  { %1364 = vmatprep.subr.mxu1 %v336_v29  ;;  %1294 = vmatpush1.msra.mxu0 %v143_v30  ;;  %v311_v47 = vld [vmem:[#allocation5 + $0x6c0] sm:$0xff]  ;;  %v114_v48 = vld [vmem:[#allocation5 + $0x98] sm:$0xff]  ;;  %v113_v50 = vld [vmem:[#allocation5 + $0x90] sm:$0xff] }
  0x51   :  { %1365 = vmatpush1.msra.mxu1 %v335_v31  ;;  %1295 = vmatprep.subr.mxu0 %v138_v32  ;;  %v306_v49 = vld [vmem:[#allocation5 + $0x698] sm:$0xff]  ;;  %v305_v51 = vld [vmem:[#allocation5 + $0x690] sm:$0xff]  ;;  %v108_v52 = vld [vmem:[#allocation5 + $0x68] sm:$0xff] }
  0x52   :  { %1366 = vmatprep.subr.mxu1 %v330_v33  ;;  %1296 = vmatpush1.msra.mxu0 %v137_v34  ;;  %v300_v53 = vld [vmem:[#allocation5 + $0x668] sm:$0xff]  ;;  %v107_v54 = vld [vmem:[#allocation5 + $0x60] sm:$0xff]  ;;  %v102_v56 = vld [vmem:[#allocation5 + $0x38] sm:$0xff] }
  0x53   :  { %1367 = vmatpush1.msra.mxu1 %v329_v35  ;;  %1297 = vmatprep.subr.mxu0 %v132_v36  ;;  %v299_v55 = vld [vmem:[#allocation5 + $0x660] sm:$0xff]  ;;  %v294_v57 = vld [vmem:[#allocation5 + $0x638] sm:$0xff]  ;;  %v101_v58 = vld [vmem:[#allocation5 + $0x30] sm:$0xff] }
  0x54   :  { %1368 = vmatprep.subr.mxu1 %v324_v37  ;;  %1298 = vmatpush1.msra.mxu0 %v131_v38  ;;  %v293_v59 = vld [vmem:[#allocation5 + $0x630] sm:$0xff]  ;;  %v96_v60 = vld [vmem:[#allocation5 + $0x8] sm:$0xff]  ;;  %v95_v62 = vld [vmem:[#allocation5] sm:$0xff] }
  0x55   :  { %1369 = vmatpush1.msra.mxu1 %v323_v39  ;;  %1299 = vmatprep.subr.mxu0 %v126_v40  ;;  %v288_v61 = vld [vmem:[#allocation5 + $0x608] sm:$0xff]  ;;  %v287_v63 = vld [vmem:[#allocation5 + $0x600] sm:$0xff]  ;;  %v282_v0 = vld [vmem:[#allocation5 + $0x5d8] sm:$0xff] }
  0x56   :  { %1370 = vmatprep.subr.mxu1 %v318_v41  ;;  %1300 = vmatpush1.msra.mxu0 %v125_v42  ;;  %v474_v1 = vld [vmem:[#allocation5 + $0xbd8] sm:$0xff]  ;;  %v281_v2 = vld [vmem:[#allocation5 + $0x5d0] sm:$0xff]  ;;  %v276_v4 = vld [vmem:[#allocation5 + $0x5a8] sm:$0xff] }
  0x57   :  { %1371 = vmatpush1.msra.mxu1 %v317_v43  ;;  %1301 = vmatprep.subr.mxu0 %v120_v44  ;;  %v473_v3 = vld [vmem:[#allocation5 + $0xbd0] sm:$0xff]  ;;  %v468_v5 = vld [vmem:[#allocation5 + $0xba8] sm:$0xff]  ;;  %v275_v6 = vld [vmem:[#allocation5 + $0x5a0] sm:$0xff] }
  0x58   :  { %1372 = vmatprep.subr.mxu1 %v312_v45  ;;  %1302 = vmatpush1.msra.mxu0 %v119_v46  ;;  %v467_v7 = vld [vmem:[#allocation5 + $0xba0] sm:$0xff]  ;;  %v270_v8 = vld [vmem:[#allocation5 + $0x578] sm:$0xff]  ;;  %v269_v10 = vld [vmem:[#allocation5 + $0x570] sm:$0xff] }
  0x59   :  { %1373 = vmatpush1.msra.mxu1 %v311_v47  ;;  %1303 = vmatprep.subr.mxu0 %v114_v48  ;;  %v462_v9 = vld [vmem:[#allocation5 + $0xb78] sm:$0xff]  ;;  %v461_v11 = vld [vmem:[#allocation5 + $0xb70] sm:$0xff]  ;;  %v264_v12 = vld [vmem:[#allocation5 + $0x548] sm:$0xff] }
  0x5a   :  { %1374 = vmatprep.subr.mxu1 %v306_v49  ;;  %1304 = vmatpush1.msra.mxu0 %v113_v50  ;;  %v456_v13 = vld [vmem:[#allocation5 + $0xb48] sm:$0xff]  ;;  %v263_v14 = vld [vmem:[#allocation5 + $0x540] sm:$0xff]  ;;  %v258_v16 = vld [vmem:[#allocation5 + $0x518] sm:$0xff] }
  0x5b   :  { %1375 = vmatpush1.msra.mxu1 %v305_v51  ;;  %1305 = vmatprep.subr.mxu0 %v108_v52  ;;  %v455_v15 = vld [vmem:[#allocation5 + $0xb40] sm:$0xff]  ;;  %v450_v17 = vld [vmem:[#allocation5 + $0xb18] sm:$0xff]  ;;  %v257_v18 = vld [vmem:[#allocation5 + $0x510] sm:$0xff] }
  0x5c   :  { %1376 = vmatprep.subr.mxu1 %v300_v53  ;;  %1306 = vmatpush1.msra.mxu0 %v107_v54  ;;  %v449_v19 = vld [vmem:[#allocation5 + $0xb10] sm:$0xff]  ;;  %v252_v20 = vld [vmem:[#allocation5 + $0x4e8] sm:$0xff]  ;;  %v251_v22 = vld [vmem:[#allocation5 + $0x4e0] sm:$0xff] }
  0x5d   :  { %1377 = vmatpush1.msra.mxu1 %v299_v55  ;;  %1307 = vmatprep.subr.mxu0 %v102_v56  ;;  %v444_v21 = vld [vmem:[#allocation5 + $0xae8] sm:$0xff]  ;;  %v443_v23 = vld [vmem:[#allocation5 + $0xae0] sm:$0xff]  ;;  %v246_v24 = vld [vmem:[#allocation5 + $0x4b8] sm:$0xff] }
  0x5e   :  { %1378 = vmatprep.subr.mxu1 %v294_v57  ;;  %1308 = vmatpush1.msra.mxu0 %v101_v58  ;;  %v438_v25 = vld [vmem:[#allocation5 + $0xab8] sm:$0xff]  ;;  %v245_v26 = vld [vmem:[#allocation5 + $0x4b0] sm:$0xff]  ;;  %v240_v28 = vld [vmem:[#allocation5 + $0x488] sm:$0xff] }
  0x5f   :  { %1379 = vmatpush1.msra.mxu1 %v293_v59  ;;  %1309 = vmatprep.subr.mxu0 %v96_v60  ;;  %v437_v27 = vld [vmem:[#allocation5 + $0xab0] sm:$0xff]  ;;  %v432_v29 = vld [vmem:[#allocation5 + $0xa88] sm:$0xff]  ;;  %v239_v30 = vld [vmem:[#allocation5 + $0x480] sm:$0xff] }
  0x60   :  { %1380 = vmatprep.subr.mxu1 %v288_v61  ;;  %1310 = vmatpush1.msra.mxu0 %v95_v62  ;;  %v431_v31 = vld [vmem:[#allocation5 + $0xa80] sm:$0xff]  ;;  %v234_v32 = vld [vmem:[#allocation5 + $0x458] sm:$0xff]  ;;  %v233_v34 = vld [vmem:[#allocation5 + $0x450] sm:$0xff] }
  0x61   :  { %1381 = vmatpush1.msra.mxu1 %v287_v63  ;;  %1311 = vmatprep.subr.mxu0 %v282_v0  ;;  %v426_v33 = vld [vmem:[#allocation5 + $0xa58] sm:$0xff]  ;;  %v425_v35 = vld [vmem:[#allocation5 + $0xa50] sm:$0xff]  ;;  %v228_v36 = vld [vmem:[#allocation5 + $0x428] sm:$0xff] }
  0x62   :  { %1382 = vmatprep.subr.mxu1 %v474_v1  ;;  %1312 = vmatpush2.msra.mxu0 %v281_v2  ;;  %v420_v37 = vld [vmem:[#allocation5 + $0xa28] sm:$0xff]  ;;  %v227_v38 = vld [vmem:[#allocation5 + $0x420] sm:$0xff]  ;;  %v222_v40 = vld [vmem:[#allocation5 + $0x3f8] sm:$0xff] }
  0x63   :  { %1383 = vmatpush2.msra.mxu1 %v473_v3  ;;  %1313 = vmatprep.subr.mxu0 %v276_v4  ;;  %v419_v39 = vld [vmem:[#allocation5 + $0xa20] sm:$0xff]  ;;  %v414_v41 = vld [vmem:[#allocation5 + $0x9f8] sm:$0xff]  ;;  %v221_v42 = vld [vmem:[#allocation5 + $0x3f0] sm:$0xff] }
  0x64   :  { %1384 = vmatprep.subr.mxu1 %v468_v5  ;;  %1314 = vmatpush2.msra.mxu0 %v275_v6  ;;  %v413_v43 = vld [vmem:[#allocation5 + $0x9f0] sm:$0xff]  ;;  %v216_v44 = vld [vmem:[#allocation5 + $0x3c8] sm:$0xff]  ;;  %v215_v46 = vld [vmem:[#allocation5 + $0x3c0] sm:$0xff] }
  0x65   :  { %1385 = vmatpush2.msra.mxu1 %v467_v7  ;;  %1315 = vmatprep.subr.mxu0 %v270_v8  ;;  %v408_v45 = vld [vmem:[#allocation5 + $0x9c8] sm:$0xff]  ;;  %v407_v47 = vld [vmem:[#allocation5 + $0x9c0] sm:$0xff]  ;;  %v210_v48 = vld [vmem:[#allocation5 + $0x398] sm:$0xff] }
  0x66   :  { %1386 = vmatprep.subr.mxu1 %v462_v9  ;;  %1316 = vmatpush2.msra.mxu0 %v269_v10  ;;  %v402_v49 = vld [vmem:[#allocation5 + $0x998] sm:$0xff]  ;;  %v209_v50 = vld [vmem:[#allocation5 + $0x390] sm:$0xff]  ;;  %v204_v52 = vld [vmem:[#allocation5 + $0x368] sm:$0xff] }
  0x67   :  { %1387 = vmatpush2.msra.mxu1 %v461_v11  ;;  %1317 = vmatprep.subr.mxu0 %v264_v12  ;;  %v401_v51 = vld [vmem:[#allocation5 + $0x990] sm:$0xff]  ;;  %v396_v53 = vld [vmem:[#allocation5 + $0x968] sm:$0xff]  ;;  %v203_v54 = vld [vmem:[#allocation5 + $0x360] sm:$0xff] }
  0x68   :  { %1388 = vmatprep.subr.mxu1 %v456_v13  ;;  %1318 = vmatpush2.msra.mxu0 %v263_v14  ;;  %v395_v55 = vld [vmem:[#allocation5 + $0x960] sm:$0xff]  ;;  %v198_v56 = vld [vmem:[#allocation5 + $0x338] sm:$0xff]  ;;  %v197_v58 = vld [vmem:[#allocation5 + $0x330] sm:$0xff] }
  0x69   :  { %1389 = vmatpush2.msra.mxu1 %v455_v15  ;;  %1319 = vmatprep.subr.mxu0 %v258_v16  ;;  %v390_v57 = vld [vmem:[#allocation5 + $0x938] sm:$0xff]  ;;  %v389_v59 = vld [vmem:[#allocation5 + $0x930] sm:$0xff]  ;;  %v192_v60 = vld [vmem:[#allocation5 + $0x308] sm:$0xff] }
  0x6a   :  { %1390 = vmatprep.subr.mxu1 %v450_v17  ;;  %1320 = vmatpush2.msra.mxu0 %v257_v18  ;;  %v384_v61 = vld [vmem:[#allocation5 + $0x908] sm:$0xff]  ;;  %v191_v62 = vld [vmem:[#allocation5 + $0x300] sm:$0xff]  ;;  %v86_v2 = vld [vmem:[#allocation2 + $0x18] sm:$0xff] }
  0x6b   :  { %1391 = vmatpush2.msra.mxu1 %v449_v19  ;;  %1321 = vmatprep.subr.mxu0 %v252_v20  ;;  %v84_v63 = vld [vmem:[#allocation2 + $0x8] sm:$0xff]  ;;  %v383_v0 = vld [vmem:[#allocation5 + $0x900] sm:$0xff]  ;;  %v570_v3 = vld [vmem:[#allocation5 + $0xed8] sm:$0xff] }
  0x6c   :  { %1392 = vmatprep.subr.mxu1 %v444_v21  ;;  %1322 = vmatpush2.msra.mxu0 %v251_v22  ;;  %v83_v1 = vld [vmem:[#allocation2] sm:$0xff]  ;;  %v762_v4 = vld [vmem:[#allocation5 + $0x14d8] sm:$0xff]  ;;  %v85_v5 = vld [vmem:[#allocation2 + $0x10] sm:$0xff] }
  0x6d   :  { %1393 = vmatpush2.msra.mxu1 %v443_v23  ;;  %1323 = vmatprep.subr.mxu0 %v246_v24  ;;  %v569_v6 = vld [vmem:[#allocation5 + $0xed0] sm:$0xff]  ;;  %v564_v8 = vld [vmem:[#allocation5 + $0xea8] sm:$0xff]  ;;  %v563_v10 = vld [vmem:[#allocation5 + $0xea0] sm:$0xff] }
  0x6e   :  { %1394 = vmatprep.subr.mxu1 %v438_v25  ;;  %1324 = vmatpush2.msra.mxu0 %v245_v26  ;;  %v761_v7 = vld [vmem:[#allocation5 + $0x14d0] sm:$0xff]  ;;  %v756_v9 = vld [vmem:[#allocation5 + $0x14a8] sm:$0xff]  ;;  %v755_v11 = vld [vmem:[#allocation5 + $0x14a0] sm:$0xff] }
  0x6f   :  { %1395 = vmatpush2.msra.mxu1 %v437_v27  ;;  %1325 = vmatprep.subr.mxu0 %v240_v28  ;;  %v558_v12 = vld [vmem:[#allocation5 + $0xe78] sm:$0xff]  ;;  %v557_v14 = vld [vmem:[#allocation5 + $0xe70] sm:$0xff]  ;;  %v552_v16 = vld [vmem:[#allocation5 + $0xe48] sm:$0xff] }
  0x70   :  { %1396 = vmatprep.subr.mxu1 %v432_v29  ;;  %1326 = vmatpush2.msra.mxu0 %v239_v30  ;;  %v750_v13 = vld [vmem:[#allocation5 + $0x1478] sm:$0xff]  ;;  %v749_v15 = vld [vmem:[#allocation5 + $0x1470] sm:$0xff]  ;;  %v744_v17 = vld [vmem:[#allocation5 + $0x1448] sm:$0xff] }
  0x71   :  { %1397 = vmatpush2.msra.mxu1 %v431_v31  ;;  %1327 = vmatprep.subr.mxu0 %v234_v32  ;;  %v551_v18 = vld [vmem:[#allocation5 + $0xe40] sm:$0xff]  ;;  %v546_v20 = vld [vmem:[#allocation5 + $0xe18] sm:$0xff]  ;;  %v545_v22 = vld [vmem:[#allocation5 + $0xe10] sm:$0xff] }
  0x72   :  { %1398 = vmatprep.subr.mxu1 %v426_v33  ;;  %1328 = vmatpush2.msra.mxu0 %v233_v34  ;;  %v743_v19 = vld [vmem:[#allocation5 + $0x1440] sm:$0xff]  ;;  %v738_v21 = vld [vmem:[#allocation5 + $0x1418] sm:$0xff]  ;;  %v737_v23 = vld [vmem:[#allocation5 + $0x1410] sm:$0xff] }
  0x73   :  { %1399 = vmatpush2.msra.mxu1 %v425_v35  ;;  %1329 = vmatprep.subr.mxu0 %v228_v36  ;;  %v540_v24 = vld [vmem:[#allocation5 + $0xde8] sm:$0xff]  ;;  %v539_v26 = vld [vmem:[#allocation5 + $0xde0] sm:$0xff]  ;;  %v534_v28 = vld [vmem:[#allocation5 + $0xdb8] sm:$0xff] }
  0x74   :  { %1400 = vmatprep.subr.mxu1 %v420_v37  ;;  %1330 = vmatpush2.msra.mxu0 %v227_v38  ;;  %v732_v25 = vld [vmem:[#allocation5 + $0x13e8] sm:$0xff]  ;;  %v731_v27 = vld [vmem:[#allocation5 + $0x13e0] sm:$0xff]  ;;  %v726_v29 = vld [vmem:[#allocation5 + $0x13b8] sm:$0xff] }
  0x75   :  { %1401 = vmatpush2.msra.mxu1 %v419_v39  ;;  %1331 = vmatprep.subr.mxu0 %v222_v40  ;;  %v533_v30 = vld [vmem:[#allocation5 + $0xdb0] sm:$0xff]  ;;  %v528_v32 = vld [vmem:[#allocation5 + $0xd88] sm:$0xff]  ;;  %v527_v34 = vld [vmem:[#allocation5 + $0xd80] sm:$0xff] }
  0x76   :  { %1402 = vmatprep.subr.mxu1 %v414_v41  ;;  %1332 = vmatpush2.msra.mxu0 %v221_v42  ;;  %v725_v31 = vld [vmem:[#allocation5 + $0x13b0] sm:$0xff]  ;;  %v720_v33 = vld [vmem:[#allocation5 + $0x1388] sm:$0xff]  ;;  %v719_v35 = vld [vmem:[#allocation5 + $0x1380] sm:$0xff] }
  0x77   :  { %1403 = vmatpush2.msra.mxu1 %v413_v43  ;;  %1333 = vmatprep.subr.mxu0 %v216_v44  ;;  %v522_v36 = vld [vmem:[#allocation5 + $0xd58] sm:$0xff]  ;;  %v521_v38 = vld [vmem:[#allocation5 + $0xd50] sm:$0xff]  ;;  %v516_v40 = vld [vmem:[#allocation5 + $0xd28] sm:$0xff] }
  0x78   :  { %1404 = vmatprep.subr.mxu1 %v408_v45  ;;  %1334 = vmatpush2.msra.mxu0 %v215_v46  ;;  %v714_v37 = vld [vmem:[#allocation5 + $0x1358] sm:$0xff]  ;;  %v713_v39 = vld [vmem:[#allocation5 + $0x1350] sm:$0xff]  ;;  %v708_v41 = vld [vmem:[#allocation5 + $0x1328] sm:$0xff] }
  0x79   :  { %1405 = vmatpush2.msra.mxu1 %v407_v47  ;;  %1335 = vmatprep.subr.mxu0 %v210_v48  ;;  %v515_v42 = vld [vmem:[#allocation5 + $0xd20] sm:$0xff]  ;;  %v510_v44 = vld [vmem:[#allocation5 + $0xcf8] sm:$0xff]  ;;  %v509_v46 = vld [vmem:[#allocation5 + $0xcf0] sm:$0xff] }
  0x7a   :  { %1406 = vmatprep.subr.mxu1 %v402_v49  ;;  %1336 = vmatpush2.msra.mxu0 %v209_v50  ;;  %v707_v43 = vld [vmem:[#allocation5 + $0x1320] sm:$0xff]  ;;  %v702_v45 = vld [vmem:[#allocation5 + $0x12f8] sm:$0xff]  ;;  %v701_v47 = vld [vmem:[#allocation5 + $0x12f0] sm:$0xff] }
  0x7b   :  { %1407 = vmatpush2.msra.mxu1 %v401_v51  ;;  %1337 = vmatprep.subr.mxu0 %v204_v52  ;;  %v504_v48 = vld [vmem:[#allocation5 + $0xcc8] sm:$0xff]  ;;  %v503_v50 = vld [vmem:[#allocation5 + $0xcc0] sm:$0xff]  ;;  %v498_v52 = vld [vmem:[#allocation5 + $0xc98] sm:$0xff] }
  0x7c   :  { %1408 = vmatprep.subr.mxu1 %v396_v53  ;;  %1338 = vmatpush2.msra.mxu0 %v203_v54  ;;  %v696_v49 = vld [vmem:[#allocation5 + $0x12c8] sm:$0xff]  ;;  %v695_v51 = vld [vmem:[#allocation5 + $0x12c0] sm:$0xff]  ;;  %v690_v53 = vld [vmem:[#allocation5 + $0x1298] sm:$0xff] }
  0x7d   :  { %1409 = vmatpush2.msra.mxu1 %v395_v55  ;;  %1339 = vmatprep.subr.mxu0 %v198_v56  ;;  %v497_v54 = vld [vmem:[#allocation5 + $0xc90] sm:$0xff]  ;;  %v492_v56 = vld [vmem:[#allocation5 + $0xc68] sm:$0xff] }
  0x7e   :  { %1410 = vmatprep.subr.mxu1 %v390_v57  ;;  %1340 = vmatpush2.msra.mxu0 %v197_v58  ;;  %v689_v55 = vld [vmem:[#allocation5 + $0x1290] sm:$0xff]  ;;  %v684_v57 = vld [vmem:[#allocation5 + $0x1268] sm:$0xff]  ;;  %v491_v58 = vld [vmem:[#allocation5 + $0xc60] sm:$0xff] }
  0x7f   :  { %1411 = vmatpush2.msra.mxu1 %v389_v59  ;;  %1341 = vmatprep.subr.mxu0 %v192_v60  ;;  %v683_v59 = vld [vmem:[#allocation5 + $0x1260] sm:$0xff]  ;;  %v486_v60 = vld [vmem:[#allocation5 + $0xc38] sm:$0xff] }
  0x80   :  { %1412 = vmatprep.subr.mxu1 %v384_v61  ;;  %1342 = vmatpush2.msra.mxu0 %v191_v62  ;;  %v678_v61 = vld [vmem:[#allocation5 + $0x1238] sm:$0xff]  ;;  %v485_v62 = vld [vmem:[#allocation5 + $0xc30] sm:$0xff] }
  0x81   :  { %1343 = vmatprep.mubr.f32.mxu0 %v84_v63  ;;  %1413 = vmatpush2.msra.mxu1 %v383_v0  ;;  %v677_v63 = vld [vmem:[#allocation5 + $0x1230] sm:$0xff]  ;;  %v480_v0 = vld [vmem:[#allocation5 + $0xc08] sm:$0xff] }
  0x82   :  { %1344 = vmatmul.mubr.f32.vlgmr.msra.gmra.mxu0 %v83_v1  ;;  %1414 = vmatprep.mubr.f32.mxu1 %v86_v2  ;;  %v672_v1 = vld [vmem:[#allocation5 + $0x1208] sm:$0xff]  ;;  %v479_v2 = vld [vmem:[#allocation5 + $0xc00] sm:$0xff] }
  0x83   :  { %1421 = vmatprep.subr.mxu0 %v570_v3  ;;  %1492 = vmatprep.subr.mxu1 %v762_v4  ;;  %v671_v3 = vld [vmem:[#allocation5 + $0x1200] sm:$0xff]  ;;  %v666_v4 = vld [vmem:[#allocation5 + $0x11d8] sm:$0xff] }
  0x84   :  { %1415 = vmatmul.mubr.f32.vlgmr.msra.gmra.mxu1 %v85_v5  ;;  %1422 = vmatpush1.msra.mxu0 %v569_v6  ;;  %v858_v5 = vld [vmem:[#allocation5 + $0x17d8] sm:$0xff]  ;;  %v665_v6 = vld [vmem:[#allocation5 + $0x11d0] sm:$0xff] }
  0x85   :  { %1493 = vmatpush1.msra.mxu1 %v761_v7  ;;  %1423 = vmatprep.subr.mxu0 %v564_v8  ;;  %v857_v7 = vld [vmem:[#allocation5 + $0x17d0] sm:$0xff]  ;;  %v660_v8 = vld [vmem:[#allocation5 + $0x11a8] sm:$0xff] }
  0x86   :  { %1494 = vmatprep.subr.mxu1 %v756_v9  ;;  %1424 = vmatpush1.msra.mxu0 %v563_v10  ;;  %v852_v9 = vld [vmem:[#allocation5 + $0x17a8] sm:$0xff]  ;;  %v659_v10 = vld [vmem:[#allocation5 + $0x11a0] sm:$0xff] }
  0x87   :  { %1495 = vmatpush1.msra.mxu1 %v755_v11  ;;  %1425 = vmatprep.subr.mxu0 %v558_v12  ;;  %v851_v11 = vld [vmem:[#allocation5 + $0x17a0] sm:$0xff]  ;;  %v654_v12 = vld [vmem:[#allocation5 + $0x1178] sm:$0xff] }
  0x88   :  { %1496 = vmatprep.subr.mxu1 %v750_v13  ;;  %1426 = vmatpush1.msra.mxu0 %v557_v14  ;;  %v846_v13 = vld [vmem:[#allocation5 + $0x1778] sm:$0xff]  ;;  %v653_v14 = vld [vmem:[#allocation5 + $0x1170] sm:$0xff] }
  0x89   :  { %1497 = vmatpush1.msra.mxu1 %v749_v15  ;;  %1427 = vmatprep.subr.mxu0 %v552_v16  ;;  %v845_v15 = vld [vmem:[#allocation5 + $0x1770] sm:$0xff]  ;;  %v648_v16 = vld [vmem:[#allocation5 + $0x1148] sm:$0xff] }
  0x8a   :  { %1498 = vmatprep.subr.mxu1 %v744_v17  ;;  %1428 = vmatpush1.msra.mxu0 %v551_v18  ;;  %v840_v17 = vld [vmem:[#allocation5 + $0x1748] sm:$0xff]  ;;  %v647_v18 = vld [vmem:[#allocation5 + $0x1140] sm:$0xff] }
  0x8b   :  { %1499 = vmatpush1.msra.mxu1 %v743_v19  ;;  %1429 = vmatprep.subr.mxu0 %v546_v20  ;;  %v839_v19 = vld [vmem:[#allocation5 + $0x1740] sm:$0xff]  ;;  %v642_v20 = vld [vmem:[#allocation5 + $0x1118] sm:$0xff] }
  0x8c   :  { %1500 = vmatprep.subr.mxu1 %v738_v21  ;;  %1430 = vmatpush1.msra.mxu0 %v545_v22  ;;  %v834_v21 = vld [vmem:[#allocation5 + $0x1718] sm:$0xff]  ;;  %v641_v22 = vld [vmem:[#allocation5 + $0x1110] sm:$0xff] }
  0x8d   :  { %1501 = vmatpush1.msra.mxu1 %v737_v23  ;;  %1431 = vmatprep.subr.mxu0 %v540_v24  ;;  %v833_v23 = vld [vmem:[#allocation5 + $0x1710] sm:$0xff]  ;;  %v636_v24 = vld [vmem:[#allocation5 + $0x10e8] sm:$0xff] }
  0x8e   :  { %1502 = vmatprep.subr.mxu1 %v732_v25  ;;  %1432 = vmatpush1.msra.mxu0 %v539_v26  ;;  %v828_v25 = vld [vmem:[#allocation5 + $0x16e8] sm:$0xff]  ;;  %v635_v26 = vld [vmem:[#allocation5 + $0x10e0] sm:$0xff] }
  0x8f   :  { %1503 = vmatpush1.msra.mxu1 %v731_v27  ;;  %1433 = vmatprep.subr.mxu0 %v534_v28  ;;  %v827_v27 = vld [vmem:[#allocation5 + $0x16e0] sm:$0xff]  ;;  %v630_v28 = vld [vmem:[#allocation5 + $0x10b8] sm:$0xff] }
  0x90   :  { %1504 = vmatprep.subr.mxu1 %v726_v29  ;;  %1434 = vmatpush1.msra.mxu0 %v533_v30  ;;  %v822_v29 = vld [vmem:[#allocation5 + $0x16b8] sm:$0xff]  ;;  %v629_v30 = vld [vmem:[#allocation5 + $0x10b0] sm:$0xff] }
  0x91   :  { %1505 = vmatpush1.msra.mxu1 %v725_v31  ;;  %1435 = vmatprep.subr.mxu0 %v528_v32  ;;  %v821_v31 = vld [vmem:[#allocation5 + $0x16b0] sm:$0xff]  ;;  %v624_v32 = vld [vmem:[#allocation5 + $0x1088] sm:$0xff] }
  0x92   :  { %1506 = vmatprep.subr.mxu1 %v720_v33  ;;  %1436 = vmatpush1.msra.mxu0 %v527_v34  ;;  %v816_v33 = vld [vmem:[#allocation5 + $0x1688] sm:$0xff]  ;;  %v623_v34 = vld [vmem:[#allocation5 + $0x1080] sm:$0xff] }
  0x93   :  { %1507 = vmatpush1.msra.mxu1 %v719_v35  ;;  %1437 = vmatprep.subr.mxu0 %v522_v36  ;;  %v815_v35 = vld [vmem:[#allocation5 + $0x1680] sm:$0xff]  ;;  %v618_v36 = vld [vmem:[#allocation5 + $0x1058] sm:$0xff] }
  0x94   :  { %1508 = vmatprep.subr.mxu1 %v714_v37  ;;  %1438 = vmatpush1.msra.mxu0 %v521_v38  ;;  %v810_v37 = vld [vmem:[#allocation5 + $0x1658] sm:$0xff]  ;;  %v617_v38 = vld [vmem:[#allocation5 + $0x1050] sm:$0xff] }
  0x95   :  { %1509 = vmatpush1.msra.mxu1 %v713_v39  ;;  %1439 = vmatprep.subr.mxu0 %v516_v40  ;;  %v809_v39 = vld [vmem:[#allocation5 + $0x1650] sm:$0xff]  ;;  %v612_v40 = vld [vmem:[#allocation5 + $0x1028] sm:$0xff] }
  0x96   :  { %1510 = vmatprep.subr.mxu1 %v708_v41  ;;  %1440 = vmatpush1.msra.mxu0 %v515_v42  ;;  %v804_v41 = vld [vmem:[#allocation5 + $0x1628] sm:$0xff]  ;;  %v611_v42 = vld [vmem:[#allocation5 + $0x1020] sm:$0xff] }
  0x97   :  { %1511 = vmatpush1.msra.mxu1 %v707_v43  ;;  %1441 = vmatprep.subr.mxu0 %v510_v44  ;;  %v803_v43 = vld [vmem:[#allocation5 + $0x1620] sm:$0xff]  ;;  %v606_v44 = vld [vmem:[#allocation5 + $0xff8] sm:$0xff] }
  0x98   :  { %1512 = vmatprep.subr.mxu1 %v702_v45  ;;  %1442 = vmatpush1.msra.mxu0 %v509_v46  ;;  %v798_v45 = vld [vmem:[#allocation5 + $0x15f8] sm:$0xff]  ;;  %v605_v46 = vld [vmem:[#allocation5 + $0xff0] sm:$0xff] }
  0x99   :  { %1513 = vmatpush1.msra.mxu1 %v701_v47  ;;  %1443 = vmatprep.subr.mxu0 %v504_v48  ;;  %v797_v47 = vld [vmem:[#allocation5 + $0x15f0] sm:$0xff]  ;;  %v600_v48 = vld [vmem:[#allocation5 + $0xfc8] sm:$0xff] }
  0x9a   :  { %1514 = vmatprep.subr.mxu1 %v696_v49  ;;  %1444 = vmatpush1.msra.mxu0 %v503_v50  ;;  %v792_v49 = vld [vmem:[#allocation5 + $0x15c8] sm:$0xff]  ;;  %v599_v50 = vld [vmem:[#allocation5 + $0xfc0] sm:$0xff] }
  0x9b   :  { %1515 = vmatpush1.msra.mxu1 %v695_v51  ;;  %1445 = vmatprep.subr.mxu0 %v498_v52  ;;  %v791_v51 = vld [vmem:[#allocation5 + $0x15c0] sm:$0xff]  ;;  %v594_v52 = vld [vmem:[#allocation5 + $0xf98] sm:$0xff] }
  0x9c   :  { %1516 = vmatprep.subr.mxu1 %v690_v53  ;;  %1446 = vmatpush1.msra.mxu0 %v497_v54  ;;  %v786_v53 = vld [vmem:[#allocation5 + $0x1598] sm:$0xff]  ;;  %v593_v54 = vld [vmem:[#allocation5 + $0xf90] sm:$0xff] }
  0x9d   :  { %1517 = vmatpush1.msra.mxu1 %v689_v55  ;;  %1447 = vmatprep.subr.mxu0 %v492_v56  ;;  %v785_v55 = vld [vmem:[#allocation5 + $0x1590] sm:$0xff]  ;;  %v588_v56 = vld [vmem:[#allocation5 + $0xf68] sm:$0xff] }
  0x9e   :  { %1518 = vmatprep.subr.mxu1 %v684_v57  ;;  %1448 = vmatpush1.msra.mxu0 %v491_v58  ;;  %v780_v57 = vld [vmem:[#allocation5 + $0x1568] sm:$0xff]  ;;  %v587_v58 = vld [vmem:[#allocation5 + $0xf60] sm:$0xff] }
  0x9f   :  { %1519 = vmatpush1.msra.mxu1 %v683_v59  ;;  %1449 = vmatprep.subr.mxu0 %v486_v60  ;;  %v779_v59 = vld [vmem:[#allocation5 + $0x1560] sm:$0xff]  ;;  %v582_v60 = vld [vmem:[#allocation5 + $0xf38] sm:$0xff] }
  0xa0   :  { %1520 = vmatprep.subr.mxu1 %v678_v61  ;;  %1450 = vmatpush1.msra.mxu0 %v485_v62  ;;  %v774_v61 = vld [vmem:[#allocation5 + $0x1538] sm:$0xff]  ;;  %v581_v62 = vld [vmem:[#allocation5 + $0xf30] sm:$0xff] }
  0xa1   :  { %1521 = vmatpush1.msra.mxu1 %v677_v63  ;;  %1451 = vmatprep.subr.mxu0 %v480_v0  ;;  %v773_v63 = vld [vmem:[#allocation5 + $0x1530] sm:$0xff]  ;;  %v576_v0 = vld [vmem:[#allocation5 + $0xf08] sm:$0xff] }
  0xa2   :  { %1522 = vmatprep.subr.mxu1 %v672_v1  ;;  %1452 = vmatpush1.msra.mxu0 %v479_v2  ;;  %v768_v1 = vld [vmem:[#allocation5 + $0x1508] sm:$0xff]  ;;  %v575_v2 = vld [vmem:[#allocation5 + $0xf00] sm:$0xff] }
  0xa3   :  { %1523 = vmatpush1.msra.mxu1 %v671_v3  ;;  %1453 = vmatprep.subr.mxu0 %v666_v4  ;;  %v88_v3 = vld [vmem:[#allocation2 + $0x28] sm:$0xff]  ;;  %v767_v4 = vld [vmem:[#allocation5 + $0x1500] sm:$0xff] }
  0xa4   :  { %1524 = vmatprep.subr.mxu1 %v858_v5  ;;  %1454 = vmatpush2.msra.mxu0 %v665_v6  ;;  %v87_v5 = vld [vmem:[#allocation2 + $0x20] sm:$0xff]  ;;  %v90_v6 = vld [vmem:[#allocation2 + $0x38] sm:$0xff] }
  0xa5   :  { %1525 = vmatpush2.msra.mxu1 %v857_v7  ;;  %1455 = vmatprep.subr.mxu0 %v660_v8  ;;  %v954_v7 = vld [vmem:[#allocation5 + $0x1ad8] sm:$0xff] }
  0xa6   :  { %1526 = vmatprep.subr.mxu1 %v852_v9  ;;  %1456 = vmatpush2.msra.mxu0 %v659_v10  ;;  %v1146_v8 = vld [vmem:[#allocation5 + $0x20d8] sm:$0xff]  ;;  %v89_v9 = vld [vmem:[#allocation2 + $0x30] sm:$0xff] }
  0xa7   :  { %1527 = vmatpush2.msra.mxu1 %v851_v11  ;;  %1457 = vmatprep.subr.mxu0 %v654_v12  ;;  %v953_v10 = vld [vmem:[#allocation5 + $0x1ad0] sm:$0xff]  ;;  %v948_v12 = vld [vmem:[#allocation5 + $0x1aa8] sm:$0xff] }
  0xa8   :  { %1528 = vmatprep.subr.mxu1 %v846_v13  ;;  %1458 = vmatpush2.msra.mxu0 %v653_v14  ;;  %v1145_v11 = vld [vmem:[#allocation5 + $0x20d0] sm:$0xff]  ;;  %v1140_v13 = vld [vmem:[#allocation5 + $0x20a8] sm:$0xff]  ;;  %v947_v14 = vld [vmem:[#allocation5 + $0x1aa0] sm:$0xff] }
  0xa9   :  { %1529 = vmatpush2.msra.mxu1 %v845_v15  ;;  %1459 = vmatprep.subr.mxu0 %v648_v16  ;;  %v1139_v15 = vld [vmem:[#allocation5 + $0x20a0] sm:$0xff]  ;;  %v942_v16 = vld [vmem:[#allocation5 + $0x1a78] sm:$0xff] }
  0xaa   :  { %1530 = vmatprep.subr.mxu1 %v840_v17  ;;  %1460 = vmatpush2.msra.mxu0 %v647_v18  ;;  %v1134_v17 = vld [vmem:[#allocation5 + $0x2078] sm:$0xff]  ;;  %v941_v18 = vld [vmem:[#allocation5 + $0x1a70] sm:$0xff] }
  0xab   :  { %1531 = vmatpush2.msra.mxu1 %v839_v19  ;;  %1461 = vmatprep.subr.mxu0 %v642_v20  ;;  %v1133_v19 = vld [vmem:[#allocation5 + $0x2070] sm:$0xff]  ;;  %v936_v20 = vld [vmem:[#allocation5 + $0x1a48] sm:$0xff] }
  0xac   :  { %1532 = vmatprep.subr.mxu1 %v834_v21  ;;  %1462 = vmatpush2.msra.mxu0 %v641_v22  ;;  %v1128_v21 = vld [vmem:[#allocation5 + $0x2048] sm:$0xff]  ;;  %v935_v22 = vld [vmem:[#allocation5 + $0x1a40] sm:$0xff] }
  0xad   :  { %1533 = vmatpush2.msra.mxu1 %v833_v23  ;;  %1463 = vmatprep.subr.mxu0 %v636_v24  ;;  %v1127_v23 = vld [vmem:[#allocation5 + $0x2040] sm:$0xff]  ;;  %v930_v24 = vld [vmem:[#allocation5 + $0x1a18] sm:$0xff] }
  0xae   :  { %1534 = vmatprep.subr.mxu1 %v828_v25  ;;  %1464 = vmatpush2.msra.mxu0 %v635_v26  ;;  %v1122_v25 = vld [vmem:[#allocation5 + $0x2018] sm:$0xff]  ;;  %v929_v26 = vld [vmem:[#allocation5 + $0x1a10] sm:$0xff] }
  0xaf   :  { %1535 = vmatpush2.msra.mxu1 %v827_v27  ;;  %1465 = vmatprep.subr.mxu0 %v630_v28  ;;  %v1121_v27 = vld [vmem:[#allocation5 + $0x2010] sm:$0xff]  ;;  %v924_v28 = vld [vmem:[#allocation5 + $0x19e8] sm:$0xff] }
  0xb0   :  { %1536 = vmatprep.subr.mxu1 %v822_v29  ;;  %1466 = vmatpush2.msra.mxu0 %v629_v30  ;;  %v1116_v29 = vld [vmem:[#allocation5 + $0x1fe8] sm:$0xff]  ;;  %v923_v30 = vld [vmem:[#allocation5 + $0x19e0] sm:$0xff] }
  0xb1   :  { %1537 = vmatpush2.msra.mxu1 %v821_v31  ;;  %1467 = vmatprep.subr.mxu0 %v624_v32  ;;  %v1115_v31 = vld [vmem:[#allocation5 + $0x1fe0] sm:$0xff]  ;;  %v918_v32 = vld [vmem:[#allocation5 + $0x19b8] sm:$0xff] }
  0xb2   :  { %1538 = vmatprep.subr.mxu1 %v816_v33  ;;  %1468 = vmatpush2.msra.mxu0 %v623_v34  ;;  %v1110_v33 = vld [vmem:[#allocation5 + $0x1fb8] sm:$0xff]  ;;  %v917_v34 = vld [vmem:[#allocation5 + $0x19b0] sm:$0xff] }
  0xb3   :  { %1539 = vmatpush2.msra.mxu1 %v815_v35  ;;  %1469 = vmatprep.subr.mxu0 %v618_v36  ;;  %v1109_v35 = vld [vmem:[#allocation5 + $0x1fb0] sm:$0xff]  ;;  %v912_v36 = vld [vmem:[#allocation5 + $0x1988] sm:$0xff] }
  0xb4   :  { %1540 = vmatprep.subr.mxu1 %v810_v37  ;;  %1470 = vmatpush2.msra.mxu0 %v617_v38  ;;  %v1104_v37 = vld [vmem:[#allocation5 + $0x1f88] sm:$0xff]  ;;  %v911_v38 = vld [vmem:[#allocation5 + $0x1980] sm:$0xff] }
  0xb5   :  { %1541 = vmatpush2.msra.mxu1 %v809_v39  ;;  %1471 = vmatprep.subr.mxu0 %v612_v40  ;;  %v1103_v39 = vld [vmem:[#allocation5 + $0x1f80] sm:$0xff]  ;;  %v906_v40 = vld [vmem:[#allocation5 + $0x1958] sm:$0xff] }
  0xb6   :  { %1542 = vmatprep.subr.mxu1 %v804_v41  ;;  %1472 = vmatpush2.msra.mxu0 %v611_v42  ;;  %v1098_v41 = vld [vmem:[#allocation5 + $0x1f58] sm:$0xff]  ;;  %v905_v42 = vld [vmem:[#allocation5 + $0x1950] sm:$0xff] }
  0xb7   :  { %1543 = vmatpush2.msra.mxu1 %v803_v43  ;;  %1473 = vmatprep.subr.mxu0 %v606_v44  ;;  %v1097_v43 = vld [vmem:[#allocation5 + $0x1f50] sm:$0xff]  ;;  %v900_v44 = vld [vmem:[#allocation5 + $0x1928] sm:$0xff] }
  0xb8   :  { %1544 = vmatprep.subr.mxu1 %v798_v45  ;;  %1474 = vmatpush2.msra.mxu0 %v605_v46  ;;  %v1092_v45 = vld [vmem:[#allocation5 + $0x1f28] sm:$0xff]  ;;  %v899_v46 = vld [vmem:[#allocation5 + $0x1920] sm:$0xff] }
  0xb9   :  { %1545 = vmatpush2.msra.mxu1 %v797_v47  ;;  %1475 = vmatprep.subr.mxu0 %v600_v48  ;;  %v1091_v47 = vld [vmem:[#allocation5 + $0x1f20] sm:$0xff]  ;;  %v894_v48 = vld [vmem:[#allocation5 + $0x18f8] sm:$0xff] }
  0xba   :  { %1546 = vmatprep.subr.mxu1 %v792_v49  ;;  %1476 = vmatpush2.msra.mxu0 %v599_v50  ;;  %v1086_v49 = vld [vmem:[#allocation5 + $0x1ef8] sm:$0xff]  ;;  %v893_v50 = vld [vmem:[#allocation5 + $0x18f0] sm:$0xff] }
  0xbb   :  { %1547 = vmatpush2.msra.mxu1 %v791_v51  ;;  %1477 = vmatprep.subr.mxu0 %v594_v52  ;;  %v1085_v51 = vld [vmem:[#allocation5 + $0x1ef0] sm:$0xff]  ;;  %v888_v52 = vld [vmem:[#allocation5 + $0x18c8] sm:$0xff] }
  0xbc   :  { %1548 = vmatprep.subr.mxu1 %v786_v53  ;;  %1478 = vmatpush2.msra.mxu0 %v593_v54  ;;  %v1080_v53 = vld [vmem:[#allocation5 + $0x1ec8] sm:$0xff]  ;;  %v887_v54 = vld [vmem:[#allocation5 + $0x18c0] sm:$0xff] }
  0xbd   :  { %1549 = vmatpush2.msra.mxu1 %v785_v55  ;;  %1479 = vmatprep.subr.mxu0 %v588_v56  ;;  %v1079_v55 = vld [vmem:[#allocation5 + $0x1ec0] sm:$0xff]  ;;  %v882_v56 = vld [vmem:[#allocation5 + $0x1898] sm:$0xff] }
  0xbe   :  { %1550 = vmatprep.subr.mxu1 %v780_v57  ;;  %1480 = vmatpush2.msra.mxu0 %v587_v58  ;;  %v1074_v57 = vld [vmem:[#allocation5 + $0x1e98] sm:$0xff]  ;;  %v881_v58 = vld [vmem:[#allocation5 + $0x1890] sm:$0xff] }
  0xbf   :  { %1551 = vmatpush2.msra.mxu1 %v779_v59  ;;  %1481 = vmatprep.subr.mxu0 %v582_v60  ;;  %v1073_v59 = vld [vmem:[#allocation5 + $0x1e90] sm:$0xff]  ;;  %v876_v60 = vld [vmem:[#allocation5 + $0x1868] sm:$0xff] }
  0xc0   :  { %1552 = vmatprep.subr.mxu1 %v774_v61  ;;  %1482 = vmatpush2.msra.mxu0 %v581_v62  ;;  %v1068_v61 = vld [vmem:[#allocation5 + $0x1e68] sm:$0xff]  ;;  %v875_v62 = vld [vmem:[#allocation5 + $0x1860] sm:$0xff] }
  0xc1   :  { %1553 = vmatpush2.msra.mxu1 %v773_v63  ;;  %1483 = vmatprep.subr.mxu0 %v576_v0  ;;  %v1067_v63 = vld [vmem:[#allocation5 + $0x1e60] sm:$0xff]  ;;  %v870_v0 = vld [vmem:[#allocation5 + $0x1838] sm:$0xff] }
  0xc2   :  { %1554 = vmatprep.subr.mxu1 %v768_v1  ;;  %1484 = vmatpush2.msra.mxu0 %v575_v2  ;;  %v1062_v1 = vld [vmem:[#allocation5 + $0x1e38] sm:$0xff]  ;;  %v869_v2 = vld [vmem:[#allocation5 + $0x1830] sm:$0xff] }
  0xc3   :  { %1485 = vmatprep.mubr.f32.mxu0 %v88_v3  ;;  %1555 = vmatpush2.msra.mxu1 %v767_v4  ;;  %v1061_v3 = vld [vmem:[#allocation5 + $0x1e30] sm:$0xff]  ;;  %v864_v4 = vld [vmem:[#allocation5 + $0x1808] sm:$0xff] }
  0xc4   :  { %1486 = vmatmul.mubr.f32.vlgmr.msra.gmra.mxu0 %v87_v5  ;;  %1556 = vmatprep.mubr.f32.mxu1 %v90_v6  ;;  %v1056_v5 = vld [vmem:[#allocation5 + $0x1e08] sm:$0xff]  ;;  %v863_v6 = vld [vmem:[#allocation5 + $0x1800] sm:$0xff] }
  0xc5   :  { %1563 = vmatprep.subr.mxu0 %v954_v7  ;;  %1634 = vmatprep.subr.mxu1 %v1146_v8  ;;  %v1055_v7 = vld [vmem:[#allocation5 + $0x1e00] sm:$0xff]  ;;  %v1050_v8 = vld [vmem:[#allocation5 + $0x1dd8] sm:$0xff] }
  0xc6   :  { %1557 = vmatmul.mubr.f32.vlgmr.msra.gmra.mxu1 %v89_v9  ;;  %1564 = vmatpush1.msra.mxu0 %v953_v10  ;;  %v1242_v9 = vld [vmem:[#allocation5 + $0x23d8] sm:$0xff]  ;;  %v1049_v10 = vld [vmem:[#allocation5 + $0x1dd0] sm:$0xff] }
  0xc7   :  { %1635 = vmatpush1.msra.mxu1 %v1145_v11  ;;  %1565 = vmatprep.subr.mxu0 %v948_v12  ;;  %v1241_v11 = vld [vmem:[#allocation5 + $0x23d0] sm:$0xff]  ;;  %v1044_v12 = vld [vmem:[#allocation5 + $0x1da8] sm:$0xff] }
  0xc8   :  { %1636 = vmatprep.subr.mxu1 %v1140_v13  ;;  %1566 = vmatpush1.msra.mxu0 %v947_v14  ;;  %v1236_v13 = vld [vmem:[#allocation5 + $0x23a8] sm:$0xff]  ;;  %v1043_v14 = vld [vmem:[#allocation5 + $0x1da0] sm:$0xff] }
  0xc9   :  { %1637 = vmatpush1.msra.mxu1 %v1139_v15  ;;  %1567 = vmatprep.subr.mxu0 %v942_v16  ;;  %v1235_v15 = vld [vmem:[#allocation5 + $0x23a0] sm:$0xff]  ;;  %v1038_v16 = vld [vmem:[#allocation5 + $0x1d78] sm:$0xff] }
  0xca   :  { %1638 = vmatprep.subr.mxu1 %v1134_v17  ;;  %1568 = vmatpush1.msra.mxu0 %v941_v18  ;;  %v1230_v17 = vld [vmem:[#allocation5 + $0x2378] sm:$0xff]  ;;  %v1037_v18 = vld [vmem:[#allocation5 + $0x1d70] sm:$0xff] }
  0xcb   :  { %1639 = vmatpush1.msra.mxu1 %v1133_v19  ;;  %1569 = vmatprep.subr.mxu0 %v936_v20  ;;  %v1229_v19 = vld [vmem:[#allocation5 + $0x2370] sm:$0xff]  ;;  %v1032_v20 = vld [vmem:[#allocation5 + $0x1d48] sm:$0xff] }
  0xcc   :  { %1640 = vmatprep.subr.mxu1 %v1128_v21  ;;  %1570 = vmatpush1.msra.mxu0 %v935_v22  ;;  %v1224_v21 = vld [vmem:[#allocation5 + $0x2348] sm:$0xff]  ;;  %v1031_v22 = vld [vmem:[#allocation5 + $0x1d40] sm:$0xff] }
  0xcd   :  { %1641 = vmatpush1.msra.mxu1 %v1127_v23  ;;  %1571 = vmatprep.subr.mxu0 %v930_v24  ;;  %v1223_v23 = vld [vmem:[#allocation5 + $0x2340] sm:$0xff]  ;;  %v1026_v24 = vld [vmem:[#allocation5 + $0x1d18] sm:$0xff] }
  0xce   :  { %1642 = vmatprep.subr.mxu1 %v1122_v25  ;;  %1572 = vmatpush1.msra.mxu0 %v929_v26  ;;  %v1218_v25 = vld [vmem:[#allocation5 + $0x2318] sm:$0xff]  ;;  %v1025_v26 = vld [vmem:[#allocation5 + $0x1d10] sm:$0xff] }
  0xcf   :  { %1643 = vmatpush1.msra.mxu1 %v1121_v27  ;;  %1573 = vmatprep.subr.mxu0 %v924_v28  ;;  %v1217_v27 = vld [vmem:[#allocation5 + $0x2310] sm:$0xff]  ;;  %v1020_v28 = vld [vmem:[#allocation5 + $0x1ce8] sm:$0xff] }
  0xd0   :  { %1644 = vmatprep.subr.mxu1 %v1116_v29  ;;  %1574 = vmatpush1.msra.mxu0 %v923_v30  ;;  %v1212_v29 = vld [vmem:[#allocation5 + $0x22e8] sm:$0xff]  ;;  %v1019_v30 = vld [vmem:[#allocation5 + $0x1ce0] sm:$0xff] }
  0xd1   :  { %1645 = vmatpush1.msra.mxu1 %v1115_v31  ;;  %1575 = vmatprep.subr.mxu0 %v918_v32  ;;  %v1211_v31 = vld [vmem:[#allocation5 + $0x22e0] sm:$0xff]  ;;  %v1014_v32 = vld [vmem:[#allocation5 + $0x1cb8] sm:$0xff] }
  0xd2   :  { %1646 = vmatprep.subr.mxu1 %v1110_v33  ;;  %1576 = vmatpush1.msra.mxu0 %v917_v34  ;;  %v1206_v33 = vld [vmem:[#allocation5 + $0x22b8] sm:$0xff]  ;;  %v1013_v34 = vld [vmem:[#allocation5 + $0x1cb0] sm:$0xff] }
  0xd3   :  { %1647 = vmatpush1.msra.mxu1 %v1109_v35  ;;  %1577 = vmatprep.subr.mxu0 %v912_v36  ;;  %v1205_v35 = vld [vmem:[#allocation5 + $0x22b0] sm:$0xff]  ;;  %v1008_v36 = vld [vmem:[#allocation5 + $0x1c88] sm:$0xff] }
  0xd4   :  { %1648 = vmatprep.subr.mxu1 %v1104_v37  ;;  %1578 = vmatpush1.msra.mxu0 %v911_v38  ;;  %v1200_v37 = vld [vmem:[#allocation5 + $0x2288] sm:$0xff]  ;;  %v1007_v38 = vld [vmem:[#allocation5 + $0x1c80] sm:$0xff] }
  0xd5   :  { %1649 = vmatpush1.msra.mxu1 %v1103_v39  ;;  %1579 = vmatprep.subr.mxu0 %v906_v40  ;;  %v1199_v39 = vld [vmem:[#allocation5 + $0x2280] sm:$0xff]  ;;  %v1002_v40 = vld [vmem:[#allocation5 + $0x1c58] sm:$0xff] }
  0xd6   :  { %1650 = vmatprep.subr.mxu1 %v1098_v41  ;;  %1580 = vmatpush1.msra.mxu0 %v905_v42  ;;  %v1194_v41 = vld [vmem:[#allocation5 + $0x2258] sm:$0xff]  ;;  %v1001_v42 = vld [vmem:[#allocation5 + $0x1c50] sm:$0xff] }
  0xd7   :  { %1651 = vmatpush1.msra.mxu1 %v1097_v43  ;;  %1581 = vmatprep.subr.mxu0 %v900_v44  ;;  %v1193_v43 = vld [vmem:[#allocation5 + $0x2250] sm:$0xff]  ;;  %v996_v44 = vld [vmem:[#allocation5 + $0x1c28] sm:$0xff] }
  0xd8   :  { %1652 = vmatprep.subr.mxu1 %v1092_v45  ;;  %1582 = vmatpush1.msra.mxu0 %v899_v46  ;;  %v1188_v45 = vld [vmem:[#allocation5 + $0x2228] sm:$0xff]  ;;  %v995_v46 = vld [vmem:[#allocation5 + $0x1c20] sm:$0xff] }
  0xd9   :  { %1653 = vmatpush1.msra.mxu1 %v1091_v47  ;;  %1583 = vmatprep.subr.mxu0 %v894_v48  ;;  %v1187_v47 = vld [vmem:[#allocation5 + $0x2220] sm:$0xff]  ;;  %v990_v48 = vld [vmem:[#allocation5 + $0x1bf8] sm:$0xff] }
  0xda   :  { %1654 = vmatprep.subr.mxu1 %v1086_v49  ;;  %1584 = vmatpush1.msra.mxu0 %v893_v50  ;;  %v1182_v49 = vld [vmem:[#allocation5 + $0x21f8] sm:$0xff]  ;;  %v989_v50 = vld [vmem:[#allocation5 + $0x1bf0] sm:$0xff] }
  0xdb   :  { %1655 = vmatpush1.msra.mxu1 %v1085_v51  ;;  %1585 = vmatprep.subr.mxu0 %v888_v52  ;;  %v1181_v51 = vld [vmem:[#allocation5 + $0x21f0] sm:$0xff]  ;;  %v984_v52 = vld [vmem:[#allocation5 + $0x1bc8] sm:$0xff] }
  0xdc   :  { %1656 = vmatprep.subr.mxu1 %v1080_v53  ;;  %1586 = vmatpush1.msra.mxu0 %v887_v54  ;;  %v1176_v53 = vld [vmem:[#allocation5 + $0x21c8] sm:$0xff]  ;;  %v983_v54 = vld [vmem:[#allocation5 + $0x1bc0] sm:$0xff] }
  0xdd   :  { %1657 = vmatpush1.msra.mxu1 %v1079_v55  ;;  %1587 = vmatprep.subr.mxu0 %v882_v56  ;;  %v1175_v55 = vld [vmem:[#allocation5 + $0x21c0] sm:$0xff]  ;;  %v978_v56 = vld [vmem:[#allocation5 + $0x1b98] sm:$0xff] }
  0xde   :  { %1658 = vmatprep.subr.mxu1 %v1074_v57  ;;  %1588 = vmatpush1.msra.mxu0 %v881_v58  ;;  %v1170_v57 = vld [vmem:[#allocation5 + $0x2198] sm:$0xff]  ;;  %v977_v58 = vld [vmem:[#allocation5 + $0x1b90] sm:$0xff] }
  0xdf   :  { %1659 = vmatpush1.msra.mxu1 %v1073_v59  ;;  %1589 = vmatprep.subr.mxu0 %v876_v60  ;;  %v1169_v59 = vld [vmem:[#allocation5 + $0x2190] sm:$0xff]  ;;  %v972_v60 = vld [vmem:[#allocation5 + $0x1b68] sm:$0xff] }
  0xe0   :  { %1660 = vmatprep.subr.mxu1 %v1068_v61  ;;  %1590 = vmatpush1.msra.mxu0 %v875_v62  ;;  %v1164_v61 = vld [vmem:[#allocation5 + $0x2168] sm:$0xff]  ;;  %v971_v62 = vld [vmem:[#allocation5 + $0x1b60] sm:$0xff] }
  0xe1   :  { %1661 = vmatpush1.msra.mxu1 %v1067_v63  ;;  %1591 = vmatprep.subr.mxu0 %v870_v0  ;;  %v1163_v63 = vld [vmem:[#allocation5 + $0x2160] sm:$0xff]  ;;  %v966_v0 = vld [vmem:[#allocation5 + $0x1b38] sm:$0xff] }
  0xe2   :  { %1662 = vmatprep.subr.mxu1 %v1062_v1  ;;  %1592 = vmatpush1.msra.mxu0 %v869_v2  ;;  %v1158_v1 = vld [vmem:[#allocation5 + $0x2138] sm:$0xff]  ;;  %v965_v2 = vld [vmem:[#allocation5 + $0x1b30] sm:$0xff] }
  0xe3   :  { %1663 = vmatpush1.msra.mxu1 %v1061_v3  ;;  %1593 = vmatprep.subr.mxu0 %v864_v4  ;;  %v1157_v3 = vld [vmem:[#allocation5 + $0x2130] sm:$0xff]  ;;  %v960_v4 = vld [vmem:[#allocation5 + $0x1b08] sm:$0xff] }
  0xe4   :  { %1664 = vmatprep.subr.mxu1 %v1056_v5  ;;  %1594 = vmatpush1.msra.mxu0 %v863_v6  ;;  %v1152_v5 = vld [vmem:[#allocation5 + $0x2108] sm:$0xff]  ;;  %v959_v6 = vld [vmem:[#allocation5 + $0x1b00] sm:$0xff] }
  0xe5   :  { %1665 = vmatpush1.msra.mxu1 %v1055_v7  ;;  %1595 = vmatprep.subr.mxu0 %v1050_v8  ;;  %v92_v7 = vld [vmem:[#allocation2 + $0x48] sm:$0xff]  ;;  %v1151_v8 = vld [vmem:[#allocation5 + $0x2100] sm:$0xff] }
  0xe6   :  { %1666 = vmatprep.subr.mxu1 %v1242_v9  ;;  %1596 = vmatpush2.msra.mxu0 %v1049_v10  ;;  %v91_v9 = vld [vmem:[#allocation2 + $0x40] sm:$0xff]  ;;  %v94_v10 = vld [vmem:[#allocation2 + $0x58] sm:$0xff] }
  0xe7   :  { %1667 = vmatpush2.msra.mxu1 %v1241_v11  ;;  %1597 = vmatprep.subr.mxu0 %v1044_v12  ;;  %v188_v11 = vld [vmem:[#allocation5 + $0x2e8] sm:$0xff] }
  0xe8   :  { %1668 = vmatprep.subr.mxu1 %v1236_v13  ;;  %1598 = vmatpush2.msra.mxu0 %v1043_v14  ;;  %v380_v12 = vld [vmem:[#allocation5 + $0x8e8] sm:$0xff]  ;;  %v93_v13 = vld [vmem:[#allocation2 + $0x50] sm:$0xff]  ;;  %v187_v14 = vld [vmem:[#allocation5 + $0x2e0] sm:$0xff] }
  0xe9   :  { %1669 = vmatpush2.msra.mxu1 %v1235_v15  ;;  %1599 = vmatprep.subr.mxu0 %v1038_v16  ;;  %v379_v15 = vld [vmem:[#allocation5 + $0x8e0] sm:$0xff]  ;;  %v182_v16 = vld [vmem:[#allocation5 + $0x2b8] sm:$0xff] }
  0xea   :  { %1670 = vmatprep.subr.mxu1 %v1230_v17  ;;  %1600 = vmatpush2.msra.mxu0 %v1037_v18  ;;  %v374_v17 = vld [vmem:[#allocation5 + $0x8b8] sm:$0xff]  ;;  %v181_v18 = vld [vmem:[#allocation5 + $0x2b0] sm:$0xff] }
  0xeb   :  { %1671 = vmatpush2.msra.mxu1 %v1229_v19  ;;  %1601 = vmatprep.subr.mxu0 %v1032_v20  ;;  %v373_v19 = vld [vmem:[#allocation5 + $0x8b0] sm:$0xff]  ;;  %v176_v20 = vld [vmem:[#allocation5 + $0x288] sm:$0xff] }
  0xec   :  { %1672 = vmatprep.subr.mxu1 %v1224_v21  ;;  %1602 = vmatpush2.msra.mxu0 %v1031_v22  ;;  %v368_v21 = vld [vmem:[#allocation5 + $0x888] sm:$0xff]  ;;  %v175_v22 = vld [vmem:[#allocation5 + $0x280] sm:$0xff] }
  0xed   :  { %1673 = vmatpush2.msra.mxu1 %v1223_v23  ;;  %1603 = vmatprep.subr.mxu0 %v1026_v24  ;;  %v367_v23 = vld [vmem:[#allocation5 + $0x880] sm:$0xff]  ;;  %v170_v24 = vld [vmem:[#allocation5 + $0x258] sm:$0xff] }
  0xee   :  { %1674 = vmatprep.subr.mxu1 %v1218_v25  ;;  %1604 = vmatpush2.msra.mxu0 %v1025_v26  ;;  %v362_v25 = vld [vmem:[#allocation5 + $0x858] sm:$0xff]  ;;  %v169_v26 = vld [vmem:[#allocation5 + $0x250] sm:$0xff] }
  0xef   :  { %1675 = vmatpush2.msra.mxu1 %v1217_v27  ;;  %1605 = vmatprep.subr.mxu0 %v1020_v28  ;;  %v361_v27 = vld [vmem:[#allocation5 + $0x850] sm:$0xff]  ;;  %v164_v28 = vld [vmem:[#allocation5 + $0x228] sm:$0xff] }
  0xf0   :  { %1676 = vmatprep.subr.mxu1 %v1212_v29  ;;  %1606 = vmatpush2.msra.mxu0 %v1019_v30  ;;  %v356_v29 = vld [vmem:[#allocation5 + $0x828] sm:$0xff]  ;;  %v163_v30 = vld [vmem:[#allocation5 + $0x220] sm:$0xff] }
  0xf1   :  { %1677 = vmatpush2.msra.mxu1 %v1211_v31  ;;  %1607 = vmatprep.subr.mxu0 %v1014_v32  ;;  %v355_v31 = vld [vmem:[#allocation5 + $0x820] sm:$0xff]  ;;  %v158_v32 = vld [vmem:[#allocation5 + $0x1f8] sm:$0xff] }
  0xf2   :  { %1678 = vmatprep.subr.mxu1 %v1206_v33  ;;  %1608 = vmatpush2.msra.mxu0 %v1013_v34  ;;  %v350_v33 = vld [vmem:[#allocation5 + $0x7f8] sm:$0xff]  ;;  %v157_v34 = vld [vmem:[#allocation5 + $0x1f0] sm:$0xff] }
  0xf3   :  { %1679 = vmatpush2.msra.mxu1 %v1205_v35  ;;  %1609 = vmatprep.subr.mxu0 %v1008_v36  ;;  %v349_v35 = vld [vmem:[#allocation5 + $0x7f0] sm:$0xff]  ;;  %v152_v36 = vld [vmem:[#allocation5 + $0x1c8] sm:$0xff] }
  0xf4   :  { %1680 = vmatprep.subr.mxu1 %v1200_v37  ;;  %1610 = vmatpush2.msra.mxu0 %v1007_v38  ;;  %v344_v37 = vld [vmem:[#allocation5 + $0x7c8] sm:$0xff]  ;;  %v151_v38 = vld [vmem:[#allocation5 + $0x1c0] sm:$0xff] }
  0xf5   :  { %1681 = vmatpush2.msra.mxu1 %v1199_v39  ;;  %1611 = vmatprep.subr.mxu0 %v1002_v40  ;;  %v343_v39 = vld [vmem:[#allocation5 + $0x7c0] sm:$0xff]  ;;  %v146_v40 = vld [vmem:[#allocation5 + $0x198] sm:$0xff] }
  0xf6   :  { %1682 = vmatprep.subr.mxu1 %v1194_v41  ;;  %1612 = vmatpush2.msra.mxu0 %v1001_v42  ;;  %v338_v41 = vld [vmem:[#allocation5 + $0x798] sm:$0xff]  ;;  %v145_v42 = vld [vmem:[#allocation5 + $0x190] sm:$0xff] }
  0xf7   :  { %1683 = vmatpush2.msra.mxu1 %v1193_v43  ;;  %1613 = vmatprep.subr.mxu0 %v996_v44  ;;  %v337_v43 = vld [vmem:[#allocation5 + $0x790] sm:$0xff]  ;;  %v140_v44 = vld [vmem:[#allocation5 + $0x168] sm:$0xff] }
  0xf8   :  { %1684 = vmatprep.subr.mxu1 %v1188_v45  ;;  %1614 = vmatpush2.msra.mxu0 %v995_v46  ;;  %v332_v45 = vld [vmem:[#allocation5 + $0x768] sm:$0xff]  ;;  %v139_v46 = vld [vmem:[#allocation5 + $0x160] sm:$0xff] }
  0xf9   :  { %1685 = vmatpush2.msra.mxu1 %v1187_v47  ;;  %1615 = vmatprep.subr.mxu0 %v990_v48  ;;  %v331_v47 = vld [vmem:[#allocation5 + $0x760] sm:$0xff]  ;;  %v134_v48 = vld [vmem:[#allocation5 + $0x138] sm:$0xff] }
  0xfa   :  { %1686 = vmatprep.subr.mxu1 %v1182_v49  ;;  %1616 = vmatpush2.msra.mxu0 %v989_v50  ;;  %v326_v49 = vld [vmem:[#allocation5 + $0x738] sm:$0xff]  ;;  %v133_v50 = vld [vmem:[#allocation5 + $0x130] sm:$0xff] }
  0xfb   :  { %1687 = vmatpush2.msra.mxu1 %v1181_v51  ;;  %1617 = vmatprep.subr.mxu0 %v984_v52  ;;  %v325_v51 = vld [vmem:[#allocation5 + $0x730] sm:$0xff]  ;;  %v128_v52 = vld [vmem:[#allocation5 + $0x108] sm:$0xff] }
  0xfc   :  { %1688 = vmatprep.subr.mxu1 %v1176_v53  ;;  %1618 = vmatpush2.msra.mxu0 %v983_v54  ;;  %v320_v53 = vld [vmem:[#allocation5 + $0x708] sm:$0xff]  ;;  %v127_v54 = vld [vmem:[#allocation5 + $0x100] sm:$0xff] }
  0xfd   :  { %1689 = vmatpush2.msra.mxu1 %v1175_v55  ;;  %1619 = vmatprep.subr.mxu0 %v978_v56  ;;  %v319_v55 = vld [vmem:[#allocation5 + $0x700] sm:$0xff]  ;;  %v122_v56 = vld [vmem:[#allocation5 + $0xd8] sm:$0xff] }
  0xfe   :  { %1690 = vmatprep.subr.mxu1 %v1170_v57  ;;  %1620 = vmatpush2.msra.mxu0 %v977_v58  ;;  %v314_v57 = vld [vmem:[#allocation5 + $0x6d8] sm:$0xff]  ;;  %v121_v58 = vld [vmem:[#allocation5 + $0xd0] sm:$0xff] }
  0xff   :  { %1691 = vmatpush2.msra.mxu1 %v1169_v59  ;;  %1621 = vmatprep.subr.mxu0 %v972_v60  ;;  %v313_v59 = vld [vmem:[#allocation5 + $0x6d0] sm:$0xff]  ;;  %v116_v60 = vld [vmem:[#allocation5 + $0xa8] sm:$0xff] }
 0x100   :  { %1692 = vmatprep.subr.mxu1 %v1164_v61  ;;  %1622 = vmatpush2.msra.mxu0 %v971_v62  ;;  %v308_v61 = vld [vmem:[#allocation5 + $0x6a8] sm:$0xff]  ;;  %v115_v62 = vld [vmem:[#allocation5 + $0xa0] sm:$0xff] }
 0x101   :  { %1693 = vmatpush2.msra.mxu1 %v1163_v63  ;;  %1623 = vmatprep.subr.mxu0 %v966_v0  ;;  %v307_v63 = vld [vmem:[#allocation5 + $0x6a0] sm:$0xff]  ;;  %v110_v0 = vld [vmem:[#allocation5 + $0x78] sm:$0xff] }
 0x102   :  { %1694 = vmatprep.subr.mxu1 %v1158_v1  ;;  %1624 = vmatpush2.msra.mxu0 %v965_v2  ;;  %v302_v1 = vld [vmem:[#allocation5 + $0x678] sm:$0xff]  ;;  %v109_v2 = vld [vmem:[#allocation5 + $0x70] sm:$0xff] }
 0x103   :  { %1695 = vmatpush2.msra.mxu1 %v1157_v3  ;;  %1625 = vmatprep.subr.mxu0 %v960_v4  ;;  %v301_v3 = vld [vmem:[#allocation5 + $0x670] sm:$0xff]  ;;  %v104_v4 = vld [vmem:[#allocation5 + $0x48] sm:$0xff] }
 0x104   :  { %1696 = vmatprep.subr.mxu1 %v1152_v5  ;;  %1626 = vmatpush2.msra.mxu0 %v959_v6  ;;  %v296_v5 = vld [vmem:[#allocation5 + $0x648] sm:$0xff]  ;;  %v103_v6 = vld [vmem:[#allocation5 + $0x40] sm:$0xff] }
 0x105   :  { %1627 = vmatprep.mubr.f32.mxu0 %v92_v7  ;;  %1697 = vmatpush2.msra.mxu1 %v1151_v8  ;;  %v295_v7 = vld [vmem:[#allocation5 + $0x640] sm:$0xff]  ;;  %v98_v8 = vld [vmem:[#allocation5 + $0x18] sm:$0xff] }
 0x106   :  { %1628 = vmatmul.mubr.f32.vlgmr.msra.gmra.mxu0 %v91_v9  ;;  %1698 = vmatprep.mubr.f32.mxu1 %v94_v10  ;;  %v290_v9 = vld [vmem:[#allocation5 + $0x618] sm:$0xff]  ;;  %v97_v10 = vld [vmem:[#allocation5 + $0x10] sm:$0xff] }
 0x107   :  { %1705 = vmatprep.subr.mxu0 %v188_v11  ;;  %1776 = vmatprep.subr.mxu1 %v380_v12  ;;  %v289_v11 = vld [vmem:[#allocation5 + $0x610] sm:$0xff]  ;;  %v284_v12 = vld [vmem:[#allocation5 + $0x5e8] sm:$0xff] }
 0x108   :  { %1699 = vmatmul.mubr.f32.vlgmr.msra.gmra.mxu1 %v93_v13  ;;  %1706 = vmatpush1.msra.mxu0 %v187_v14  ;;  %v476_v13 = vld [vmem:[#allocation5 + $0xbe8] sm:$0xff]  ;;  %v283_v14 = vld [vmem:[#allocation5 + $0x5e0] sm:$0xff] }
 0x109   :  { %1777 = vmatpush1.msra.mxu1 %v379_v15  ;;  %1707 = vmatprep.subr.mxu0 %v182_v16  ;;  %v475_v15 = vld [vmem:[#allocation5 + $0xbe0] sm:$0xff]  ;;  %v278_v16 = vld [vmem:[#allocation5 + $0x5b8] sm:$0xff] }
 0x10a   :  { %1778 = vmatprep.subr.mxu1 %v374_v17  ;;  %1708 = vmatpush1.msra.mxu0 %v181_v18  ;;  %v470_v17 = vld [vmem:[#allocation5 + $0xbb8] sm:$0xff]  ;;  %v277_v18 = vld [vmem:[#allocation5 + $0x5b0] sm:$0xff] }
 0x10b   :  { %1779 = vmatpush1.msra.mxu1 %v373_v19  ;;  %1709 = vmatprep.subr.mxu0 %v176_v20  ;;  %v469_v19 = vld [vmem:[#allocation5 + $0xbb0] sm:$0xff]  ;;  %v272_v20 = vld [vmem:[#allocation5 + $0x588] sm:$0xff] }
 0x10c   :  { %1780 = vmatprep.subr.mxu1 %v368_v21  ;;  %1710 = vmatpush1.msra.mxu0 %v175_v22  ;;  %v464_v21 = vld [vmem:[#allocation5 + $0xb88] sm:$0xff]  ;;  %v271_v22 = vld [vmem:[#allocation5 + $0x580] sm:$0xff] }
 0x10d   :  { %1781 = vmatpush1.msra.mxu1 %v367_v23  ;;  %1711 = vmatprep.subr.mxu0 %v170_v24  ;;  %v463_v23 = vld [vmem:[#allocation5 + $0xb80] sm:$0xff]  ;;  %v266_v24 = vld [vmem:[#allocation5 + $0x558] sm:$0xff] }
 0x10e   :  { %1782 = vmatprep.subr.mxu1 %v362_v25  ;;  %1712 = vmatpush1.msra.mxu0 %v169_v26  ;;  %v458_v25 = vld [vmem:[#allocation5 + $0xb58] sm:$0xff]  ;;  %v265_v26 = vld [vmem:[#allocation5 + $0x550] sm:$0xff] }
 0x10f   :  { %1783 = vmatpush1.msra.mxu1 %v361_v27  ;;  %1713 = vmatprep.subr.mxu0 %v164_v28  ;;  %v457_v27 = vld [vmem:[#allocation5 + $0xb50] sm:$0xff]  ;;  %v260_v28 = vld [vmem:[#allocation5 + $0x528] sm:$0xff] }
 0x110   :  { %1784 = vmatprep.subr.mxu1 %v356_v29  ;;  %1714 = vmatpush1.msra.mxu0 %v163_v30  ;;  %v452_v29 = vld [vmem:[#allocation5 + $0xb28] sm:$0xff]  ;;  %v259_v30 = vld [vmem:[#allocation5 + $0x520] sm:$0xff] }
 0x111   :  { %1785 = vmatpush1.msra.mxu1 %v355_v31  ;;  %1715 = vmatprep.subr.mxu0 %v158_v32  ;;  %v451_v31 = vld [vmem:[#allocation5 + $0xb20] sm:$0xff]  ;;  %v254_v32 = vld [vmem:[#allocation5 + $0x4f8] sm:$0xff] }
 0x112   :  { %1786 = vmatprep.subr.mxu1 %v350_v33  ;;  %1716 = vmatpush1.msra.mxu0 %v157_v34  ;;  %v446_v33 = vld [vmem:[#allocation5 + $0xaf8] sm:$0xff]  ;;  %v253_v34 = vld [vmem:[#allocation5 + $0x4f0] sm:$0xff] }
 0x113   :  { %1787 = vmatpush1.msra.mxu1 %v349_v35  ;;  %1717 = vmatprep.subr.mxu0 %v152_v36  ;;  %v445_v35 = vld [vmem:[#allocation5 + $0xaf0] sm:$0xff]  ;;  %v248_v36 = vld [vmem:[#allocation5 + $0x4c8] sm:$0xff] }
 0x114   :  { %1788 = vmatprep.subr.mxu1 %v344_v37  ;;  %1718 = vmatpush1.msra.mxu0 %v151_v38  ;;  %v440_v37 = vld [vmem:[#allocation5 + $0xac8] sm:$0xff]  ;;  %v247_v38 = vld [vmem:[#allocation5 + $0x4c0] sm:$0xff] }
 0x115   :  { %1789 = vmatpush1.msra.mxu1 %v343_v39  ;;  %1719 = vmatprep.subr.mxu0 %v146_v40  ;;  %v439_v39 = vld [vmem:[#allocation5 + $0xac0] sm:$0xff]  ;;  %v242_v40 = vld [vmem:[#allocation5 + $0x498] sm:$0xff] }
 0x116   :  { %1790 = vmatprep.subr.mxu1 %v338_v41  ;;  %1720 = vmatpush1.msra.mxu0 %v145_v42  ;;  %v434_v41 = vld [vmem:[#allocation5 + $0xa98] sm:$0xff]  ;;  %v241_v42 = vld [vmem:[#allocation5 + $0x490] sm:$0xff] }
 0x117   :  { %1791 = vmatpush1.msra.mxu1 %v337_v43  ;;  %1721 = vmatprep.subr.mxu0 %v140_v44  ;;  %v433_v43 = vld [vmem:[#allocation5 + $0xa90] sm:$0xff]  ;;  %v236_v44 = vld [vmem:[#allocation5 + $0x468] sm:$0xff] }
 0x118   :  { %1792 = vmatprep.subr.mxu1 %v332_v45  ;;  %1722 = vmatpush1.msra.mxu0 %v139_v46  ;;  %v428_v45 = vld [vmem:[#allocation5 + $0xa68] sm:$0xff]  ;;  %v235_v46 = vld [vmem:[#allocation5 + $0x460] sm:$0xff] }
 0x119   :  { %1793 = vmatpush1.msra.mxu1 %v331_v47  ;;  %1723 = vmatprep.subr.mxu0 %v134_v48  ;;  %v427_v47 = vld [vmem:[#allocation5 + $0xa60] sm:$0xff]  ;;  %v230_v48 = vld [vmem:[#allocation5 + $0x438] sm:$0xff] }
 0x11a   :  { %1794 = vmatprep.subr.mxu1 %v326_v49  ;;  %1724 = vmatpush1.msra.mxu0 %v133_v50  ;;  %v422_v49 = vld [vmem:[#allocation5 + $0xa38] sm:$0xff]  ;;  %v229_v50 = vld [vmem:[#allocation5 + $0x430] sm:$0xff] }
 0x11b   :  { %1795 = vmatpush1.msra.mxu1 %v325_v51  ;;  %1725 = vmatprep.subr.mxu0 %v128_v52  ;;  %v421_v51 = vld [vmem:[#allocation5 + $0xa30] sm:$0xff]  ;;  %v224_v52 = vld [vmem:[#allocation5 + $0x408] sm:$0xff] }
 0x11c   :  { %1796 = vmatprep.subr.mxu1 %v320_v53  ;;  %1726 = vmatpush1.msra.mxu0 %v127_v54  ;;  %v416_v53 = vld [vmem:[#allocation5 + $0xa08] sm:$0xff]  ;;  %v223_v54 = vld [vmem:[#allocation5 + $0x400] sm:$0xff] }
 0x11d   :  { %1797 = vmatpush1.msra.mxu1 %v319_v55  ;;  %1727 = vmatprep.subr.mxu0 %v122_v56  ;;  %v415_v55 = vld [vmem:[#allocation5 + $0xa00] sm:$0xff]  ;;  %v218_v56 = vld [vmem:[#allocation5 + $0x3d8] sm:$0xff] }
 0x11e   :  { %1798 = vmatprep.subr.mxu1 %v314_v57  ;;  %1728 = vmatpush1.msra.mxu0 %v121_v58  ;;  %v410_v57 = vld [vmem:[#allocation5 + $0x9d8] sm:$0xff]  ;;  %v217_v58 = vld [vmem:[#allocation5 + $0x3d0] sm:$0xff] }
 0x11f   :  { %1799 = vmatpush1.msra.mxu1 %v313_v59  ;;  %1729 = vmatprep.subr.mxu0 %v116_v60  ;;  %v409_v59 = vld [vmem:[#allocation5 + $0x9d0] sm:$0xff]  ;;  %v212_v60 = vld [vmem:[#allocation5 + $0x3a8] sm:$0xff] }
 0x120   :  { %1800 = vmatprep.subr.mxu1 %v308_v61  ;;  %1730 = vmatpush1.msra.mxu0 %v115_v62  ;;  %v404_v61 = vld [vmem:[#allocation5 + $0x9a8] sm:$0xff]  ;;  %v211_v62 = vld [vmem:[#allocation5 + $0x3a0] sm:$0xff] }
 0x121   :  { %1801 = vmatpush1.msra.mxu1 %v307_v63  ;;  %1731 = vmatprep.subr.mxu0 %v110_v0  ;;  %v403_v63 = vld [vmem:[#allocation5 + $0x9a0] sm:$0xff]  ;;  %v206_v0 = vld [vmem:[#allocation5 + $0x378] sm:$0xff] }
 0x122   :  { %1802 = vmatprep.subr.mxu1 %v302_v1  ;;  %1732 = vmatpush1.msra.mxu0 %v109_v2  ;;  %v398_v1 = vld [vmem:[#allocation5 + $0x978] sm:$0xff]  ;;  %v205_v2 = vld [vmem:[#allocation5 + $0x370] sm:$0xff] }
 0x123   :  { %1803 = vmatpush1.msra.mxu1 %v301_v3  ;;  %1733 = vmatprep.subr.mxu0 %v104_v4  ;;  %v397_v3 = vld [vmem:[#allocation5 + $0x970] sm:$0xff]  ;;  %v200_v4 = vld [vmem:[#allocation5 + $0x348] sm:$0xff] }
 0x124   :  { %1804 = vmatprep.subr.mxu1 %v296_v5  ;;  %1734 = vmatpush1.msra.mxu0 %v103_v6  ;;  %v392_v5 = vld [vmem:[#allocation5 + $0x948] sm:$0xff]  ;;  %v199_v6 = vld [vmem:[#allocation5 + $0x340] sm:$0xff] }
 0x125   :  { %1805 = vmatpush1.msra.mxu1 %v295_v7  ;;  %1735 = vmatprep.subr.mxu0 %v98_v8  ;;  %v391_v7 = vld [vmem:[#allocation5 + $0x940] sm:$0xff]  ;;  %v194_v8 = vld [vmem:[#allocation5 + $0x318] sm:$0xff] }
 0x126   :  { %1806 = vmatprep.subr.mxu1 %v290_v9  ;;  %1736 = vmatpush1.msra.mxu0 %v97_v10  ;;  %v386_v9 = vld [vmem:[#allocation5 + $0x918] sm:$0xff]  ;;  %v193_v10 = vld [vmem:[#allocation5 + $0x310] sm:$0xff] }
 0x127   :  { %1807 = vmatpush1.msra.mxu1 %v289_v11  ;;  %1737 = vmatprep.subr.mxu0 %v284_v12  ;;  %v385_v11 = vld [vmem:[#allocation5 + $0x910] sm:$0xff]  ;;  %v572_v12 = vld [vmem:[#allocation5 + $0xee8] sm:$0xff] }
 0x128   :  { %1808 = vmatprep.subr.mxu1 %v476_v13  ;;  %1738 = vmatpush2.msra.mxu0 %v283_v14  ;;  %v3010_v13 = vld [vmem:[#allocation2 + $0x8] sm:$0xff] }
 0x129   :  { %1809 = vmatpush2.msra.mxu1 %v475_v15  ;;  %1739 = vmatprep.subr.mxu0 %v278_v16  ;;  %v764_v14 = vld [vmem:[#allocation5 + $0x14e8] sm:$0xff]  ;;  %v3011_v15 = vld [vmem:[#allocation2] sm:$0xff] }
 0x12a   :  { %1810 = vmatprep.subr.mxu1 %v470_v17  ;;  %1740 = vmatpush2.msra.mxu0 %v277_v18  ;;  %v571_v16 = vld [vmem:[#allocation5 + $0xee0] sm:$0xff]  ;;  %v3012_v18 = vld [vmem:[#allocation2 + $0x18] sm:$0xff] }
 0x12b   :  { %1811 = vmatpush2.msra.mxu1 %v469_v19  ;;  %1741 = vmatprep.subr.mxu0 %v272_v20  ;;  %v763_v17 = vld [vmem:[#allocation5 + $0x14e0] sm:$0xff]  ;;  %v566_v19 = vld [vmem:[#allocation5 + $0xeb8] sm:$0xff] }
 0x12c   :  { %1812 = vmatprep.subr.mxu1 %v464_v21  ;;  %1742 = vmatpush2.msra.mxu0 %v271_v22  ;;  %v758_v20 = vld [vmem:[#allocation5 + $0x14b8] sm:$0xff]  ;;  %v3013_v21 = vld [vmem:[#allocation2 + $0x10] sm:$0xff] }
 0x12d   :  { %1813 = vmatpush2.msra.mxu1 %v463_v23  ;;  %1743 = vmatprep.subr.mxu0 %v266_v24  ;;  %v565_v22 = vld [vmem:[#allocation5 + $0xeb0] sm:$0xff]  ;;  %v560_v24 = vld [vmem:[#allocation5 + $0xe88] sm:$0xff] }
 0x12e   :  { %1814 = vmatprep.subr.mxu1 %v458_v25  ;;  %1744 = vmatpush2.msra.mxu0 %v265_v26  ;;  %v757_v23 = vld [vmem:[#allocation5 + $0x14b0] sm:$0xff]  ;;  %v752_v25 = vld [vmem:[#allocation5 + $0x1488] sm:$0xff]  ;;  %v559_v26 = vld [vmem:[#allocation5 + $0xe80] sm:$0xff] }
 0x12f   :  { %1815 = vmatpush2.msra.mxu1 %v457_v27  ;;  %1745 = vmatprep.subr.mxu0 %v260_v28  ;;  %v751_v27 = vld [vmem:[#allocation5 + $0x1480] sm:$0xff]  ;;  %v554_v28 = vld [vmem:[#allocation5 + $0xe58] sm:$0xff] }
 0x130   :  { %1816 = vmatprep.subr.mxu1 %v452_v29  ;;  %1746 = vmatpush2.msra.mxu0 %v259_v30  ;;  %v746_v29 = vld [vmem:[#allocation5 + $0x1458] sm:$0xff]  ;;  %v553_v30 = vld [vmem:[#allocation5 + $0xe50] sm:$0xff] }
 0x131   :  { %1817 = vmatpush2.msra.mxu1 %v451_v31  ;;  %1747 = vmatprep.subr.mxu0 %v254_v32  ;;  %v745_v31 = vld [vmem:[#allocation5 + $0x1450] sm:$0xff]  ;;  %v548_v32 = vld [vmem:[#allocation5 + $0xe28] sm:$0xff] }
 0x132   :  { %1818 = vmatprep.subr.mxu1 %v446_v33  ;;  %1748 = vmatpush2.msra.mxu0 %v253_v34  ;;  %v740_v33 = vld [vmem:[#allocation5 + $0x1428] sm:$0xff]  ;;  %v547_v34 = vld [vmem:[#allocation5 + $0xe20] sm:$0xff] }
 0x133   :  { %1819 = vmatpush2.msra.mxu1 %v445_v35  ;;  %1749 = vmatprep.subr.mxu0 %v248_v36  ;;  %v739_v35 = vld [vmem:[#allocation5 + $0x1420] sm:$0xff]  ;;  %v542_v36 = vld [vmem:[#allocation5 + $0xdf8] sm:$0xff] }
 0x134   :  { %1820 = vmatprep.subr.mxu1 %v440_v37  ;;  %1750 = vmatpush2.msra.mxu0 %v247_v38  ;;  %v734_v37 = vld [vmem:[#allocation5 + $0x13f8] sm:$0xff]  ;;  %v541_v38 = vld [vmem:[#allocation5 + $0xdf0] sm:$0xff] }
 0x135   :  { %1821 = vmatpush2.msra.mxu1 %v439_v39  ;;  %1751 = vmatprep.subr.mxu0 %v242_v40  ;;  %v733_v39 = vld [vmem:[#allocation5 + $0x13f0] sm:$0xff]  ;;  %v536_v40 = vld [vmem:[#allocation5 + $0xdc8] sm:$0xff] }
 0x136   :  { %1822 = vmatprep.subr.mxu1 %v434_v41  ;;  %1752 = vmatpush2.msra.mxu0 %v241_v42  ;;  %v728_v41 = vld [vmem:[#allocation5 + $0x13c8] sm:$0xff]  ;;  %v535_v42 = vld [vmem:[#allocation5 + $0xdc0] sm:$0xff] }
 0x137   :  { %1823 = vmatpush2.msra.mxu1 %v433_v43  ;;  %1753 = vmatprep.subr.mxu0 %v236_v44  ;;  %v727_v43 = vld [vmem:[#allocation5 + $0x13c0] sm:$0xff]  ;;  %v530_v44 = vld [vmem:[#allocation5 + $0xd98] sm:$0xff] }
 0x138   :  { %1824 = vmatprep.subr.mxu1 %v428_v45  ;;  %1754 = vmatpush2.msra.mxu0 %v235_v46  ;;  %v722_v45 = vld [vmem:[#allocation5 + $0x1398] sm:$0xff]  ;;  %v529_v46 = vld [vmem:[#allocation5 + $0xd90] sm:$0xff] }
 0x139   :  { %1825 = vmatpush2.msra.mxu1 %v427_v47  ;;  %1755 = vmatprep.subr.mxu0 %v230_v48  ;;  %v721_v47 = vld [vmem:[#allocation5 + $0x1390] sm:$0xff]  ;;  %v524_v48 = vld [vmem:[#allocation5 + $0xd68] sm:$0xff] }
 0x13a   :  { %1826 = vmatprep.subr.mxu1 %v422_v49  ;;  %1756 = vmatpush2.msra.mxu0 %v229_v50  ;;  %v716_v49 = vld [vmem:[#allocation5 + $0x1368] sm:$0xff]  ;;  %v523_v50 = vld [vmem:[#allocation5 + $0xd60] sm:$0xff] }
 0x13b   :  { %1827 = vmatpush2.msra.mxu1 %v421_v51  ;;  %1757 = vmatprep.subr.mxu0 %v224_v52  ;;  %v715_v51 = vld [vmem:[#allocation5 + $0x1360] sm:$0xff]  ;;  %v518_v52 = vld [vmem:[#allocation5 + $0xd38] sm:$0xff] }
 0x13c   :  { %1828 = vmatprep.subr.mxu1 %v416_v53  ;;  %1758 = vmatpush2.msra.mxu0 %v223_v54  ;;  %v710_v53 = vld [vmem:[#allocation5 + $0x1338] sm:$0xff]  ;;  %v517_v54 = vld [vmem:[#allocation5 + $0xd30] sm:$0xff] }
 0x13d   :  { %1829 = vmatpush2.msra.mxu1 %v415_v55  ;;  %1759 = vmatprep.subr.mxu0 %v218_v56  ;;  %v709_v55 = vld [vmem:[#allocation5 + $0x1330] sm:$0xff]  ;;  %v512_v56 = vld [vmem:[#allocation5 + $0xd08] sm:$0xff] }
 0x13e   :  { %1830 = vmatprep.subr.mxu1 %v410_v57  ;;  %1760 = vmatpush2.msra.mxu0 %v217_v58  ;;  %v704_v57 = vld [vmem:[#allocation5 + $0x1308] sm:$0xff]  ;;  %v511_v58 = vld [vmem:[#allocation5 + $0xd00] sm:$0xff] }
 0x13f   :  { %1831 = vmatpush2.msra.mxu1 %v409_v59  ;;  %1761 = vmatprep.subr.mxu0 %v212_v60  ;;  %v703_v59 = vld [vmem:[#allocation5 + $0x1300] sm:$0xff]  ;;  %v506_v60 = vld [vmem:[#allocation5 + $0xcd8] sm:$0xff] }
 0x140   :  { %1832 = vmatprep.subr.mxu1 %v404_v61  ;;  %1762 = vmatpush2.msra.mxu0 %v211_v62  ;;  %v698_v61 = vld [vmem:[#allocation5 + $0x12d8] sm:$0xff]  ;;  %v505_v62 = vld [vmem:[#allocation5 + $0xcd0] sm:$0xff] }
 0x141   :  { %1833 = vmatpush2.msra.mxu1 %v403_v63  ;;  %1763 = vmatprep.subr.mxu0 %v206_v0  ;;  %v697_v63 = vld [vmem:[#allocation5 + $0x12d0] sm:$0xff]  ;;  %v500_v0 = vld [vmem:[#allocation5 + $0xca8] sm:$0xff] }
 0x142   :  { %1834 = vmatprep.subr.mxu1 %v398_v1  ;;  %1764 = vmatpush2.msra.mxu0 %v205_v2  ;;  %v692_v1 = vld [vmem:[#allocation5 + $0x12a8] sm:$0xff]  ;;  %v499_v2 = vld [vmem:[#allocation5 + $0xca0] sm:$0xff] }
 0x143   :  { %1835 = vmatpush2.msra.mxu1 %v397_v3  ;;  %1765 = vmatprep.subr.mxu0 %v200_v4  ;;  %v691_v3 = vld [vmem:[#allocation5 + $0x12a0] sm:$0xff]  ;;  %v494_v4 = vld [vmem:[#allocation5 + $0xc78] sm:$0xff] }
 0x144   :  { %1836 = vmatprep.subr.mxu1 %v392_v5  ;;  %1766 = vmatpush2.msra.mxu0 %v199_v6  ;;  %v686_v5 = vld [vmem:[#allocation5 + $0x1278] sm:$0xff]  ;;  %v493_v6 = vld [vmem:[#allocation5 + $0xc70] sm:$0xff] }
 0x145   :  { %1837 = vmatpush2.msra.mxu1 %v391_v7  ;;  %1767 = vmatprep.subr.mxu0 %v194_v8  ;;  %v685_v7 = vld [vmem:[#allocation5 + $0x1270] sm:$0xff]  ;;  %v488_v8 = vld [vmem:[#allocation5 + $0xc48] sm:$0xff] }
 0x146   :  { %1838 = vmatprep.subr.mxu1 %v386_v9  ;;  %1768 = vmatpush2.msra.mxu0 %v193_v10  ;;  %v680_v9 = vld [vmem:[#allocation5 + $0x1248] sm:$0xff]  ;;  %v487_v10 = vld [vmem:[#allocation5 + $0xc40] sm:$0xff] }
 0x147   :  { %1769 = vmatprep.mubr.f32.mxu0 %v3010_v13  ;;  %1839 = vmatpush2.msra.mxu1 %v385_v11  ;;  %v679_v11 = vld [vmem:[#allocation5 + $0x1240] sm:$0xff]  ;;  %v674_v13 = vld [vmem:[#allocation5 + $0x1218] sm:$0xff] }
 0x148   :  { %1770 = vmatmul.mubr.f32.vlgmr.msra.gmra.mxu0 %v3011_v15  ;;  %1840 = vmatprep.mubr.f32.mxu1 %v3012_v18  ;;  %v673_v15 = vld [vmem:[#allocation5 + $0x1210] sm:$0xff]  ;;  %v667_v18 = vld [vmem:[#allocation5 + $0x11e0] sm:$0xff] }
 0x149   :  { %1847 = vmatprep.subr.mxu0 %v572_v12  ;;  %1918 = vmatprep.subr.mxu1 %v764_v14  ;;  %v482_v12 = vld [vmem:[#allocation5 + $0xc18] sm:$0xff]  ;;  %v481_v14 = vld [vmem:[#allocation5 + $0xc10] sm:$0xff] }
 0x14a   :  { %1841 = vmatmul.mubr.f32.vlgmr.msra.gmra.mxu1 %v3013_v21  ;;  %1848 = vmatpush1.msra.mxu0 %v571_v16  ;;  %v668_v16 = vld [vmem:[#allocation5 + $0x11e8] sm:$0xff]  ;;  %v854_v21 = vld [vmem:[#allocation5 + $0x17b8] sm:$0xff] }
 0x14b   :  { %1919 = vmatpush1.msra.mxu1 %v763_v17  ;;  %1849 = vmatprep.subr.mxu0 %v566_v19  ;;  %v860_v17 = vld [vmem:[#allocation5 + $0x17e8] sm:$0xff]  ;;  %v859_v19 = vld [vmem:[#allocation5 + $0x17e0] sm:$0xff] }
 0x14c   :  { %1920 = vmatprep.subr.mxu1 %v758_v20  ;;  %1850 = vmatpush1.msra.mxu0 %v565_v22  ;;  %v662_v20 = vld [vmem:[#allocation5 + $0x11b8] sm:$0xff]  ;;  %v661_v22 = vld [vmem:[#allocation5 + $0x11b0] sm:$0xff] }
 0x14d   :  { %1921 = vmatpush1.msra.mxu1 %v757_v23  ;;  %1851 = vmatprep.subr.mxu0 %v560_v24  ;;  %v853_v23 = vld [vmem:[#allocation5 + $0x17b0] sm:$0xff]  ;;  %v656_v24 = vld [vmem:[#allocation5 + $0x1188] sm:$0xff] }
 0x14e   :  { %1922 = vmatprep.subr.mxu1 %v752_v25  ;;  %1852 = vmatpush1.msra.mxu0 %v559_v26  ;;  %v848_v25 = vld [vmem:[#allocation5 + $0x1788] sm:$0xff]  ;;  %v655_v26 = vld [vmem:[#allocation5 + $0x1180] sm:$0xff] }
 0x14f   :  { %1923 = vmatpush1.msra.mxu1 %v751_v27  ;;  %1853 = vmatprep.subr.mxu0 %v554_v28  ;;  %v847_v27 = vld [vmem:[#allocation5 + $0x1780] sm:$0xff]  ;;  %v650_v28 = vld [vmem:[#allocation5 + $0x1158] sm:$0xff] }
 0x150   :  { %1924 = vmatprep.subr.mxu1 %v746_v29  ;;  %1854 = vmatpush1.msra.mxu0 %v553_v30  ;;  %v842_v29 = vld [vmem:[#allocation5 + $0x1758] sm:$0xff]  ;;  %v649_v30 = vld [vmem:[#allocation5 + $0x1150] sm:$0xff] }
 0x151   :  { %1925 = vmatpush1.msra.mxu1 %v745_v31  ;;  %1855 = vmatprep.subr.mxu0 %v548_v32  ;;  %v841_v31 = vld [vmem:[#allocation5 + $0x1750] sm:$0xff]  ;;  %v644_v32 = vld [vmem:[#allocation5 + $0x1128] sm:$0xff] }
 0x152   :  { %1926 = vmatprep.subr.mxu1 %v740_v33  ;;  %1856 = vmatpush1.msra.mxu0 %v547_v34  ;;  %v836_v33 = vld [vmem:[#allocation5 + $0x1728] sm:$0xff]  ;;  %v643_v34 = vld [vmem:[#allocation5 + $0x1120] sm:$0xff] }
 0x153   :  { %1927 = vmatpush1.msra.mxu1 %v739_v35  ;;  %1857 = vmatprep.subr.mxu0 %v542_v36  ;;  %v835_v35 = vld [vmem:[#allocation5 + $0x1720] sm:$0xff]  ;;  %v638_v36 = vld [vmem:[#allocation5 + $0x10f8] sm:$0xff] }
 0x154   :  { %1928 = vmatprep.subr.mxu1 %v734_v37  ;;  %1858 = vmatpush1.msra.mxu0 %v541_v38  ;;  %v830_v37 = vld [vmem:[#allocation5 + $0x16f8] sm:$0xff]  ;;  %v637_v38 = vld [vmem:[#allocation5 + $0x10f0] sm:$0xff] }
 0x155   :  { %1929 = vmatpush1.msra.mxu1 %v733_v39  ;;  %1859 = vmatprep.subr.mxu0 %v536_v40  ;;  %v829_v39 = vld [vmem:[#allocation5 + $0x16f0] sm:$0xff]  ;;  %v632_v40 = vld [vmem:[#allocation5 + $0x10c8] sm:$0xff] }
 0x156   :  { %1930 = vmatprep.subr.mxu1 %v728_v41  ;;  %1860 = vmatpush1.msra.mxu0 %v535_v42  ;;  %v824_v41 = vld [vmem:[#allocation5 + $0x16c8] sm:$0xff]  ;;  %v631_v42 = vld [vmem:[#allocation5 + $0x10c0] sm:$0xff] }
 0x157   :  { %1931 = vmatpush1.msra.mxu1 %v727_v43  ;;  %1861 = vmatprep.subr.mxu0 %v530_v44  ;;  %v823_v43 = vld [vmem:[#allocation5 + $0x16c0] sm:$0xff]  ;;  %v626_v44 = vld [vmem:[#allocation5 + $0x1098] sm:$0xff] }
 0x158   :  { %1932 = vmatprep.subr.mxu1 %v722_v45  ;;  %1862 = vmatpush1.msra.mxu0 %v529_v46  ;;  %v818_v45 = vld [vmem:[#allocation5 + $0x1698] sm:$0xff]  ;;  %v625_v46 = vld [vmem:[#allocation5 + $0x1090] sm:$0xff] }
 0x159   :  { %1933 = vmatpush1.msra.mxu1 %v721_v47  ;;  %1863 = vmatprep.subr.mxu0 %v524_v48  ;;  %v817_v47 = vld [vmem:[#allocation5 + $0x1690] sm:$0xff]  ;;  %v620_v48 = vld [vmem:[#allocation5 + $0x1068] sm:$0xff] }
 0x15a   :  { %1934 = vmatprep.subr.mxu1 %v716_v49  ;;  %1864 = vmatpush1.msra.mxu0 %v523_v50  ;;  %v812_v49 = vld [vmem:[#allocation5 + $0x1668] sm:$0xff]  ;;  %v619_v50 = vld [vmem:[#allocation5 + $0x1060] sm:$0xff] }
 0x15b   :  { %1935 = vmatpush1.msra.mxu1 %v715_v51  ;;  %1865 = vmatprep.subr.mxu0 %v518_v52  ;;  %v811_v51 = vld [vmem:[#allocation5 + $0x1660] sm:$0xff]  ;;  %v614_v52 = vld [vmem:[#allocation5 + $0x1038] sm:$0xff] }
 0x15c   :  { %1936 = vmatprep.subr.mxu1 %v710_v53  ;;  %1866 = vmatpush1.msra.mxu0 %v517_v54  ;;  %v806_v53 = vld [vmem:[#allocation5 + $0x1638] sm:$0xff]  ;;  %v613_v54 = vld [vmem:[#allocation5 + $0x1030] sm:$0xff] }
 0x15d   :  { %1937 = vmatpush1.msra.mxu1 %v709_v55  ;;  %1867 = vmatprep.subr.mxu0 %v512_v56  ;;  %v805_v55 = vld [vmem:[#allocation5 + $0x1630] sm:$0xff]  ;;  %v608_v56 = vld [vmem:[#allocation5 + $0x1008] sm:$0xff] }
 0x15e   :  { %1938 = vmatprep.subr.mxu1 %v704_v57  ;;  %1868 = vmatpush1.msra.mxu0 %v511_v58  ;;  %v800_v57 = vld [vmem:[#allocation5 + $0x1608] sm:$0xff]  ;;  %v607_v58 = vld [vmem:[#allocation5 + $0x1000] sm:$0xff] }
 0x15f   :  { %1939 = vmatpush1.msra.mxu1 %v703_v59  ;;  %1869 = vmatprep.subr.mxu0 %v506_v60  ;;  %v799_v59 = vld [vmem:[#allocation5 + $0x1600] sm:$0xff]  ;;  %v602_v60 = vld [vmem:[#allocation5 + $0xfd8] sm:$0xff] }
 0x160   :  { %1940 = vmatprep.subr.mxu1 %v698_v61  ;;  %1870 = vmatpush1.msra.mxu0 %v505_v62  ;;  %v794_v61 = vld [vmem:[#allocation5 + $0x15d8] sm:$0xff]  ;;  %v601_v62 = vld [vmem:[#allocation5 + $0xfd0] sm:$0xff] }
 0x161   :  { %1941 = vmatpush1.msra.mxu1 %v697_v63  ;;  %1871 = vmatprep.subr.mxu0 %v500_v0  ;;  %v793_v63 = vld [vmem:[#allocation5 + $0x15d0] sm:$0xff]  ;;  %v596_v0 = vld [vmem:[#allocation5 + $0xfa8] sm:$0xff] }
 0x162   :  { %1942 = vmatprep.subr.mxu1 %v692_v1  ;;  %1872 = vmatpush1.msra.mxu0 %v499_v2  ;;  %v788_v1 = vld [vmem:[#allocation5 + $0x15a8] sm:$0xff]  ;;  %v595_v2 = vld [vmem:[#allocation5 + $0xfa0] sm:$0xff] }
 0x163   :  { %1943 = vmatpush1.msra.mxu1 %v691_v3  ;;  %1873 = vmatprep.subr.mxu0 %v494_v4  ;;  %v787_v3 = vld [vmem:[#allocation5 + $0x15a0] sm:$0xff]  ;;  %v590_v4 = vld [vmem:[#allocation5 + $0xf78] sm:$0xff] }
 0x164   :  { %1944 = vmatprep.subr.mxu1 %v686_v5  ;;  %1874 = vmatpush1.msra.mxu0 %v493_v6  ;;  %v782_v5 = vld [vmem:[#allocation5 + $0x1578] sm:$0xff]  ;;  %v589_v6 = vld [vmem:[#allocation5 + $0xf70] sm:$0xff] }
 0x165   :  { %1945 = vmatpush1.msra.mxu1 %v685_v7  ;;  %1875 = vmatprep.subr.mxu0 %v488_v8  ;;  %v781_v7 = vld [vmem:[#allocation5 + $0x1570] sm:$0xff]  ;;  %v584_v8 = vld [vmem:[#allocation5 + $0xf48] sm:$0xff] }
 0x166   :  { %1946 = vmatprep.subr.mxu1 %v680_v9  ;;  %1876 = vmatpush1.msra.mxu0 %v487_v10  ;;  %v776_v9 = vld [vmem:[#allocation5 + $0x1548] sm:$0xff]  ;;  %v583_v10 = vld [vmem:[#allocation5 + $0xf40] sm:$0xff] }
 0x167   :  { %1947 = vmatpush1.msra.mxu1 %v679_v11  ;;  %1877 = vmatprep.subr.mxu0 %v482_v12  ;;  %v775_v11 = vld [vmem:[#allocation5 + $0x1540] sm:$0xff]  ;;  %v578_v12 = vld [vmem:[#allocation5 + $0xf18] sm:$0xff] }
 0x168   :  { %1948 = vmatprep.subr.mxu1 %v674_v13  ;;  %1878 = vmatpush1.msra.mxu0 %v481_v14  ;;  %v770_v13 = vld [vmem:[#allocation5 + $0x1518] sm:$0xff]  ;;  %v577_v14 = vld [vmem:[#allocation5 + $0xf10] sm:$0xff] }
 0x169   :  { %1949 = vmatpush1.msra.mxu1 %v673_v15  ;;  %1879 = vmatprep.subr.mxu0 %v668_v16  ;;  %v769_v15 = vld [vmem:[#allocation5 + $0x1510] sm:$0xff]  ;;  %v956_v16 = vld [vmem:[#allocation5 + $0x1ae8] sm:$0xff] }
 0x16a   :  { %1950 = vmatprep.subr.mxu1 %v860_v17  ;;  %1880 = vmatpush2.msra.mxu0 %v667_v18  ;;  %v3014_v17 = vld [vmem:[#allocation2 + $0x28] sm:$0xff] }
 0x16b   :  { %1951 = vmatpush2.msra.mxu1 %v859_v19  ;;  %1881 = vmatprep.subr.mxu0 %v662_v20  ;;  %v1148_v18 = vld [vmem:[#allocation5 + $0x20e8] sm:$0xff]  ;;  %v3015_v19 = vld [vmem:[#allocation2 + $0x20] sm:$0xff] }
 0x16c   :  { %1952 = vmatprep.subr.mxu1 %v854_v21  ;;  %1882 = vmatpush2.msra.mxu0 %v661_v22  ;;  %v955_v20 = vld [vmem:[#allocation5 + $0x1ae0] sm:$0xff]  ;;  %v3016_v22 = vld [vmem:[#allocation2 + $0x38] sm:$0xff] }
 0x16d   :  { %1953 = vmatpush2.msra.mxu1 %v853_v23  ;;  %1883 = vmatprep.subr.mxu0 %v656_v24  ;;  %v1147_v21 = vld [vmem:[#allocation5 + $0x20e0] sm:$0xff]  ;;  %v950_v23 = vld [vmem:[#allocation5 + $0x1ab8] sm:$0xff] }
 0x16e   :  { %1954 = vmatprep.subr.mxu1 %v848_v25  ;;  %1884 = vmatpush2.msra.mxu0 %v655_v26  ;;  %v1142_v24 = vld [vmem:[#allocation5 + $0x20b8] sm:$0xff]  ;;  %v3017_v25 = vld [vmem:[#allocation2 + $0x30] sm:$0xff] }
 0x16f   :  { %1955 = vmatpush2.msra.mxu1 %v847_v27  ;;  %1885 = vmatprep.subr.mxu0 %v650_v28  ;;  %v949_v26 = vld [vmem:[#allocation5 + $0x1ab0] sm:$0xff]  ;;  %v944_v28 = vld [vmem:[#allocation5 + $0x1a88] sm:$0xff] }
 0x170   :  { %1956 = vmatprep.subr.mxu1 %v842_v29  ;;  %1886 = vmatpush2.msra.mxu0 %v649_v30  ;;  %v1141_v27 = vld [vmem:[#allocation5 + $0x20b0] sm:$0xff]  ;;  %v1136_v29 = vld [vmem:[#allocation5 + $0x2088] sm:$0xff]  ;;  %v943_v30 = vld [vmem:[#allocation5 + $0x1a80] sm:$0xff] }
 0x171   :  { %1957 = vmatpush2.msra.mxu1 %v841_v31  ;;  %1887 = vmatprep.subr.mxu0 %v644_v32  ;;  %v1135_v31 = vld [vmem:[#allocation5 + $0x2080] sm:$0xff]  ;;  %v938_v32 = vld [vmem:[#allocation5 + $0x1a58] sm:$0xff] }
 0x172   :  { %1958 = vmatprep.subr.mxu1 %v836_v33  ;;  %1888 = vmatpush2.msra.mxu0 %v643_v34  ;;  %v1130_v33 = vld [vmem:[#allocation5 + $0x2058] sm:$0xff]  ;;  %v937_v34 = vld [vmem:[#allocation5 + $0x1a50] sm:$0xff] }
 0x173   :  { %1959 = vmatpush2.msra.mxu1 %v835_v35  ;;  %1889 = vmatprep.subr.mxu0 %v638_v36  ;;  %v1129_v35 = vld [vmem:[#allocation5 + $0x2050] sm:$0xff]  ;;  %v932_v36 = vld [vmem:[#allocation5 + $0x1a28] sm:$0xff] }
 0x174   :  { %1960 = vmatprep.subr.mxu1 %v830_v37  ;;  %1890 = vmatpush2.msra.mxu0 %v637_v38  ;;  %v1124_v37 = vld [vmem:[#allocation5 + $0x2028] sm:$0xff]  ;;  %v931_v38 = vld [vmem:[#allocation5 + $0x1a20] sm:$0xff] }
 0x175   :  { %1961 = vmatpush2.msra.mxu1 %v829_v39  ;;  %1891 = vmatprep.subr.mxu0 %v632_v40  ;;  %v1123_v39 = vld [vmem:[#allocation5 + $0x2020] sm:$0xff]  ;;  %v926_v40 = vld [vmem:[#allocation5 + $0x19f8] sm:$0xff] }
 0x176   :  { %1962 = vmatprep.subr.mxu1 %v824_v41  ;;  %1892 = vmatpush2.msra.mxu0 %v631_v42  ;;  %v1118_v41 = vld [vmem:[#allocation5 + $0x1ff8] sm:$0xff]  ;;  %v925_v42 = vld [vmem:[#allocation5 + $0x19f0] sm:$0xff] }
 0x177   :  { %1963 = vmatpush2.msra.mxu1 %v823_v43  ;;  %1893 = vmatprep.subr.mxu0 %v626_v44  ;;  %v1117_v43 = vld [vmem:[#allocation5 + $0x1ff0] sm:$0xff]  ;;  %v920_v44 = vld [vmem:[#allocation5 + $0x19c8] sm:$0xff] }
 0x178   :  { %1964 = vmatprep.subr.mxu1 %v818_v45  ;;  %1894 = vmatpush2.msra.mxu0 %v625_v46  ;;  %v1112_v45 = vld [vmem:[#allocation5 + $0x1fc8] sm:$0xff]  ;;  %v919_v46 = vld [vmem:[#allocation5 + $0x19c0] sm:$0xff] }
 0x179   :  { %1965 = vmatpush2.msra.mxu1 %v817_v47  ;;  %1895 = vmatprep.subr.mxu0 %v620_v48  ;;  %v1111_v47 = vld [vmem:[#allocation5 + $0x1fc0] sm:$0xff]  ;;  %v914_v48 = vld [vmem:[#allocation5 + $0x1998] sm:$0xff] }
 0x17a   :  { %1966 = vmatprep.subr.mxu1 %v812_v49  ;;  %1896 = vmatpush2.msra.mxu0 %v619_v50  ;;  %v1106_v49 = vld [vmem:[#allocation5 + $0x1f98] sm:$0xff]  ;;  %v913_v50 = vld [vmem:[#allocation5 + $0x1990] sm:$0xff] }
 0x17b   :  { %1967 = vmatpush2.msra.mxu1 %v811_v51  ;;  %1897 = vmatprep.subr.mxu0 %v614_v52  ;;  %v1105_v51 = vld [vmem:[#allocation5 + $0x1f90] sm:$0xff]  ;;  %v908_v52 = vld [vmem:[#allocation5 + $0x1968] sm:$0xff] }
 0x17c   :  { %1968 = vmatprep.subr.mxu1 %v806_v53  ;;  %1898 = vmatpush2.msra.mxu0 %v613_v54  ;;  %v1100_v53 = vld [vmem:[#allocation5 + $0x1f68] sm:$0xff]  ;;  %v907_v54 = vld [vmem:[#allocation5 + $0x1960] sm:$0xff] }
 0x17d   :  { %1969 = vmatpush2.msra.mxu1 %v805_v55  ;;  %1899 = vmatprep.subr.mxu0 %v608_v56  ;;  %v1099_v55 = vld [vmem:[#allocation5 + $0x1f60] sm:$0xff]  ;;  %v902_v56 = vld [vmem:[#allocation5 + $0x1938] sm:$0xff] }
 0x17e   :  { %1970 = vmatprep.subr.mxu1 %v800_v57  ;;  %1900 = vmatpush2.msra.mxu0 %v607_v58  ;;  %v1094_v57 = vld [vmem:[#allocation5 + $0x1f38] sm:$0xff]  ;;  %v901_v58 = vld [vmem:[#allocation5 + $0x1930] sm:$0xff] }
 0x17f   :  { %1971 = vmatpush2.msra.mxu1 %v799_v59  ;;  %1901 = vmatprep.subr.mxu0 %v602_v60  ;;  %v1093_v59 = vld [vmem:[#allocation5 + $0x1f30] sm:$0xff]  ;;  %v896_v60 = vld [vmem:[#allocation5 + $0x1908] sm:$0xff] }
 0x180   :  { %1972 = vmatprep.subr.mxu1 %v794_v61  ;;  %1902 = vmatpush2.msra.mxu0 %v601_v62  ;;  %v1088_v61 = vld [vmem:[#allocation5 + $0x1f08] sm:$0xff]  ;;  %v895_v62 = vld [vmem:[#allocation5 + $0x1900] sm:$0xff] }
 0x181   :  { %1973 = vmatpush2.msra.mxu1 %v793_v63  ;;  %1903 = vmatprep.subr.mxu0 %v596_v0  ;;  %v1087_v63 = vld [vmem:[#allocation5 + $0x1f00] sm:$0xff]  ;;  %v890_v0 = vld [vmem:[#allocation5 + $0x18d8] sm:$0xff] }
 0x182   :  { %1974 = vmatprep.subr.mxu1 %v788_v1  ;;  %1904 = vmatpush2.msra.mxu0 %v595_v2  ;;  %v1082_v1 = vld [vmem:[#allocation5 + $0x1ed8] sm:$0xff]  ;;  %v889_v2 = vld [vmem:[#allocation5 + $0x18d0] sm:$0xff] }
 0x183   :  { %1975 = vmatpush2.msra.mxu1 %v787_v3  ;;  %1905 = vmatprep.subr.mxu0 %v590_v4  ;;  %v1081_v3 = vld [vmem:[#allocation5 + $0x1ed0] sm:$0xff]  ;;  %v884_v4 = vld [vmem:[#allocation5 + $0x18a8] sm:$0xff] }
 0x184   :  { %1976 = vmatprep.subr.mxu1 %v782_v5  ;;  %1906 = vmatpush2.msra.mxu0 %v589_v6  ;;  %v1076_v5 = vld [vmem:[#allocation5 + $0x1ea8] sm:$0xff]  ;;  %v883_v6 = vld [vmem:[#allocation5 + $0x18a0] sm:$0xff] }
 0x185   :  { %1977 = vmatpush2.msra.mxu1 %v781_v7  ;;  %1907 = vmatprep.subr.mxu0 %v584_v8  ;;  %v1075_v7 = vld [vmem:[#allocation5 + $0x1ea0] sm:$0xff]  ;;  %v878_v8 = vld [vmem:[#allocation5 + $0x1878] sm:$0xff] }
 0x186   :  { %1978 = vmatprep.subr.mxu1 %v776_v9  ;;  %1908 = vmatpush2.msra.mxu0 %v583_v10  ;;  %v1070_v9 = vld [vmem:[#allocation5 + $0x1e78] sm:$0xff]  ;;  %v877_v10 = vld [vmem:[#allocation5 + $0x1870] sm:$0xff] }
 0x187   :  { %1979 = vmatpush2.msra.mxu1 %v775_v11  ;;  %1909 = vmatprep.subr.mxu0 %v578_v12  ;;  %v1069_v11 = vld [vmem:[#allocation5 + $0x1e70] sm:$0xff]  ;;  %v872_v12 = vld [vmem:[#allocation5 + $0x1848] sm:$0xff] }
 0x188   :  { %1980 = vmatprep.subr.mxu1 %v770_v13  ;;  %1910 = vmatpush2.msra.mxu0 %v577_v14  ;;  %v1064_v13 = vld [vmem:[#allocation5 + $0x1e48] sm:$0xff]  ;;  %v871_v14 = vld [vmem:[#allocation5 + $0x1840] sm:$0xff] }
 0x189   :  { %1911 = vmatprep.mubr.f32.mxu0 %v3014_v17  ;;  %1981 = vmatpush2.msra.mxu1 %v769_v15  ;;  %v1063_v15 = vld [vmem:[#allocation5 + $0x1e40] sm:$0xff]  ;;  %v1058_v17 = vld [vmem:[#allocation5 + $0x1e18] sm:$0xff] }
 0x18a   :  { %1912 = vmatmul.mubr.f32.vlgmr.msra.gmra.mxu0 %v3015_v19  ;;  %1982 = vmatprep.mubr.f32.mxu1 %v3016_v22  ;;  %v1057_v19 = vld [vmem:[#allocation5 + $0x1e10] sm:$0xff]  ;;  %v1051_v22 = vld [vmem:[#allocation5 + $0x1de0] sm:$0xff] }
 0x18b   :  { %1989 = vmatprep.subr.mxu0 %v956_v16  ;;  %2060 = vmatprep.subr.mxu1 %v1148_v18  ;;  %v866_v16 = vld [vmem:[#allocation5 + $0x1818] sm:$0xff]  ;;  %v865_v18 = vld [vmem:[#allocation5 + $0x1810] sm:$0xff] }
 0x18c   :  { %1983 = vmatmul.mubr.f32.vlgmr.msra.gmra.mxu1 %v3017_v25  ;;  %1990 = vmatpush1.msra.mxu0 %v955_v20  ;;  %v1052_v20 = vld [vmem:[#allocation5 + $0x1de8] sm:$0xff]  ;;  %v1238_v25 = vld [vmem:[#allocation5 + $0x23b8] sm:$0xff] }
 0x18d   :  { %2061 = vmatpush1.msra.mxu1 %v1147_v21  ;;  %1991 = vmatprep.subr.mxu0 %v950_v23  ;;  %v1244_v21 = vld [vmem:[#allocation5 + $0x23e8] sm:$0xff]  ;;  %v1243_v23 = vld [vmem:[#allocation5 + $0x23e0] sm:$0xff] }
 0x18e   :  { %2062 = vmatprep.subr.mxu1 %v1142_v24  ;;  %1992 = vmatpush1.msra.mxu0 %v949_v26  ;;  %v1046_v24 = vld [vmem:[#allocation5 + $0x1db8] sm:$0xff]  ;;  %v1045_v26 = vld [vmem:[#allocation5 + $0x1db0] sm:$0xff] }
 0x18f   :  { %2063 = vmatpush1.msra.mxu1 %v1141_v27  ;;  %1993 = vmatprep.subr.mxu0 %v944_v28  ;;  %v1237_v27 = vld [vmem:[#allocation5 + $0x23b0] sm:$0xff]  ;;  %v1040_v28 = vld [vmem:[#allocation5 + $0x1d88] sm:$0xff] }
 0x190   :  { %2064 = vmatprep.subr.mxu1 %v1136_v29  ;;  %1994 = vmatpush1.msra.mxu0 %v943_v30  ;;  %v1232_v29 = vld [vmem:[#allocation5 + $0x2388] sm:$0xff]  ;;  %v1039_v30 = vld [vmem:[#allocation5 + $0x1d80] sm:$0xff] }
 0x191   :  { %2065 = vmatpush1.msra.mxu1 %v1135_v31  ;;  %1995 = vmatprep.subr.mxu0 %v938_v32  ;;  %v1231_v31 = vld [vmem:[#allocation5 + $0x2380] sm:$0xff]  ;;  %v1034_v32 = vld [vmem:[#allocation5 + $0x1d58] sm:$0xff] }
 0x192   :  { %2066 = vmatprep.subr.mxu1 %v1130_v33  ;;  %1996 = vmatpush1.msra.mxu0 %v937_v34  ;;  %v1226_v33 = vld [vmem:[#allocation5 + $0x2358] sm:$0xff]  ;;  %v1033_v34 = vld [vmem:[#allocation5 + $0x1d50] sm:$0xff] }
 0x193   :  { %2067 = vmatpush1.msra.mxu1 %v1129_v35  ;;  %1997 = vmatprep.subr.mxu0 %v932_v36  ;;  %v1225_v35 = vld [vmem:[#allocation5 + $0x2350] sm:$0xff]  ;;  %v1028_v36 = vld [vmem:[#allocation5 + $0x1d28] sm:$0xff] }
 0x194   :  { %2068 = vmatprep.subr.mxu1 %v1124_v37  ;;  %1998 = vmatpush1.msra.mxu0 %v931_v38  ;;  %v1220_v37 = vld [vmem:[#allocation5 + $0x2328] sm:$0xff]  ;;  %v1027_v38 = vld [vmem:[#allocation5 + $0x1d20] sm:$0xff] }
 0x195   :  { %2069 = vmatpush1.msra.mxu1 %v1123_v39  ;;  %1999 = vmatprep.subr.mxu0 %v926_v40  ;;  %v1219_v39 = vld [vmem:[#allocation5 + $0x2320] sm:$0xff]  ;;  %v1022_v40 = vld [vmem:[#allocation5 + $0x1cf8] sm:$0xff] }
 0x196   :  { %2070 = vmatprep.subr.mxu1 %v1118_v41  ;;  %2000 = vmatpush1.msra.mxu0 %v925_v42  ;;  %v1214_v41 = vld [vmem:[#allocation5 + $0x22f8] sm:$0xff]  ;;  %v1021_v42 = vld [vmem:[#allocation5 + $0x1cf0] sm:$0xff] }
 0x197   :  { %2071 = vmatpush1.msra.mxu1 %v1117_v43  ;;  %2001 = vmatprep.subr.mxu0 %v920_v44  ;;  %v1213_v43 = vld [vmem:[#allocation5 + $0x22f0] sm:$0xff]  ;;  %v1016_v44 = vld [vmem:[#allocation5 + $0x1cc8] sm:$0xff] }
 0x198   :  { %2072 = vmatprep.subr.mxu1 %v1112_v45  ;;  %2002 = vmatpush1.msra.mxu0 %v919_v46  ;;  %v1208_v45 = vld [vmem:[#allocation5 + $0x22c8] sm:$0xff]  ;;  %v1015_v46 = vld [vmem:[#allocation5 + $0x1cc0] sm:$0xff] }
 0x199   :  { %2073 = vmatpush1.msra.mxu1 %v1111_v47  ;;  %2003 = vmatprep.subr.mxu0 %v914_v48  ;;  %v1207_v47 = vld [vmem:[#allocation5 + $0x22c0] sm:$0xff]  ;;  %v1010_v48 = vld [vmem:[#allocation5 + $0x1c98] sm:$0xff] }
 0x19a   :  { %2074 = vmatprep.subr.mxu1 %v1106_v49  ;;  %2004 = vmatpush1.msra.mxu0 %v913_v50  ;;  %v1202_v49 = vld [vmem:[#allocation5 + $0x2298] sm:$0xff]  ;;  %v1009_v50 = vld [vmem:[#allocation5 + $0x1c90] sm:$0xff] }
 0x19b   :  { %2075 = vmatpush1.msra.mxu1 %v1105_v51  ;;  %2005 = vmatprep.subr.mxu0 %v908_v52  ;;  %v1201_v51 = vld [vmem:[#allocation5 + $0x2290] sm:$0xff]  ;;  %v1004_v52 = vld [vmem:[#allocation5 + $0x1c68] sm:$0xff] }
 0x19c   :  { %2076 = vmatprep.subr.mxu1 %v1100_v53  ;;  %2006 = vmatpush1.msra.mxu0 %v907_v54  ;;  %v1196_v53 = vld [vmem:[#allocation5 + $0x2268] sm:$0xff]  ;;  %v1003_v54 = vld [vmem:[#allocation5 + $0x1c60] sm:$0xff] }
 0x19d   :  { %2077 = vmatpush1.msra.mxu1 %v1099_v55  ;;  %2007 = vmatprep.subr.mxu0 %v902_v56  ;;  %v1195_v55 = vld [vmem:[#allocation5 + $0x2260] sm:$0xff]  ;;  %v998_v56 = vld [vmem:[#allocation5 + $0x1c38] sm:$0xff] }
 0x19e   :  { %2078 = vmatprep.subr.mxu1 %v1094_v57  ;;  %2008 = vmatpush1.msra.mxu0 %v901_v58  ;;  %v1190_v57 = vld [vmem:[#allocation5 + $0x2238] sm:$0xff]  ;;  %v997_v58 = vld [vmem:[#allocation5 + $0x1c30] sm:$0xff] }
 0x19f   :  { %2079 = vmatpush1.msra.mxu1 %v1093_v59  ;;  %2009 = vmatprep.subr.mxu0 %v896_v60  ;;  %v1189_v59 = vld [vmem:[#allocation5 + $0x2230] sm:$0xff]  ;;  %v992_v60 = vld [vmem:[#allocation5 + $0x1c08] sm:$0xff] }
 0x1a0   :  { %2080 = vmatprep.subr.mxu1 %v1088_v61  ;;  %2010 = vmatpush1.msra.mxu0 %v895_v62  ;;  %v1184_v61 = vld [vmem:[#allocation5 + $0x2208] sm:$0xff]  ;;  %v991_v62 = vld [vmem:[#allocation5 + $0x1c00] sm:$0xff] }
 0x1a1   :  { %2081 = vmatpush1.msra.mxu1 %v1087_v63  ;;  %2011 = vmatprep.subr.mxu0 %v890_v0  ;;  %v1183_v63 = vld [vmem:[#allocation5 + $0x2200] sm:$0xff]  ;;  %v986_v0 = vld [vmem:[#allocation5 + $0x1bd8] sm:$0xff] }
 0x1a2   :  { %2082 = vmatprep.subr.mxu1 %v1082_v1  ;;  %2012 = vmatpush1.msra.mxu0 %v889_v2  ;;  %v1178_v1 = vld [vmem:[#allocation5 + $0x21d8] sm:$0xff]  ;;  %v985_v2 = vld [vmem:[#allocation5 + $0x1bd0] sm:$0xff] }
 0x1a3   :  { %2083 = vmatpush1.msra.mxu1 %v1081_v3  ;;  %2013 = vmatprep.subr.mxu0 %v884_v4  ;;  %v1177_v3 = vld [vmem:[#allocation5 + $0x21d0] sm:$0xff]  ;;  %v980_v4 = vld [vmem:[#allocation5 + $0x1ba8] sm:$0xff] }
 0x1a4   :  { %2084 = vmatprep.subr.mxu1 %v1076_v5  ;;  %2014 = vmatpush1.msra.mxu0 %v883_v6  ;;  %v1172_v5 = vld [vmem:[#allocation5 + $0x21a8] sm:$0xff]  ;;  %v979_v6 = vld [vmem:[#allocation5 + $0x1ba0] sm:$0xff] }
 0x1a5   :  { %2085 = vmatpush1.msra.mxu1 %v1075_v7  ;;  %2015 = vmatprep.subr.mxu0 %v878_v8  ;;  %v1171_v7 = vld [vmem:[#allocation5 + $0x21a0] sm:$0xff]  ;;  %v974_v8 = vld [vmem:[#allocation5 + $0x1b78] sm:$0xff] }
 0x1a6   :  { %2086 = vmatprep.subr.mxu1 %v1070_v9  ;;  %2016 = vmatpush1.msra.mxu0 %v877_v10  ;;  %v1166_v9 = vld [vmem:[#allocation5 + $0x2178] sm:$0xff]  ;;  %v973_v10 = vld [vmem:[#allocation5 + $0x1b70] sm:$0xff] }
 0x1a7   :  { %2087 = vmatpush1.msra.mxu1 %v1069_v11  ;;  %2017 = vmatprep.subr.mxu0 %v872_v12  ;;  %v1165_v11 = vld [vmem:[#allocation5 + $0x2170] sm:$0xff]  ;;  %v968_v12 = vld [vmem:[#allocation5 + $0x1b48] sm:$0xff] }
 0x1a8   :  { %2088 = vmatprep.subr.mxu1 %v1064_v13  ;;  %2018 = vmatpush1.msra.mxu0 %v871_v14  ;;  %v1160_v13 = vld [vmem:[#allocation5 + $0x2148] sm:$0xff]  ;;  %v967_v14 = vld [vmem:[#allocation5 + $0x1b40] sm:$0xff] }
 0x1a9   :  { %2089 = vmatpush1.msra.mxu1 %v1063_v15  ;;  %2019 = vmatprep.subr.mxu0 %v866_v16  ;;  %v1159_v15 = vld [vmem:[#allocation5 + $0x2140] sm:$0xff]  ;;  %v962_v16 = vld [vmem:[#allocation5 + $0x1b18] sm:$0xff] }
 0x1aa   :  { %2090 = vmatprep.subr.mxu1 %v1058_v17  ;;  %2020 = vmatpush1.msra.mxu0 %v865_v18  ;;  %v1154_v17 = vld [vmem:[#allocation5 + $0x2118] sm:$0xff]  ;;  %v961_v18 = vld [vmem:[#allocation5 + $0x1b10] sm:$0xff] }
 0x1ab   :  { %2091 = vmatpush1.msra.mxu1 %v1057_v19  ;;  %2021 = vmatprep.subr.mxu0 %v1052_v20  ;;  %v1153_v19 = vld [vmem:[#allocation5 + $0x2110] sm:$0xff]  ;;  %v190_v20 = vld [vmem:[#allocation5 + $0x2f8] sm:$0xff] }
 0x1ac   :  { %2092 = vmatprep.subr.mxu1 %v1244_v21  ;;  %2022 = vmatpush2.msra.mxu0 %v1051_v22  ;;  %v3018_v21 = vld [vmem:[#allocation2 + $0x48] sm:$0xff]  ;;  %v382_v22 = vld [vmem:[#allocation5 + $0x8f8] sm:$0xff] }
 0x1ad   :  { %2093 = vmatpush2.msra.mxu1 %v1243_v23  ;;  %2023 = vmatprep.subr.mxu0 %v1046_v24  ;;  %v3019_v23 = vld [vmem:[#allocation2 + $0x40] sm:$0xff]  ;;  %v189_v24 = vld [vmem:[#allocation5 + $0x2f0] sm:$0xff] }
 0x1ae   :  { %2094 = vmatprep.subr.mxu1 %v1238_v25  ;;  %2024 = vmatpush2.msra.mxu0 %v1045_v26  ;;  %v381_v25 = vld [vmem:[#allocation5 + $0x8f0] sm:$0xff]  ;;  %v3020_v26 = vld [vmem:[#allocation2 + $0x58] sm:$0xff] }
 0x1af   :  { %2095 = vmatpush2.msra.mxu1 %v1237_v27  ;;  %2025 = vmatprep.subr.mxu0 %v1040_v28  ;;  %v184_v27 = vld [vmem:[#allocation5 + $0x2c8] sm:$0xff] }
 0x1b0   :  { %2096 = vmatprep.subr.mxu1 %v1232_v29  ;;  %2026 = vmatpush2.msra.mxu0 %v1039_v30  ;;  %v376_v28 = vld [vmem:[#allocation5 + $0x8c8] sm:$0xff]  ;;  %v3021_v29 = vld [vmem:[#allocation2 + $0x50] sm:$0xff]  ;;  %v183_v30 = vld [vmem:[#allocation5 + $0x2c0] sm:$0xff] }
 0x1b1   :  { %2097 = vmatpush2.msra.mxu1 %v1231_v31  ;;  %2027 = vmatprep.subr.mxu0 %v1034_v32  ;;  %v375_v31 = vld [vmem:[#allocation5 + $0x8c0] sm:$0xff]  ;;  %v178_v32 = vld [vmem:[#allocation5 + $0x298] sm:$0xff] }
 0x1b2   :  { %2098 = vmatprep.subr.mxu1 %v1226_v33  ;;  %2028 = vmatpush2.msra.mxu0 %v1033_v34  ;;  %v370_v33 = vld [vmem:[#allocation5 + $0x898] sm:$0xff]  ;;  %v177_v34 = vld [vmem:[#allocation5 + $0x290] sm:$0xff] }
 0x1b3   :  { %2099 = vmatpush2.msra.mxu1 %v1225_v35  ;;  %2029 = vmatprep.subr.mxu0 %v1028_v36  ;;  %v369_v35 = vld [vmem:[#allocation5 + $0x890] sm:$0xff]  ;;  %v172_v36 = vld [vmem:[#allocation5 + $0x268] sm:$0xff] }
 0x1b4   :  { %2100 = vmatprep.subr.mxu1 %v1220_v37  ;;  %2030 = vmatpush2.msra.mxu0 %v1027_v38  ;;  %v364_v37 = vld [vmem:[#allocation5 + $0x868] sm:$0xff]  ;;  %v171_v38 = vld [vmem:[#allocation5 + $0x260] sm:$0xff] }
 0x1b5   :  { %2101 = vmatpush2.msra.mxu1 %v1219_v39  ;;  %2031 = vmatprep.subr.mxu0 %v1022_v40  ;;  %v363_v39 = vld [vmem:[#allocation5 + $0x860] sm:$0xff]  ;;  %v166_v40 = vld [vmem:[#allocation5 + $0x238] sm:$0xff] }
 0x1b6   :  { %2102 = vmatprep.subr.mxu1 %v1214_v41  ;;  %2032 = vmatpush2.msra.mxu0 %v1021_v42  ;;  %v358_v41 = vld [vmem:[#allocation5 + $0x838] sm:$0xff]  ;;  %v165_v42 = vld [vmem:[#allocation5 + $0x230] sm:$0xff] }
 0x1b7   :  { %2103 = vmatpush2.msra.mxu1 %v1213_v43  ;;  %2033 = vmatprep.subr.mxu0 %v1016_v44  ;;  %v357_v43 = vld [vmem:[#allocation5 + $0x830] sm:$0xff]  ;;  %v160_v44 = vld [vmem:[#allocation5 + $0x208] sm:$0xff] }
 0x1b8   :  { %2104 = vmatprep.subr.mxu1 %v1208_v45  ;;  %2034 = vmatpush2.msra.mxu0 %v1015_v46  ;;  %v352_v45 = vld [vmem:[#allocation5 + $0x808] sm:$0xff]  ;;  %v159_v46 = vld [vmem:[#allocation5 + $0x200] sm:$0xff] }
 0x1b9   :  { %2105 = vmatpush2.msra.mxu1 %v1207_v47  ;;  %2035 = vmatprep.subr.mxu0 %v1010_v48  ;;  %v351_v47 = vld [vmem:[#allocation5 + $0x800] sm:$0xff]  ;;  %v154_v48 = vld [vmem:[#allocation5 + $0x1d8] sm:$0xff] }
 0x1ba   :  { %2106 = vmatprep.subr.mxu1 %v1202_v49  ;;  %2036 = vmatpush2.msra.mxu0 %v1009_v50  ;;  %v346_v49 = vld [vmem:[#allocation5 + $0x7d8] sm:$0xff]  ;;  %v153_v50 = vld [vmem:[#allocation5 + $0x1d0] sm:$0xff] }
 0x1bb   :  { %2107 = vmatpush2.msra.mxu1 %v1201_v51  ;;  %2037 = vmatprep.subr.mxu0 %v1004_v52  ;;  %v345_v51 = vld [vmem:[#allocation5 + $0x7d0] sm:$0xff]  ;;  %v148_v52 = vld [vmem:[#allocation5 + $0x1a8] sm:$0xff] }
 0x1bc   :  { %2108 = vmatprep.subr.mxu1 %v1196_v53  ;;  %2038 = vmatpush2.msra.mxu0 %v1003_v54  ;;  %v340_v53 = vld [vmem:[#allocation5 + $0x7a8] sm:$0xff]  ;;  %v147_v54 = vld [vmem:[#allocation5 + $0x1a0] sm:$0xff] }
 0x1bd   :  { %2109 = vmatpush2.msra.mxu1 %v1195_v55  ;;  %2039 = vmatprep.subr.mxu0 %v998_v56  ;;  %v339_v55 = vld [vmem:[#allocation5 + $0x7a0] sm:$0xff]  ;;  %v142_v56 = vld [vmem:[#allocation5 + $0x178] sm:$0xff] }
 0x1be   :  { %2110 = vmatprep.subr.mxu1 %v1190_v57  ;;  %2040 = vmatpush2.msra.mxu0 %v997_v58  ;;  %v334_v57 = vld [vmem:[#allocation5 + $0x778] sm:$0xff]  ;;  %v141_v58 = vld [vmem:[#allocation5 + $0x170] sm:$0xff] }
 0x1bf   :  { %2111 = vmatpush2.msra.mxu1 %v1189_v59  ;;  %2041 = vmatprep.subr.mxu0 %v992_v60  ;;  %v333_v59 = vld [vmem:[#allocation5 + $0x770] sm:$0xff]  ;;  %v136_v60 = vld [vmem:[#allocation5 + $0x148] sm:$0xff] }
 0x1c0   :  { %2112 = vmatprep.subr.mxu1 %v1184_v61  ;;  %2042 = vmatpush2.msra.mxu0 %v991_v62  ;;  %v328_v61 = vld [vmem:[#allocation5 + $0x748] sm:$0xff]  ;;  %v135_v62 = vld [vmem:[#allocation5 + $0x140] sm:$0xff] }
 0x1c1   :  { %2113 = vmatpush2.msra.mxu1 %v1183_v63  ;;  %2043 = vmatprep.subr.mxu0 %v986_v0  ;;  %v327_v63 = vld [vmem:[#allocation5 + $0x740] sm:$0xff]  ;;  %v130_v0 = vld [vmem:[#allocation5 + $0x118] sm:$0xff] }
 0x1c2   :  { %2114 = vmatprep.subr.mxu1 %v1178_v1  ;;  %2044 = vmatpush2.msra.mxu0 %v985_v2  ;;  %v322_v1 = vld [vmem:[#allocation5 + $0x718] sm:$0xff]  ;;  %v129_v2 = vld [vmem:[#allocation5 + $0x110] sm:$0xff] }
 0x1c3   :  { %2115 = vmatpush2.msra.mxu1 %v1177_v3  ;;  %2045 = vmatprep.subr.mxu0 %v980_v4  ;;  %v321_v3 = vld [vmem:[#allocation5 + $0x710] sm:$0xff]  ;;  %v124_v4 = vld [vmem:[#allocation5 + $0xe8] sm:$0xff] }
 0x1c4   :  { %2116 = vmatprep.subr.mxu1 %v1172_v5  ;;  %2046 = vmatpush2.msra.mxu0 %v979_v6  ;;  %v316_v5 = vld [vmem:[#allocation5 + $0x6e8] sm:$0xff]  ;;  %v123_v6 = vld [vmem:[#allocation5 + $0xe0] sm:$0xff] }
 0x1c5   :  { %2117 = vmatpush2.msra.mxu1 %v1171_v7  ;;  %2047 = vmatprep.subr.mxu0 %v974_v8  ;;  %v315_v7 = vld [vmem:[#allocation5 + $0x6e0] sm:$0xff]  ;;  %v118_v8 = vld [vmem:[#allocation5 + $0xb8] sm:$0xff] }
 0x1c6   :  { %2118 = vmatprep.subr.mxu1 %v1166_v9  ;;  %2048 = vmatpush2.msra.mxu0 %v973_v10  ;;  %v310_v9 = vld [vmem:[#allocation5 + $0x6b8] sm:$0xff]  ;;  %v117_v10 = vld [vmem:[#allocation5 + $0xb0] sm:$0xff] }
 0x1c7   :  { %2119 = vmatpush2.msra.mxu1 %v1165_v11  ;;  %2049 = vmatprep.subr.mxu0 %v968_v12  ;;  %v309_v11 = vld [vmem:[#allocation5 + $0x6b0] sm:$0xff]  ;;  %v112_v12 = vld [vmem:[#allocation5 + $0x88] sm:$0xff] }
 0x1c8   :  { %2120 = vmatprep.subr.mxu1 %v1160_v13  ;;  %2050 = vmatpush2.msra.mxu0 %v967_v14  ;;  %v304_v13 = vld [vmem:[#allocation5 + $0x688] sm:$0xff]  ;;  %v111_v14 = vld [vmem:[#allocation5 + $0x80] sm:$0xff] }
 0x1c9   :  { %2121 = vmatpush2.msra.mxu1 %v1159_v15  ;;  %2051 = vmatprep.subr.mxu0 %v962_v16  ;;  %v303_v15 = vld [vmem:[#allocation5 + $0x680] sm:$0xff]  ;;  %v106_v16 = vld [vmem:[#allocation5 + $0x58] sm:$0xff] }
 0x1ca   :  { %2122 = vmatprep.subr.mxu1 %v1154_v17  ;;  %2052 = vmatpush2.msra.mxu0 %v961_v18  ;;  %v298_v17 = vld [vmem:[#allocation5 + $0x658] sm:$0xff]  ;;  %v105_v18 = vld [vmem:[#allocation5 + $0x50] sm:$0xff] }
 0x1cb   :  { %2053 = vmatprep.mubr.f32.mxu0 %v3018_v21  ;;  %2123 = vmatpush2.msra.mxu1 %v1153_v19  ;;  %v297_v19 = vld [vmem:[#allocation5 + $0x650] sm:$0xff]  ;;  %v292_v21 = vld [vmem:[#allocation5 + $0x628] sm:$0xff] }
 0x1cc   :  { %2054 = vmatmul.mubr.f32.vlgmr.msra.gmra.mxu0 %v3019_v23  ;;  %2124 = vmatprep.mubr.f32.mxu1 %v3020_v26  ;;  %v291_v23 = vld [vmem:[#allocation5 + $0x620] sm:$0xff]  ;;  %v285_v26 = vld [vmem:[#allocation5 + $0x5f0] sm:$0xff] }
 0x1cd   :  { %2131 = vmatprep.subr.mxu0 %v190_v20  ;;  %2202 = vmatprep.subr.mxu1 %v382_v22  ;;  %v100_v20 = vld [vmem:[#allocation5 + $0x28] sm:$0xff]  ;;  %v99_v22 = vld [vmem:[#allocation5 + $0x20] sm:$0xff] }
 0x1ce   :  { %2125 = vmatmul.mubr.f32.vlgmr.msra.gmra.mxu1 %v3021_v29  ;;  %2132 = vmatpush1.msra.mxu0 %v189_v24  ;;  %v286_v24 = vld [vmem:[#allocation5 + $0x5f8] sm:$0xff]  ;;  %v472_v29 = vld [vmem:[#allocation5 + $0xbc8] sm:$0xff] }
 0x1cf   :  { %2203 = vmatpush1.msra.mxu1 %v381_v25  ;;  %2133 = vmatprep.subr.mxu0 %v184_v27  ;;  %v478_v25 = vld [vmem:[#allocation5 + $0xbf8] sm:$0xff]  ;;  %v477_v27 = vld [vmem:[#allocation5 + $0xbf0] sm:$0xff] }
 0x1d0   :  { %2204 = vmatprep.subr.mxu1 %v376_v28  ;;  %2134 = vmatpush1.msra.mxu0 %v183_v30  ;;  %v280_v28 = vld [vmem:[#allocation5 + $0x5c8] sm:$0xff]  ;;  %v279_v30 = vld [vmem:[#allocation5 + $0x5c0] sm:$0xff] }
 0x1d1   :  { %2205 = vmatpush1.msra.mxu1 %v375_v31  ;;  %2135 = vmatprep.subr.mxu0 %v178_v32  ;;  %v471_v31 = vld [vmem:[#allocation5 + $0xbc0] sm:$0xff]  ;;  %v274_v32 = vld [vmem:[#allocation5 + $0x598] sm:$0xff] }
 0x1d2   :  { %2206 = vmatprep.subr.mxu1 %v370_v33  ;;  %2136 = vmatpush1.msra.mxu0 %v177_v34  ;;  %v466_v33 = vld [vmem:[#allocation5 + $0xb98] sm:$0xff]  ;;  %v273_v34 = vld [vmem:[#allocation5 + $0x590] sm:$0xff] }
 0x1d3   :  { %2207 = vmatpush1.msra.mxu1 %v369_v35  ;;  %2137 = vmatprep.subr.mxu0 %v172_v36  ;;  %v465_v35 = vld [vmem:[#allocation5 + $0xb90] sm:$0xff]  ;;  %v268_v36 = vld [vmem:[#allocation5 + $0x568] sm:$0xff] }
 0x1d4   :  { %2208 = vmatprep.subr.mxu1 %v364_v37  ;;  %2138 = vmatpush1.msra.mxu0 %v171_v38  ;;  %v460_v37 = vld [vmem:[#allocation5 + $0xb68] sm:$0xff]  ;;  %v267_v38 = vld [vmem:[#allocation5 + $0x560] sm:$0xff] }
 0x1d5   :  { %2209 = vmatpush1.msra.mxu1 %v363_v39  ;;  %2139 = vmatprep.subr.mxu0 %v166_v40  ;;  %v459_v39 = vld [vmem:[#allocation5 + $0xb60] sm:$0xff]  ;;  %v262_v40 = vld [vmem:[#allocation5 + $0x538] sm:$0xff] }
 0x1d6   :  { %2210 = vmatprep.subr.mxu1 %v358_v41  ;;  %2140 = vmatpush1.msra.mxu0 %v165_v42  ;;  %v454_v41 = vld [vmem:[#allocation5 + $0xb38] sm:$0xff]  ;;  %v261_v42 = vld [vmem:[#allocation5 + $0x530] sm:$0xff] }
 0x1d7   :  { %2211 = vmatpush1.msra.mxu1 %v357_v43  ;;  %2141 = vmatprep.subr.mxu0 %v160_v44  ;;  %v453_v43 = vld [vmem:[#allocation5 + $0xb30] sm:$0xff]  ;;  %v256_v44 = vld [vmem:[#allocation5 + $0x508] sm:$0xff] }
 0x1d8   :  { %2212 = vmatprep.subr.mxu1 %v352_v45  ;;  %2142 = vmatpush1.msra.mxu0 %v159_v46  ;;  %v448_v45 = vld [vmem:[#allocation5 + $0xb08] sm:$0xff]  ;;  %v255_v46 = vld [vmem:[#allocation5 + $0x500] sm:$0xff] }
 0x1d9   :  { %2213 = vmatpush1.msra.mxu1 %v351_v47  ;;  %2143 = vmatprep.subr.mxu0 %v154_v48  ;;  %v447_v47 = vld [vmem:[#allocation5 + $0xb00] sm:$0xff]  ;;  %v250_v48 = vld [vmem:[#allocation5 + $0x4d8] sm:$0xff] }
 0x1da   :  { %2214 = vmatprep.subr.mxu1 %v346_v49  ;;  %2144 = vmatpush1.msra.mxu0 %v153_v50  ;;  %v442_v49 = vld [vmem:[#allocation5 + $0xad8] sm:$0xff]  ;;  %v249_v50 = vld [vmem:[#allocation5 + $0x4d0] sm:$0xff] }
 0x1db   :  { %2215 = vmatpush1.msra.mxu1 %v345_v51  ;;  %2145 = vmatprep.subr.mxu0 %v148_v52  ;;  %v441_v51 = vld [vmem:[#allocation5 + $0xad0] sm:$0xff]  ;;  %v244_v52 = vld [vmem:[#allocation5 + $0x4a8] sm:$0xff] }
 0x1dc   :  { %2216 = vmatprep.subr.mxu1 %v340_v53  ;;  %2146 = vmatpush1.msra.mxu0 %v147_v54  ;;  %v436_v53 = vld [vmem:[#allocation5 + $0xaa8] sm:$0xff]  ;;  %v243_v54 = vld [vmem:[#allocation5 + $0x4a0] sm:$0xff] }
 0x1dd   :  { %2217 = vmatpush1.msra.mxu1 %v339_v55  ;;  %2147 = vmatprep.subr.mxu0 %v142_v56  ;;  %v435_v55 = vld [vmem:[#allocation5 + $0xaa0] sm:$0xff]  ;;  %v238_v56 = vld [vmem:[#allocation5 + $0x478] sm:$0xff] }
 0x1de   :  { %2218 = vmatprep.subr.mxu1 %v334_v57  ;;  %2148 = vmatpush1.msra.mxu0 %v141_v58  ;;  %v430_v57 = vld [vmem:[#allocation5 + $0xa78] sm:$0xff]  ;;  %v237_v58 = vld [vmem:[#allocation5 + $0x470] sm:$0xff] }
 0x1df   :  { %2219 = vmatpush1.msra.mxu1 %v333_v59  ;;  %2149 = vmatprep.subr.mxu0 %v136_v60  ;;  %v429_v59 = vld [vmem:[#allocation5 + $0xa70] sm:$0xff]  ;;  %v232_v60 = vld [vmem:[#allocation5 + $0x448] sm:$0xff] }
 0x1e0   :  { %2220 = vmatprep.subr.mxu1 %v328_v61  ;;  %2150 = vmatpush1.msra.mxu0 %v135_v62  ;;  %v424_v61 = vld [vmem:[#allocation5 + $0xa48] sm:$0xff]  ;;  %v231_v62 = vld [vmem:[#allocation5 + $0x440] sm:$0xff] }
 0x1e1   :  { %2221 = vmatpush1.msra.mxu1 %v327_v63  ;;  %2151 = vmatprep.subr.mxu0 %v130_v0  ;;  %v423_v63 = vld [vmem:[#allocation5 + $0xa40] sm:$0xff]  ;;  %v226_v0 = vld [vmem:[#allocation5 + $0x418] sm:$0xff] }
 0x1e2   :  { %2222 = vmatprep.subr.mxu1 %v322_v1  ;;  %2152 = vmatpush1.msra.mxu0 %v129_v2  ;;  %v418_v1 = vld [vmem:[#allocation5 + $0xa18] sm:$0xff]  ;;  %v225_v2 = vld [vmem:[#allocation5 + $0x410] sm:$0xff] }
 0x1e3   :  { %2223 = vmatpush1.msra.mxu1 %v321_v3  ;;  %2153 = vmatprep.subr.mxu0 %v124_v4  ;;  %v417_v3 = vld [vmem:[#allocation5 + $0xa10] sm:$0xff]  ;;  %v220_v4 = vld [vmem:[#allocation5 + $0x3e8] sm:$0xff] }
 0x1e4   :  { %2224 = vmatprep.subr.mxu1 %v316_v5  ;;  %2154 = vmatpush1.msra.mxu0 %v123_v6  ;;  %v412_v5 = vld [vmem:[#allocation5 + $0x9e8] sm:$0xff]  ;;  %v219_v6 = vld [vmem:[#allocation5 + $0x3e0] sm:$0xff] }
 0x1e5   :  { %2225 = vmatpush1.msra.mxu1 %v315_v7  ;;  %2155 = vmatprep.subr.mxu0 %v118_v8  ;;  %v411_v7 = vld [vmem:[#allocation5 + $0x9e0] sm:$0xff]  ;;  %v214_v8 = vld [vmem:[#allocation5 + $0x3b8] sm:$0xff] }
 0x1e6   :  { %2226 = vmatprep.subr.mxu1 %v310_v9  ;;  %2156 = vmatpush1.msra.mxu0 %v117_v10  ;;  %v406_v9 = vld [vmem:[#allocation5 + $0x9b8] sm:$0xff]  ;;  %v213_v10 = vld [vmem:[#allocation5 + $0x3b0] sm:$0xff] }
 0x1e7   :  { %2227 = vmatpush1.msra.mxu1 %v309_v11  ;;  %2157 = vmatprep.subr.mxu0 %v112_v12  ;;  %v405_v11 = vld [vmem:[#allocation5 + $0x9b0] sm:$0xff]  ;;  %v208_v12 = vld [vmem:[#allocation5 + $0x388] sm:$0xff] }
 0x1e8   :  { %2228 = vmatprep.subr.mxu1 %v304_v13  ;;  %2158 = vmatpush1.msra.mxu0 %v111_v14  ;;  %v400_v13 = vld [vmem:[#allocation5 + $0x988] sm:$0xff]  ;;  %v207_v14 = vld [vmem:[#allocation5 + $0x380] sm:$0xff] }
 0x1e9   :  { %2229 = vmatpush1.msra.mxu1 %v303_v15  ;;  %2159 = vmatprep.subr.mxu0 %v106_v16  ;;  %v399_v15 = vld [vmem:[#allocation5 + $0x980] sm:$0xff]  ;;  %v202_v16 = vld [vmem:[#allocation5 + $0x358] sm:$0xff] }
 0x1ea   :  { %2230 = vmatprep.subr.mxu1 %v298_v17  ;;  %2160 = vmatpush1.msra.mxu0 %v105_v18  ;;  %v394_v17 = vld [vmem:[#allocation5 + $0x958] sm:$0xff]  ;;  %v201_v18 = vld [vmem:[#allocation5 + $0x350] sm:$0xff] }
 0x1eb   :  { %2231 = vmatpush1.msra.mxu1 %v297_v19  ;;  %2161 = vmatprep.subr.mxu0 %v100_v20  ;;  %v393_v19 = vld [vmem:[#allocation5 + $0x950] sm:$0xff]  ;;  %v196_v20 = vld [vmem:[#allocation5 + $0x328] sm:$0xff] }
 0x1ec   :  { %2232 = vmatprep.subr.mxu1 %v292_v21  ;;  %2162 = vmatpush1.msra.mxu0 %v99_v22  ;;  %v388_v21 = vld [vmem:[#allocation5 + $0x928] sm:$0xff]  ;;  %v195_v22 = vld [vmem:[#allocation5 + $0x320] sm:$0xff] }
 0x1ed   :  { %2233 = vmatpush1.msra.mxu1 %v291_v23  ;;  %2163 = vmatprep.subr.mxu0 %v286_v24  ;;  %v387_v23 = vld [vmem:[#allocation5 + $0x920] sm:$0xff]  ;;  %v574_v24 = vld [vmem:[#allocation5 + $0xef8] sm:$0xff] }
 0x1ee   :  { %2234 = vmatprep.subr.mxu1 %v478_v25  ;;  %2164 = vmatpush2.msra.mxu0 %v285_v26  ;;  %v3022_v25 = vld [vmem:[#allocation2 + $0x8] sm:$0xff]  ;;  %v766_v26 = vld [vmem:[#allocation5 + $0x14f8] sm:$0xff] }
 0x1ef   :  { %2235 = vmatpush2.msra.mxu1 %v477_v27  ;;  %2165 = vmatprep.subr.mxu0 %v280_v28  ;;  %v3023_v27 = vld [vmem:[#allocation2] sm:$0xff]  ;;  %v573_v28 = vld [vmem:[#allocation5 + $0xef0] sm:$0xff] }
 0x1f0   :  { %2236 = vmatprep.subr.mxu1 %v472_v29  ;;  %2166 = vmatpush2.msra.mxu0 %v279_v30  ;;  %v765_v29 = vld [vmem:[#allocation5 + $0x14f0] sm:$0xff]  ;;  %v3024_v30 = vld [vmem:[#allocation2 + $0x18] sm:$0xff] }
 0x1f1   :  { %2237 = vmatpush2.msra.mxu1 %v471_v31  ;;  %2167 = vmatprep.subr.mxu0 %v274_v32  ;;  %v568_v31 = vld [vmem:[#allocation5 + $0xec8] sm:$0xff] }
 0x1f2   :  { %2238 = vmatprep.subr.mxu1 %v466_v33  ;;  %2168 = vmatpush2.msra.mxu0 %v273_v34  ;;  %v760_v32 = vld [vmem:[#allocation5 + $0x14c8] sm:$0xff]  ;;  %v3025_v33 = vld [vmem:[#allocation2 + $0x10] sm:$0xff]  ;;  %v567_v34 = vld [vmem:[#allocation5 + $0xec0] sm:$0xff] }
 0x1f3   :  { %2239 = vmatpush2.msra.mxu1 %v465_v35  ;;  %2169 = vmatprep.subr.mxu0 %v268_v36  ;;  %v759_v35 = vld [vmem:[#allocation5 + $0x14c0] sm:$0xff]  ;;  %v562_v36 = vld [vmem:[#allocation5 + $0xe98] sm:$0xff] }
 0x1f4   :  { %2240 = vmatprep.subr.mxu1 %v460_v37  ;;  %2170 = vmatpush2.msra.mxu0 %v267_v38  ;;  %v754_v37 = vld [vmem:[#allocation5 + $0x1498] sm:$0xff]  ;;  %v561_v38 = vld [vmem:[#allocation5 + $0xe90] sm:$0xff] }
 0x1f5   :  { %2241 = vmatpush2.msra.mxu1 %v459_v39  ;;  %2171 = vmatprep.subr.mxu0 %v262_v40  ;;  %v753_v39 = vld [vmem:[#allocation5 + $0x1490] sm:$0xff]  ;;  %v556_v40 = vld [vmem:[#allocation5 + $0xe68] sm:$0xff] }
 0x1f6   :  { %2242 = vmatprep.subr.mxu1 %v454_v41  ;;  %2172 = vmatpush2.msra.mxu0 %v261_v42  ;;  %v748_v41 = vld [vmem:[#allocation5 + $0x1468] sm:$0xff]  ;;  %v555_v42 = vld [vmem:[#allocation5 + $0xe60] sm:$0xff] }
 0x1f7   :  { %2243 = vmatpush2.msra.mxu1 %v453_v43  ;;  %2173 = vmatprep.subr.mxu0 %v256_v44  ;;  %v747_v43 = vld [vmem:[#allocation5 + $0x1460] sm:$0xff]  ;;  %v550_v44 = vld [vmem:[#allocation5 + $0xe38] sm:$0xff] }
 0x1f8   :  { %2244 = vmatprep.subr.mxu1 %v448_v45  ;;  %2174 = vmatpush2.msra.mxu0 %v255_v46  ;;  %v742_v45 = vld [vmem:[#allocation5 + $0x1438] sm:$0xff]  ;;  %v549_v46 = vld [vmem:[#allocation5 + $0xe30] sm:$0xff] }
 0x1f9   :  { %2245 = vmatpush2.msra.mxu1 %v447_v47  ;;  %2175 = vmatprep.subr.mxu0 %v250_v48  ;;  %v741_v47 = vld [vmem:[#allocation5 + $0x1430] sm:$0xff]  ;;  %v544_v48 = vld [vmem:[#allocation5 + $0xe08] sm:$0xff] }
 0x1fa   :  { %2246 = vmatprep.subr.mxu1 %v442_v49  ;;  %2176 = vmatpush2.msra.mxu0 %v249_v50  ;;  %v736_v49 = vld [vmem:[#allocation5 + $0x1408] sm:$0xff]  ;;  %v543_v50 = vld [vmem:[#allocation5 + $0xe00] sm:$0xff] }
 0x1fb   :  { %2247 = vmatpush2.msra.mxu1 %v441_v51  ;;  %2177 = vmatprep.subr.mxu0 %v244_v52  ;;  %v735_v51 = vld [vmem:[#allocation5 + $0x1400] sm:$0xff]  ;;  %v538_v52 = vld [vmem:[#allocation5 + $0xdd8] sm:$0xff] }
 0x1fc   :  { %2248 = vmatprep.subr.mxu1 %v436_v53  ;;  %2178 = vmatpush2.msra.mxu0 %v243_v54  ;;  %v730_v53 = vld [vmem:[#allocation5 + $0x13d8] sm:$0xff]  ;;  %v537_v54 = vld [vmem:[#allocation5 + $0xdd0] sm:$0xff] }
 0x1fd   :  { %2249 = vmatpush2.msra.mxu1 %v435_v55  ;;  %2179 = vmatprep.subr.mxu0 %v238_v56  ;;  %v729_v55 = vld [vmem:[#allocation5 + $0x13d0] sm:$0xff]  ;;  %v532_v56 = vld [vmem:[#allocation5 + $0xda8] sm:$0xff] }
 0x1fe   :  { %2250 = vmatprep.subr.mxu1 %v430_v57  ;;  %2180 = vmatpush2.msra.mxu0 %v237_v58  ;;  %v724_v57 = vld [vmem:[#allocation5 + $0x13a8] sm:$0xff]  ;;  %v531_v58 = vld [vmem:[#allocation5 + $0xda0] sm:$0xff] }
 0x1ff   :  { %2251 = vmatpush2.msra.mxu1 %v429_v59  ;;  %2181 = vmatprep.subr.mxu0 %v232_v60  ;;  %v723_v59 = vld [vmem:[#allocation5 + $0x13a0] sm:$0xff]  ;;  %v526_v60 = vld [vmem:[#allocation5 + $0xd78] sm:$0xff] }
 0x200   :  { %2252 = vmatprep.subr.mxu1 %v424_v61  ;;  %2182 = vmatpush2.msra.mxu0 %v231_v62  ;;  %v718_v61 = vld [vmem:[#allocation5 + $0x1378] sm:$0xff]  ;;  %v525_v62 = vld [vmem:[#allocation5 + $0xd70] sm:$0xff] }
 0x201   :  { %2253 = vmatpush2.msra.mxu1 %v423_v63  ;;  %2183 = vmatprep.subr.mxu0 %v226_v0  ;;  %v717_v63 = vld [vmem:[#allocation5 + $0x1370] sm:$0xff]  ;;  %v520_v0 = vld [vmem:[#allocation5 + $0xd48] sm:$0xff] }
 0x202   :  { %2254 = vmatprep.subr.mxu1 %v418_v1  ;;  %2184 = vmatpush2.msra.mxu0 %v225_v2  ;;  %v712_v1 = vld [vmem:[#allocation5 + $0x1348] sm:$0xff]  ;;  %v519_v2 = vld [vmem:[#allocation5 + $0xd40] sm:$0xff] }
 0x203   :  { %2255 = vmatpush2.msra.mxu1 %v417_v3  ;;  %2185 = vmatprep.subr.mxu0 %v220_v4  ;;  %v711_v3 = vld [vmem:[#allocation5 + $0x1340] sm:$0xff]  ;;  %v514_v4 = vld [vmem:[#allocation5 + $0xd18] sm:$0xff] }
 0x204   :  { %2256 = vmatprep.subr.mxu1 %v412_v5  ;;  %2186 = vmatpush2.msra.mxu0 %v219_v6  ;;  %v706_v5 = vld [vmem:[#allocation5 + $0x1318] sm:$0xff]  ;;  %v513_v6 = vld [vmem:[#allocation5 + $0xd10] sm:$0xff] }
 0x205   :  { %2257 = vmatpush2.msra.mxu1 %v411_v7  ;;  %2187 = vmatprep.subr.mxu0 %v214_v8  ;;  %v705_v7 = vld [vmem:[#allocation5 + $0x1310] sm:$0xff]  ;;  %v508_v8 = vld [vmem:[#allocation5 + $0xce8] sm:$0xff] }
 0x206   :  { %2258 = vmatprep.subr.mxu1 %v406_v9  ;;  %2188 = vmatpush2.msra.mxu0 %v213_v10  ;;  %v700_v9 = vld [vmem:[#allocation5 + $0x12e8] sm:$0xff]  ;;  %v507_v10 = vld [vmem:[#allocation5 + $0xce0] sm:$0xff] }
 0x207   :  { %2259 = vmatpush2.msra.mxu1 %v405_v11  ;;  %2189 = vmatprep.subr.mxu0 %v208_v12  ;;  %v699_v11 = vld [vmem:[#allocation5 + $0x12e0] sm:$0xff]  ;;  %v502_v12 = vld [vmem:[#allocation5 + $0xcb8] sm:$0xff] }
 0x208   :  { %2260 = vmatprep.subr.mxu1 %v400_v13  ;;  %2190 = vmatpush2.msra.mxu0 %v207_v14  ;;  %v694_v13 = vld [vmem:[#allocation5 + $0x12b8] sm:$0xff]  ;;  %v501_v14 = vld [vmem:[#allocation5 + $0xcb0] sm:$0xff] }
 0x209   :  { %2261 = vmatpush2.msra.mxu1 %v399_v15  ;;  %2191 = vmatprep.subr.mxu0 %v202_v16  ;;  %v693_v15 = vld [vmem:[#allocation5 + $0x12b0] sm:$0xff]  ;;  %v496_v16 = vld [vmem:[#allocation5 + $0xc88] sm:$0xff] }
 0x20a   :  { %2262 = vmatprep.subr.mxu1 %v394_v17  ;;  %2192 = vmatpush2.msra.mxu0 %v201_v18  ;;  %v688_v17 = vld [vmem:[#allocation5 + $0x1288] sm:$0xff]  ;;  %v495_v18 = vld [vmem:[#allocation5 + $0xc80] sm:$0xff] }
 0x20b   :  { %2263 = vmatpush2.msra.mxu1 %v393_v19  ;;  %2193 = vmatprep.subr.mxu0 %v196_v20  ;;  %v687_v19 = vld [vmem:[#allocation5 + $0x1280] sm:$0xff]  ;;  %v490_v20 = vld [vmem:[#allocation5 + $0xc58] sm:$0xff] }
 0x20c   :  { %2264 = vmatprep.subr.mxu1 %v388_v21  ;;  %2194 = vmatpush2.msra.mxu0 %v195_v22  ;;  %v682_v21 = vld [vmem:[#allocation5 + $0x1258] sm:$0xff]  ;;  %v489_v22 = vld [vmem:[#allocation5 + $0xc50] sm:$0xff] }
 0x20d   :  { %2195 = vmatprep.mubr.f32.mxu0 %v3022_v25  ;;  %2265 = vmatpush2.msra.mxu1 %v387_v23  ;;  %v681_v23 = vld [vmem:[#allocation5 + $0x1250] sm:$0xff]  ;;  %v676_v25 = vld [vmem:[#allocation5 + $0x1228] sm:$0xff] }
 0x20e   :  { %2196 = vmatmul.mubr.f32.vlgmr.msra.gmra.mxu0 %v3023_v27  ;;  %2266 = vmatprep.mubr.f32.mxu1 %v3024_v30  ;;  %v675_v27 = vld [vmem:[#allocation5 + $0x1220] sm:$0xff]  ;;  %v669_v30 = vld [vmem:[#allocation5 + $0x11f0] sm:$0xff] }
 0x20f   :  { %2273 = vmatprep.subr.mxu0 %v574_v24  ;;  %2344 = vmatprep.subr.mxu1 %v766_v26  ;;  %v484_v24 = vld [vmem:[#allocation5 + $0xc28] sm:$0xff]  ;;  %v483_v26 = vld [vmem:[#allocation5 + $0xc20] sm:$0xff] }
 0x210   :  { %2267 = vmatmul.mubr.f32.vlgmr.msra.gmra.mxu1 %v3025_v33  ;;  %2274 = vmatpush1.msra.mxu0 %v573_v28  ;;  %v670_v28 = vld [vmem:[#allocation5 + $0x11f8] sm:$0xff]  ;;  %v856_v33 = vld [vmem:[#allocation5 + $0x17c8] sm:$0xff] }
 0x211   :  { %2345 = vmatpush1.msra.mxu1 %v765_v29  ;;  %2275 = vmatprep.subr.mxu0 %v568_v31  ;;  %v862_v29 = vld [vmem:[#allocation5 + $0x17f8] sm:$0xff]  ;;  %v861_v31 = vld [vmem:[#allocation5 + $0x17f0] sm:$0xff] }
 0x212   :  { %2346 = vmatprep.subr.mxu1 %v760_v32  ;;  %2276 = vmatpush1.msra.mxu0 %v567_v34  ;;  %v664_v32 = vld [vmem:[#allocation5 + $0x11c8] sm:$0xff]  ;;  %v663_v34 = vld [vmem:[#allocation5 + $0x11c0] sm:$0xff] }
 0x213   :  { %2347 = vmatpush1.msra.mxu1 %v759_v35  ;;  %2277 = vmatprep.subr.mxu0 %v562_v36  ;;  %v855_v35 = vld [vmem:[#allocation5 + $0x17c0] sm:$0xff]  ;;  %v658_v36 = vld [vmem:[#allocation5 + $0x1198] sm:$0xff] }
 0x214   :  { %2348 = vmatprep.subr.mxu1 %v754_v37  ;;  %2278 = vmatpush1.msra.mxu0 %v561_v38  ;;  %v850_v37 = vld [vmem:[#allocation5 + $0x1798] sm:$0xff]  ;;  %v657_v38 = vld [vmem:[#allocation5 + $0x1190] sm:$0xff] }
 0x215   :  { %2349 = vmatpush1.msra.mxu1 %v753_v39  ;;  %2279 = vmatprep.subr.mxu0 %v556_v40  ;;  %v849_v39 = vld [vmem:[#allocation5 + $0x1790] sm:$0xff]  ;;  %v652_v40 = vld [vmem:[#allocation5 + $0x1168] sm:$0xff] }
 0x216   :  { %2350 = vmatprep.subr.mxu1 %v748_v41  ;;  %2280 = vmatpush1.msra.mxu0 %v555_v42  ;;  %v844_v41 = vld [vmem:[#allocation5 + $0x1768] sm:$0xff]  ;;  %v651_v42 = vld [vmem:[#allocation5 + $0x1160] sm:$0xff] }
 0x217   :  { %2351 = vmatpush1.msra.mxu1 %v747_v43  ;;  %2281 = vmatprep.subr.mxu0 %v550_v44  ;;  %v843_v43 = vld [vmem:[#allocation5 + $0x1760] sm:$0xff]  ;;  %v646_v44 = vld [vmem:[#allocation5 + $0x1138] sm:$0xff] }
 0x218   :  { %2352 = vmatprep.subr.mxu1 %v742_v45  ;;  %2282 = vmatpush1.msra.mxu0 %v549_v46  ;;  %v838_v45 = vld [vmem:[#allocation5 + $0x1738] sm:$0xff]  ;;  %v645_v46 = vld [vmem:[#allocation5 + $0x1130] sm:$0xff] }
 0x219   :  { %2353 = vmatpush1.msra.mxu1 %v741_v47  ;;  %2283 = vmatprep.subr.mxu0 %v544_v48  ;;  %v837_v47 = vld [vmem:[#allocation5 + $0x1730] sm:$0xff]  ;;  %v640_v48 = vld [vmem:[#allocation5 + $0x1108] sm:$0xff] }
 0x21a   :  { %2354 = vmatprep.subr.mxu1 %v736_v49  ;;  %2284 = vmatpush1.msra.mxu0 %v543_v50  ;;  %v832_v49 = vld [vmem:[#allocation5 + $0x1708] sm:$0xff]  ;;  %v639_v50 = vld [vmem:[#allocation5 + $0x1100] sm:$0xff] }
 0x21b   :  { %2355 = vmatpush1.msra.mxu1 %v735_v51  ;;  %2285 = vmatprep.subr.mxu0 %v538_v52  ;;  %v831_v51 = vld [vmem:[#allocation5 + $0x1700] sm:$0xff]  ;;  %v634_v52 = vld [vmem:[#allocation5 + $0x10d8] sm:$0xff] }
 0x21c   :  { %2356 = vmatprep.subr.mxu1 %v730_v53  ;;  %2286 = vmatpush1.msra.mxu0 %v537_v54  ;;  %v826_v53 = vld [vmem:[#allocation5 + $0x16d8] sm:$0xff]  ;;  %v633_v54 = vld [vmem:[#allocation5 + $0x10d0] sm:$0xff] }
 0x21d   :  { %2357 = vmatpush1.msra.mxu1 %v729_v55  ;;  %2287 = vmatprep.subr.mxu0 %v532_v56  ;;  %v825_v55 = vld [vmem:[#allocation5 + $0x16d0] sm:$0xff]  ;;  %v628_v56 = vld [vmem:[#allocation5 + $0x10a8] sm:$0xff] }
 0x21e   :  { %2358 = vmatprep.subr.mxu1 %v724_v57  ;;  %2288 = vmatpush1.msra.mxu0 %v531_v58  ;;  %v820_v57 = vld [vmem:[#allocation5 + $0x16a8] sm:$0xff]  ;;  %v627_v58 = vld [vmem:[#allocation5 + $0x10a0] sm:$0xff] }
 0x21f   :  { %2359 = vmatpush1.msra.mxu1 %v723_v59  ;;  %2289 = vmatprep.subr.mxu0 %v526_v60  ;;  %v819_v59 = vld [vmem:[#allocation5 + $0x16a0] sm:$0xff]  ;;  %v622_v60 = vld [vmem:[#allocation5 + $0x1078] sm:$0xff] }
 0x220   :  { %2360 = vmatprep.subr.mxu1 %v718_v61  ;;  %2290 = vmatpush1.msra.mxu0 %v525_v62  ;;  %v814_v61 = vld [vmem:[#allocation5 + $0x1678] sm:$0xff]  ;;  %v621_v62 = vld [vmem:[#allocation5 + $0x1070] sm:$0xff] }
 0x221   :  { %2361 = vmatpush1.msra.mxu1 %v717_v63  ;;  %2291 = vmatprep.subr.mxu0 %v520_v0  ;;  %v813_v63 = vld [vmem:[#allocation5 + $0x1670] sm:$0xff]  ;;  %v616_v0 = vld [vmem:[#allocation5 + $0x1048] sm:$0xff] }
 0x222   :  { %2362 = vmatprep.subr.mxu1 %v712_v1  ;;  %2292 = vmatpush1.msra.mxu0 %v519_v2  ;;  %v808_v1 = vld [vmem:[#allocation5 + $0x1648] sm:$0xff]  ;;  %v615_v2 = vld [vmem:[#allocation5 + $0x1040] sm:$0xff] }
 0x223   :  { %2363 = vmatpush1.msra.mxu1 %v711_v3  ;;  %2293 = vmatprep.subr.mxu0 %v514_v4  ;;  %v807_v3 = vld [vmem:[#allocation5 + $0x1640] sm:$0xff]  ;;  %v610_v4 = vld [vmem:[#allocation5 + $0x1018] sm:$0xff] }
 0x224   :  { %2364 = vmatprep.subr.mxu1 %v706_v5  ;;  %2294 = vmatpush1.msra.mxu0 %v513_v6  ;;  %v802_v5 = vld [vmem:[#allocation5 + $0x1618] sm:$0xff]  ;;  %v609_v6 = vld [vmem:[#allocation5 + $0x1010] sm:$0xff] }
 0x225   :  { %2365 = vmatpush1.msra.mxu1 %v705_v7  ;;  %2295 = vmatprep.subr.mxu0 %v508_v8  ;;  %v801_v7 = vld [vmem:[#allocation5 + $0x1610] sm:$0xff]  ;;  %v604_v8 = vld [vmem:[#allocation5 + $0xfe8] sm:$0xff] }
 0x226   :  { %2366 = vmatprep.subr.mxu1 %v700_v9  ;;  %2296 = vmatpush1.msra.mxu0 %v507_v10  ;;  %v796_v9 = vld [vmem:[#allocation5 + $0x15e8] sm:$0xff]  ;;  %v603_v10 = vld [vmem:[#allocation5 + $0xfe0] sm:$0xff] }
 0x227   :  { %2367 = vmatpush1.msra.mxu1 %v699_v11  ;;  %2297 = vmatprep.subr.mxu0 %v502_v12  ;;  %v795_v11 = vld [vmem:[#allocation5 + $0x15e0] sm:$0xff]  ;;  %v598_v12 = vld [vmem:[#allocation5 + $0xfb8] sm:$0xff] }
 0x228   :  { %2368 = vmatprep.subr.mxu1 %v694_v13  ;;  %2298 = vmatpush1.msra.mxu0 %v501_v14  ;;  %v790_v13 = vld [vmem:[#allocation5 + $0x15b8] sm:$0xff]  ;;  %v597_v14 = vld [vmem:[#allocation5 + $0xfb0] sm:$0xff] }
 0x229   :  { %2369 = vmatpush1.msra.mxu1 %v693_v15  ;;  %2299 = vmatprep.subr.mxu0 %v496_v16  ;;  %v789_v15 = vld [vmem:[#allocation5 + $0x15b0] sm:$0xff]  ;;  %v592_v16 = vld [vmem:[#allocation5 + $0xf88] sm:$0xff] }
 0x22a   :  { %2370 = vmatprep.subr.mxu1 %v688_v17  ;;  %2300 = vmatpush1.msra.mxu0 %v495_v18  ;;  %v784_v17 = vld [vmem:[#allocation5 + $0x1588] sm:$0xff]  ;;  %v591_v18 = vld [vmem:[#allocation5 + $0xf80] sm:$0xff] }
 0x22b   :  { %2371 = vmatpush1.msra.mxu1 %v687_v19  ;;  %2301 = vmatprep.subr.mxu0 %v490_v20  ;;  %v783_v19 = vld [vmem:[#allocation5 + $0x1580] sm:$0xff]  ;;  %v586_v20 = vld [vmem:[#allocation5 + $0xf58] sm:$0xff] }
 0x22c   :  { %2372 = vmatprep.subr.mxu1 %v682_v21  ;;  %2302 = vmatpush1.msra.mxu0 %v489_v22  ;;  %v778_v21 = vld [vmem:[#allocation5 + $0x1558] sm:$0xff]  ;;  %v585_v22 = vld [vmem:[#allocation5 + $0xf50] sm:$0xff] }
 0x22d   :  { %2373 = vmatpush1.msra.mxu1 %v681_v23  ;;  %2303 = vmatprep.subr.mxu0 %v484_v24  ;;  %v777_v23 = vld [vmem:[#allocation5 + $0x1550] sm:$0xff]  ;;  %v580_v24 = vld [vmem:[#allocation5 + $0xf28] sm:$0xff] }
 0x22e   :  { %2374 = vmatprep.subr.mxu1 %v676_v25  ;;  %2304 = vmatpush1.msra.mxu0 %v483_v26  ;;  %v772_v25 = vld [vmem:[#allocation5 + $0x1528] sm:$0xff]  ;;  %v579_v26 = vld [vmem:[#allocation5 + $0xf20] sm:$0xff] }
 0x22f   :  { %2375 = vmatpush1.msra.mxu1 %v675_v27  ;;  %2305 = vmatprep.subr.mxu0 %v670_v28  ;;  %v771_v27 = vld [vmem:[#allocation5 + $0x1520] sm:$0xff]  ;;  %v958_v28 = vld [vmem:[#allocation5 + $0x1af8] sm:$0xff] }
 0x230   :  { %2376 = vmatprep.subr.mxu1 %v862_v29  ;;  %2306 = vmatpush2.msra.mxu0 %v669_v30  ;;  %v3026_v29 = vld [vmem:[#allocation2 + $0x28] sm:$0xff]  ;;  %v1150_v30 = vld [vmem:[#allocation5 + $0x20f8] sm:$0xff] }
 0x231   :  { %2377 = vmatpush2.msra.mxu1 %v861_v31  ;;  %2307 = vmatprep.subr.mxu0 %v664_v32  ;;  %v3027_v31 = vld [vmem:[#allocation2 + $0x20] sm:$0xff]  ;;  %v957_v32 = vld [vmem:[#allocation5 + $0x1af0] sm:$0xff] }
 0x232   :  { %2378 = vmatprep.subr.mxu1 %v856_v33  ;;  %2308 = vmatpush2.msra.mxu0 %v663_v34  ;;  %v1149_v33 = vld [vmem:[#allocation5 + $0x20f0] sm:$0xff]  ;;  %v3028_v34 = vld [vmem:[#allocation2 + $0x38] sm:$0xff] }
 0x233   :  { %2379 = vmatpush2.msra.mxu1 %v855_v35  ;;  %2309 = vmatprep.subr.mxu0 %v658_v36  ;;  %v952_v35 = vld [vmem:[#allocation5 + $0x1ac8] sm:$0xff] }
 0x234   :  { %2380 = vmatprep.subr.mxu1 %v850_v37  ;;  %2310 = vmatpush2.msra.mxu0 %v657_v38  ;;  %v1144_v36 = vld [vmem:[#allocation5 + $0x20c8] sm:$0xff]  ;;  %v3029_v37 = vld [vmem:[#allocation2 + $0x30] sm:$0xff]  ;;  %v951_v38 = vld [vmem:[#allocation5 + $0x1ac0] sm:$0xff] }
 0x235   :  { %2381 = vmatpush2.msra.mxu1 %v849_v39  ;;  %2311 = vmatprep.subr.mxu0 %v652_v40  ;;  %v1143_v39 = vld [vmem:[#allocation5 + $0x20c0] sm:$0xff]  ;;  %v946_v40 = vld [vmem:[#allocation5 + $0x1a98] sm:$0xff] }
 0x236   :  { %2382 = vmatprep.subr.mxu1 %v844_v41  ;;  %2312 = vmatpush2.msra.mxu0 %v651_v42  ;;  %v1138_v41 = vld [vmem:[#allocation5 + $0x2098] sm:$0xff]  ;;  %v945_v42 = vld [vmem:[#allocation5 + $0x1a90] sm:$0xff] }
 0x237   :  { %2383 = vmatpush2.msra.mxu1 %v843_v43  ;;  %2313 = vmatprep.subr.mxu0 %v646_v44  ;;  %v1137_v43 = vld [vmem:[#allocation5 + $0x2090] sm:$0xff]  ;;  %v940_v44 = vld [vmem:[#allocation5 + $0x1a68] sm:$0xff] }
 0x238   :  { %2384 = vmatprep.subr.mxu1 %v838_v45  ;;  %2314 = vmatpush2.msra.mxu0 %v645_v46  ;;  %v1132_v45 = vld [vmem:[#allocation5 + $0x2068] sm:$0xff]  ;;  %v939_v46 = vld [vmem:[#allocation5 + $0x1a60] sm:$0xff] }
 0x239   :  { %2385 = vmatpush2.msra.mxu1 %v837_v47  ;;  %2315 = vmatprep.subr.mxu0 %v640_v48  ;;  %v1131_v47 = vld [vmem:[#allocation5 + $0x2060] sm:$0xff]  ;;  %v934_v48 = vld [vmem:[#allocation5 + $0x1a38] sm:$0xff] }
 0x23a   :  { %2386 = vmatprep.subr.mxu1 %v832_v49  ;;  %2316 = vmatpush2.msra.mxu0 %v639_v50  ;;  %v1126_v49 = vld [vmem:[#allocation5 + $0x2038] sm:$0xff]  ;;  %v933_v50 = vld [vmem:[#allocation5 + $0x1a30] sm:$0xff] }
 0x23b   :  { %2387 = vmatpush2.msra.mxu1 %v831_v51  ;;  %2317 = vmatprep.subr.mxu0 %v634_v52  ;;  %v1125_v51 = vld [vmem:[#allocation5 + $0x2030] sm:$0xff]  ;;  %v928_v52 = vld [vmem:[#allocation5 + $0x1a08] sm:$0xff] }
 0x23c   :  { %2388 = vmatprep.subr.mxu1 %v826_v53  ;;  %2318 = vmatpush2.msra.mxu0 %v633_v54  ;;  %v1120_v53 = vld [vmem:[#allocation5 + $0x2008] sm:$0xff]  ;;  %v927_v54 = vld [vmem:[#allocation5 + $0x1a00] sm:$0xff] }
 0x23d   :  { %2389 = vmatpush2.msra.mxu1 %v825_v55  ;;  %2319 = vmatprep.subr.mxu0 %v628_v56  ;;  %v1119_v55 = vld [vmem:[#allocation5 + $0x2000] sm:$0xff]  ;;  %v922_v56 = vld [vmem:[#allocation5 + $0x19d8] sm:$0xff] }
 0x23e   :  { %2390 = vmatprep.subr.mxu1 %v820_v57  ;;  %2320 = vmatpush2.msra.mxu0 %v627_v58  ;;  %v1114_v57 = vld [vmem:[#allocation5 + $0x1fd8] sm:$0xff]  ;;  %v921_v58 = vld [vmem:[#allocation5 + $0x19d0] sm:$0xff] }
 0x23f   :  { %2391 = vmatpush2.msra.mxu1 %v819_v59  ;;  %2321 = vmatprep.subr.mxu0 %v622_v60  ;;  %v1113_v59 = vld [vmem:[#allocation5 + $0x1fd0] sm:$0xff]  ;;  %v916_v60 = vld [vmem:[#allocation5 + $0x19a8] sm:$0xff] }
 0x240   :  { %2392 = vmatprep.subr.mxu1 %v814_v61  ;;  %2322 = vmatpush2.msra.mxu0 %v621_v62  ;;  %v1108_v61 = vld [vmem:[#allocation5 + $0x1fa8] sm:$0xff]  ;;  %v915_v62 = vld [vmem:[#allocation5 + $0x19a0] sm:$0xff] }
 0x241   :  { %2393 = vmatpush2.msra.mxu1 %v813_v63  ;;  %2323 = vmatprep.subr.mxu0 %v616_v0  ;;  %v1107_v63 = vld [vmem:[#allocation5 + $0x1fa0] sm:$0xff]  ;;  %v910_v0 = vld [vmem:[#allocation5 + $0x1978] sm:$0xff] }
 0x242   :  { %2394 = vmatprep.subr.mxu1 %v808_v1  ;;  %2324 = vmatpush2.msra.mxu0 %v615_v2  ;;  %v1102_v1 = vld [vmem:[#allocation5 + $0x1f78] sm:$0xff]  ;;  %v909_v2 = vld [vmem:[#allocation5 + $0x1970] sm:$0xff] }
 0x243   :  { %2395 = vmatpush2.msra.mxu1 %v807_v3  ;;  %2325 = vmatprep.subr.mxu0 %v610_v4  ;;  %v1101_v3 = vld [vmem:[#allocation5 + $0x1f70] sm:$0xff]  ;;  %v904_v4 = vld [vmem:[#allocation5 + $0x1948] sm:$0xff] }
 0x244   :  { %2396 = vmatprep.subr.mxu1 %v802_v5  ;;  %2326 = vmatpush2.msra.mxu0 %v609_v6  ;;  %v1096_v5 = vld [vmem:[#allocation5 + $0x1f48] sm:$0xff]  ;;  %v903_v6 = vld [vmem:[#allocation5 + $0x1940] sm:$0xff] }
 0x245   :  { %2397 = vmatpush2.msra.mxu1 %v801_v7  ;;  %2327 = vmatprep.subr.mxu0 %v604_v8  ;;  %v1095_v7 = vld [vmem:[#allocation5 + $0x1f40] sm:$0xff]  ;;  %v898_v8 = vld [vmem:[#allocation5 + $0x1918] sm:$0xff] }
 0x246   :  { %2398 = vmatprep.subr.mxu1 %v796_v9  ;;  %2328 = vmatpush2.msra.mxu0 %v603_v10  ;;  %v1090_v9 = vld [vmem:[#allocation5 + $0x1f18] sm:$0xff]  ;;  %v897_v10 = vld [vmem:[#allocation5 + $0x1910] sm:$0xff] }
 0x247   :  { %2399 = vmatpush2.msra.mxu1 %v795_v11  ;;  %2329 = vmatprep.subr.mxu0 %v598_v12  ;;  %v1089_v11 = vld [vmem:[#allocation5 + $0x1f10] sm:$0xff]  ;;  %v892_v12 = vld [vmem:[#allocation5 + $0x18e8] sm:$0xff] }
 0x248   :  { %2400 = vmatprep.subr.mxu1 %v790_v13  ;;  %2330 = vmatpush2.msra.mxu0 %v597_v14  ;;  %v1084_v13 = vld [vmem:[#allocation5 + $0x1ee8] sm:$0xff]  ;;  %v891_v14 = vld [vmem:[#allocation5 + $0x18e0] sm:$0xff] }
 0x249   :  { %2401 = vmatpush2.msra.mxu1 %v789_v15  ;;  %2331 = vmatprep.subr.mxu0 %v592_v16  ;;  %v1083_v15 = vld [vmem:[#allocation5 + $0x1ee0] sm:$0xff]  ;;  %v886_v16 = vld [vmem:[#allocation5 + $0x18b8] sm:$0xff] }
 0x24a   :  { %2402 = vmatprep.subr.mxu1 %v784_v17  ;;  %2332 = vmatpush2.msra.mxu0 %v591_v18  ;;  %v1078_v17 = vld [vmem:[#allocation5 + $0x1eb8] sm:$0xff]  ;;  %v885_v18 = vld [vmem:[#allocation5 + $0x18b0] sm:$0xff] }
 0x24b   :  { %2403 = vmatpush2.msra.mxu1 %v783_v19  ;;  %2333 = vmatprep.subr.mxu0 %v586_v20  ;;  %v1077_v19 = vld [vmem:[#allocation5 + $0x1eb0] sm:$0xff]  ;;  %v880_v20 = vld [vmem:[#allocation5 + $0x1888] sm:$0xff] }
 0x24c   :  { %2404 = vmatprep.subr.mxu1 %v778_v21  ;;  %2334 = vmatpush2.msra.mxu0 %v585_v22  ;;  %v1072_v21 = vld [vmem:[#allocation5 + $0x1e88] sm:$0xff]  ;;  %v879_v22 = vld [vmem:[#allocation5 + $0x1880] sm:$0xff] }
 0x24d   :  { %2405 = vmatpush2.msra.mxu1 %v777_v23  ;;  %2335 = vmatprep.subr.mxu0 %v580_v24  ;;  %v1071_v23 = vld [vmem:[#allocation5 + $0x1e80] sm:$0xff]  ;;  %v874_v24 = vld [vmem:[#allocation5 + $0x1858] sm:$0xff] }
 0x24e   :  { %2406 = vmatprep.subr.mxu1 %v772_v25  ;;  %2336 = vmatpush2.msra.mxu0 %v579_v26  ;;  %v1066_v25 = vld [vmem:[#allocation5 + $0x1e58] sm:$0xff]  ;;  %v873_v26 = vld [vmem:[#allocation5 + $0x1850] sm:$0xff] }
 0x24f   :  { %2337 = vmatprep.mubr.f32.mxu0 %v3026_v29  ;;  %2407 = vmatpush2.msra.mxu1 %v771_v27  ;;  %v1065_v27 = vld [vmem:[#allocation5 + $0x1e50] sm:$0xff]  ;;  %v868_v29 = vld [vmem:[#allocation5 + $0x1828] sm:$0xff] }
 0x250   :  { %2338 = vmatmul.mubr.f32.vlgmr.msra.gmra.mxu0 %v3027_v31  ;;  %2408 = vmatprep.mubr.f32.mxu1 %v3028_v34  ;;  %v867_v31 = vld [vmem:[#allocation5 + $0x1820] sm:$0xff]  ;;  %v1054_v34 = vld [vmem:[#allocation5 + $0x1df8] sm:$0xff] }
 0x251   :  { %2415 = vmatprep.subr.mxu0 %v958_v28  ;;  %2486 = vmatprep.subr.mxu1 %v1150_v30  ;;  %v3217_v28 = vpop.f32.mrf.mxu0  ;;  %v1060_v30 = vld [vmem:[#allocation5 + $0x1e28] sm:$0xff] }
 0x252   :  { %2409 = vmatmul.mubr.f32.vlgmr.msra.gmra.mxu1 %v3029_v37  ;;  %2416 = vmatpush1.msra.mxu0 %v957_v32  ;;  %v1059_v32 = vld [vmem:[#allocation5 + $0x1e20] sm:$0xff]  ;;  %v1245_v37 = vld [vmem:[#allocation5 + $0x23f0] sm:$0xff] }
 0x253   :  { %2487 = vmatpush1.msra.mxu1 %v1149_v33  ;;  %2417 = vmatprep.subr.mxu0 %v952_v35  ;;  %v1249_v33 = vlaneseq  ;;  %v1246_v35 = vld [vmem:[#allocation5 + $0x23f8] sm:$0xff] }
 0x254   :  { %2488 = vmatprep.subr.mxu1 %v1144_v36  ;;  %2418 = vmatpush1.msra.mxu0 %v951_v38  ;;  %v1053_v36 = vld [vmem:[#allocation5 + $0x1df0] sm:$0xff]  ;;  %v3219_v38 = vpop.f32.mrf.mxu1 }
 0x255   :  { %2489 = vmatpush1.msra.mxu1 %v1143_v39  ;;  %2419 = vmatprep.subr.mxu0 %v946_v40  ;;  %v3221_v39 = vpop.f32.mrf.mxu0  ;;  %v1048_v40 = vld [vmem:[#allocation5 + $0x1dc8] sm:$0xff] }
 0x256   :  { %2490 = vmatprep.subr.mxu1 %v1138_v41  ;;  %2420 = vmatpush1.msra.mxu0 %v945_v42  ;;  %v1240_v41 = vld [vmem:[#allocation5 + $0x23c8] sm:$0xff]  ;;  %v1047_v42 = vld [vmem:[#allocation5 + $0x1dc0] sm:$0xff] }
 0x257   :  { %2491 = vmatpush1.msra.mxu1 %v1137_v43  ;;  %2421 = vmatprep.subr.mxu0 %v940_v44  ;;  %v1239_v43 = vld [vmem:[#allocation5 + $0x23c0] sm:$0xff]  ;;  %v3223_v44 = vshrl.u32 %v1249_v33, 7  ;;  %v994_v33 = vld [vmem:[#allocation5 + $0x1c18] sm:$0xff] }
 0x258   :  { %2492 = vmatprep.subr.mxu1 %v1132_v45  ;;  %2422 = vmatpush1.msra.mxu0 %v939_v46  ;;  %v3225_v45 = vpop.f32.mrf.mxu0  ;;  %v1042_v46 = vld [vmem:[#allocation5 + $0x1d98] sm:$0xff] }
 0x259   :  { %2493 = vmatpush1.msra.mxu1 %v1131_v47  ;;  %2423 = vmatprep.subr.mxu0 %v934_v48  ;;  %v1234_v47 = vld [vmem:[#allocation5 + $0x2398] sm:$0xff]  ;;  %v1041_v48 = vld [vmem:[#allocation5 + $0x1d90] sm:$0xff] }
 0x25a   :  { %2494 = vmatprep.subr.mxu1 %v1126_v49  ;;  %2424 = vmatpush1.msra.mxu0 %v933_v50  ;;  %v1233_v49 = vld [vmem:[#allocation5 + $0x2390] sm:$0xff]  ;;  %v3227_v50 = vpop.f32.mrf.mxu1 }
 0x25b   :  { %2495 = vmatpush1.msra.mxu1 %v1125_v51  ;;  %2425 = vmatprep.subr.mxu0 %v928_v52  ;;  %v1036_v51 = vld [vmem:[#allocation5 + $0x1d68] sm:$0xff] }
 0x25c   :  { %2496 = vmatprep.subr.mxu1 %v1120_v53  ;;  %2426 = vmatpush1.msra.mxu0 %v927_v54  ;;  %v1228_v52 = vld [vmem:[#allocation5 + $0x2368] sm:$0xff]  ;;  %v1035_v53 = vld [vmem:[#allocation5 + $0x1d60] sm:$0xff] }
 0x25d   :  { %2497 = vmatpush1.msra.mxu1 %v1119_v55  ;;  %2427 = vmatprep.subr.mxu0 %v922_v56  ;;  %v1227_v54 = vld [vmem:[#allocation5 + $0x2360] sm:$0xff]  ;;  %v1255_v55 = vsub.s32 1, %v3223_v44  ;;  %v3230_v56 = vpop.f32.mrf.mxu1 }
 0x25e   :  { %2498 = vmatprep.subr.mxu1 %v1114_v57  ;;  %2428 = vmatpush1.msra.mxu0 %v921_v58  ;;  %v3232_v57 = vpop.f32.mrf.mxu0  ;;  %v1030_v58 = vld [vmem:[#allocation5 + $0x1d38] sm:$0xff] }
 0x25f   :  { %2499 = vmatpush1.msra.mxu1 %v1113_v59  ;;  %2429 = vmatprep.subr.mxu0 %v916_v60  ;;  %v1222_v59 = vld [vmem:[#allocation5 + $0x2338] sm:$0xff]  ;;  %v3234_v60 = vld [vmem:[#allocation7] sm:$0x3f] }
 0x260   :  { %2500 = vmatprep.subr.mxu1 %v1108_v61  ;;  %2430 = vmatpush1.msra.mxu0 %v915_v62  ;;  %v1029_v61 = vld [vmem:[#allocation5 + $0x1d30] sm:$0xff] }
 0x261   :  { %2501 = vmatpush1.msra.mxu1 %v1107_v63  ;;  %2431 = vmatprep.subr.mxu0 %v910_v0  ;;  %v1221_v62 = vld [vmem:[#allocation5 + $0x2330] sm:$0xff]  ;;  %v3236_v63 = vpop.f32.mrf.mxu0  ;;  %v1024_v0 = vld [vmem:[#allocation5 + $0x1d08] sm:$0xff] }
 0x262   :  { %2502 = vmatprep.subr.mxu1 %v1102_v1  ;;  %2432 = vmatpush1.msra.mxu0 %v909_v2  ;;  %v1216_v1 = vld [vmem:[#allocation5 + $0x2308] sm:$0xff]  ;;  %v1023_v2 = vld [vmem:[#allocation5 + $0x1d00] sm:$0xff] }
 0x263   :  { %2503 = vmatpush1.msra.mxu1 %v1101_v3  ;;  %2433 = vmatprep.subr.mxu0 %v904_v4  ;;  %v1215_v3 = vld [vmem:[#allocation5 + $0x2300] sm:$0xff]  ;;  %v1256_v4 = vrot.slane %v3234_v60, %v1255_v55  ;;  %v976_v55 = vld [vmem:[#allocation5 + $0x1b88] sm:$0xff] }
 0x264   :  { %2504 = vmatprep.subr.mxu1 %v1096_v5  ;;  %2434 = vmatpush1.msra.mxu0 %v903_v6  ;;  %v3239_v5 = vpop.f32.mrf.mxu1  ;;  %v1018_v6 = vld [vmem:[#allocation5 + $0x1cd8] sm:$0xff] }
 0x265   :  { %2505 = vmatpush1.msra.mxu1 %v1095_v7  ;;  %2435 = vmatprep.subr.mxu0 %v898_v8  ;;  %v1210_v7 = vld [vmem:[#allocation5 + $0x22d8] sm:$0xff]  ;;  %v1017_v8 = vld [vmem:[#allocation5 + $0x1cd0] sm:$0xff] }
 0x266   :  { %2506 = vmatprep.subr.mxu1 %v1090_v9  ;;  %2436 = vmatpush1.msra.mxu0 %v897_v10  ;;  %v1209_v9 = vld [vmem:[#allocation5 + $0x22d0] sm:$0xff]  ;;  %v3241_v10 = vpop.f32.mrf.mxu1 }
 0x267   :  { %2507 = vmatpush1.msra.mxu1 %v1089_v11  ;;  %2437 = vmatprep.subr.mxu0 %v892_v12  ;;  %v3243_v11 = vpop.f32.mrf.mxu0  ;;  %v1012_v12 = vld [vmem:[#allocation5 + $0x1ca8] sm:$0xff] }
 0x268   :  { %2508 = vmatprep.subr.mxu1 %v1084_v13  ;;  %2438 = vmatpush1.msra.mxu0 %v891_v14  ;;  %v1204_v13 = vld [vmem:[#allocation5 + $0x22a8] sm:$0xff]  ;;  %v1263_v14 = vsub.s32 3, %v3223_v44 }
 0x269   :  { %2509 = vmatpush1.msra.mxu1 %v1083_v15  ;;  %2439 = vmatprep.subr.mxu0 %v886_v16  ;;  %v1011_v15 = vld [vmem:[#allocation5 + $0x1ca0] sm:$0xff] }
 0x26a   :  { %2510 = vmatprep.subr.mxu1 %v1078_v17  ;;  %2440 = vmatpush1.msra.mxu0 %v885_v18  ;;  %v1203_v16 = vld [vmem:[#allocation5 + $0x22a0] sm:$0xff]  ;;  %v1348_v17 = vadd.f32 %v3221_v39, %v1256_v4  ;;  %v3247_v18 = vpop.f32.mrf.mxu0  ;;  %v1161_v4 = vld [vmem:[#allocation5 + $0x2150] sm:$0xff] }
 0x26b   :  { %2511 = vmatpush1.msra.mxu1 %v1077_v19  ;;  %2441 = vmatprep.subr.mxu0 %v880_v20  ;;  %v1006_v19 = vld [vmem:[#allocation5 + $0x1c78] sm:$0xff] }
 0x26c   :  { %2512 = vmatprep.subr.mxu1 %v1072_v21  ;;  %2442 = vmatpush1.msra.mxu0 %v879_v22  ;;  %v1198_v20 = vld [vmem:[#allocation5 + $0x2278] sm:$0xff]  ;;  %v1005_v21 = vld [vmem:[#allocation5 + $0x1c70] sm:$0xff] }
 0x26d   :  { %2513 = vmatpush1.msra.mxu1 %v1071_v23  ;;  %2443 = vmatprep.subr.mxu0 %v874_v24  ;;  %v1197_v22 = vld [vmem:[#allocation5 + $0x2270] sm:$0xff]  ;;  %v3249_v23 = vpop.f32.mrf.mxu1  ;;  %v1000_v24 = vld [vmem:[#allocation5 + $0x1c48] sm:$0xff] }
 0x26e   :  { %2514 = vmatprep.subr.mxu1 %v1066_v25  ;;  %2444 = vmatpush1.msra.mxu0 %v873_v26  ;;  %v1192_v25 = vld [vmem:[#allocation5 + $0x2248] sm:$0xff]  ;;  %v1264_v26 = vrot.slane %v3234_v60, %v1263_v14 }
 0x26f   :  { %2515 = vmatpush1.msra.mxu1 %v1065_v27  ;;  %2445 = vmatprep.subr.mxu0 %v868_v29  ;;  %v999_v27 = vld [vmem:[#allocation5 + $0x1c40] sm:$0xff] }
 0x270   :  { %2516 = vmatprep.subr.mxu1 %v1060_v30  ;;  %2446 = vmatpush1.msra.mxu0 %v867_v31  ;;  %v1191_v29 = vld [vmem:[#allocation5 + $0x2240] sm:$0xff]  ;;  %v1419_v30 = vadd.f32 %v3227_v50, %v1348_v17  ;;  %v3253_v31 = vpop.f32.mrf.mxu1  ;;  %v981_v50 = vld [vmem:[#allocation5 + $0x1bb0] sm:$0xff] }
 0x271   :  { %2517 = vmatpush1.msra.mxu1 %v1059_v32  ;;  %2447 = vmatprep.subr.mxu0 %v1054_v34  ;;  %v1773_v32 = vpop.f32.mrf.mxu0  ;;  %v1186_v34 = vld [vmem:[#allocation5 + $0x2218] sm:$0xff] }
 0x272   :  { %2518 = vmatprep.subr.mxu1 %v1246_v35  ;;  %2448 = vmatpush2.msra.mxu0 %v1053_v36  ;;  %v993_v35 = vld [vmem:[#allocation5 + $0x1c10] sm:$0xff]  ;;  %v2594_v17 = vld [vmem:[#allocation8 + $0xf8] sm:$0xff] }
 0x273   :  { %2519 = vmatpush2.msra.mxu1 %v1245_v37  ;;  %2449 = vmatprep.subr.mxu0 %v1048_v40  ;;  %v1185_v36 = vld [vmem:[#allocation5 + $0x2210] sm:$0xff]  ;;  %v1490_v37 = vadd.f32 %v3232_v57, %v1419_v30  ;;  %v3256_v39 = vpop.f32.mrf.mxu0  ;;  %v988_v40 = vld [vmem:[#allocation5 + $0x1be8] sm:$0xff] }
 0x274   :  { %2520 = vmatprep.subr.mxu1 %v1240_v41  ;;  %2450 = vmatpush2.msra.mxu0 %v1047_v42  ;;  %v1180_v41 = vld [vmem:[#allocation5 + $0x21e8] sm:$0xff]  ;;  %v1774_v42 = vadd.f32 %v1773_v32, %v1264_v26  ;;  %v2610_v26 = vld [vmem:[#allocation8 + $0x178] sm:$0xff]  ;;  %v2625_v30 = vld [vmem:[#allocation8 + $0x1f0] sm:$0xff] }
 0x275   :  { %2521 = vmatpush2.msra.mxu1 %v1239_v43  ;;  %2451 = vmatprep.subr.mxu0 %v1042_v46  ;;  %v987_v43 = vld [vmem:[#allocation5 + $0x1be0] sm:$0xff]  ;;  %v1168_v57 = vld [vmem:[#allocation5 + $0x2188] sm:$0xff]  ;;  %v2577_v32 = vld [vmem:[#allocation8 + $0x70] sm:$0xff] }
 0x276   :  { %2522 = vmatprep.subr.mxu1 %v1234_v47  ;;  %2452 = vmatpush2.msra.mxu0 %v1041_v48  ;;  %v1179_v46 = vld [vmem:[#allocation5 + $0x21e0] sm:$0xff]  ;;  %v1844_v47 = vpop.f32.mrf.mxu1  ;;  %v982_v48 = vld [vmem:[#allocation5 + $0x1bb8] sm:$0xff] }
 0x277   :  { %2523 = vmatpush2.msra.mxu1 %v1233_v49  ;;  %2453 = vmatprep.subr.mxu0 %v1036_v51  ;;  %v1174_v49 = vld [vmem:[#allocation5 + $0x21b8] sm:$0xff]  ;;  %v1173_v51 = vld [vmem:[#allocation5 + $0x21b0] sm:$0xff] }
 0x278   :  { %2524 = vmatprep.subr.mxu1 %v1228_v52  ;;  %2454 = vmatpush2.msra.mxu0 %v1035_v53  ;;  %v1561_v52 = vadd.f32 %v3239_v5, %v1490_v37  ;;  %v3259_v53 = vpop.f32.mrf.mxu1  ;;  %v2576_v37 = vld [vmem:[#allocation8 + $0x68] sm:$0xff] }
 0x279   :  { %2525 = vmatpush2.msra.mxu1 %v1227_v54  ;;  %2455 = vmatprep.subr.mxu0 %v1030_v58  ;;  %v1915_v54 = vpop.f32.mrf.mxu0  ;;  %v1845_v58 = vadd.f32 %v1844_v47, %v1774_v42  ;;  %v2608_v42 = vld [vmem:[#allocation8 + $0x168] sm:$0xff]  ;;  %v2575_v47 = vld [vmem:[#allocation8 + $0x60] sm:$0xff] }
 0x27a   :  { %2526 = vmatprep.subr.mxu1 %v1222_v59  ;;  %2456 = vmatpush2.msra.mxu0 %v1029_v61  ;;  %v975_v59 = vld [vmem:[#allocation5 + $0x1b80] sm:$0xff] }
 0x27b   :  { %2527 = vmatpush2.msra.mxu1 %v1221_v62  ;;  %2457 = vmatprep.subr.mxu0 %v1024_v0  ;;  %v1167_v61 = vld [vmem:[#allocation5 + $0x2180] sm:$0xff]  ;;  %v1632_v62 = vadd.f32 %v3243_v11, %v1561_v52  ;;  %v970_v0 = vld [vmem:[#allocation5 + $0x1b58] sm:$0xff] }
 0x27c   :  { %2528 = vmatprep.subr.mxu1 %v1216_v1  ;;  %2458 = vmatpush2.msra.mxu0 %v1023_v2  ;;  %v1162_v1 = vld [vmem:[#allocation5 + $0x2158] sm:$0xff]  ;;  %v1916_v2 = vadd.f32 %v1915_v54, %v1845_v58 }
 0x27d   :  { %2529 = vmatpush2.msra.mxu1 %v1215_v3  ;;  %2459 = vmatprep.subr.mxu0 %v1018_v6  ;;  %v969_v3 = vld [vmem:[#allocation5 + $0x1b50] sm:$0xff]  ;;  %v1986_v6 = vpop.f32.mrf.mxu1  ;;  %v1703_v11 = vadd.f32 %v3249_v23, %v1632_v62  ;;  %v2574_v52 = vld [vmem:[#allocation8 + $0x58] sm:$0xff] }
 0x27e   :  { %2530 = vmatprep.subr.mxu1 %v1210_v7  ;;  %2460 = vmatpush2.msra.mxu0 %v1017_v8  ;;  %v964_v7 = vld [vmem:[#allocation5 + $0x1b28] sm:$0xff]  ;;  %v2589_v58 = vld [vmem:[#allocation8 + $0xd0] sm:$0xff] }
 0x27f   :  { %2531 = vmatpush2.msra.mxu1 %v1209_v9  ;;  %2461 = vmatprep.subr.mxu0 %v1012_v12  ;;  %v1156_v8 = vld [vmem:[#allocation5 + $0x2128] sm:$0xff]  ;;  %v963_v9 = vld [vmem:[#allocation5 + $0x1b20] sm:$0xff]  ;;  %v2558_v23 = vmax.f32 %v1703_v11, 0.0  ;;  %v2605_v62 = vld [vmem:[#allocation8 + $0x150] sm:$0xff] }
 0x280   :  { %2532 = vmatprep.subr.mxu1 %v1204_v13  ;;  %2462 = vmatpush2.msra.mxu0 %v1011_v15  ;;  %v1155_v12 = vld [vmem:[#allocation5 + $0x2120] sm:$0xff]  ;;  %v1987_v15 = vadd.f32 %v1986_v6, %v1916_v2  ;;  %v2604_v6 = vld [vmem:[#allocation8 + $0x148] sm:$0xff] }
 0x281   :  { %2533 = vmatpush2.msra.mxu1 %v1203_v16  ;;  %2463 = vmatprep.subr.mxu0 %v1006_v19  ;;  %v3030_v16 = vld [vmem:[#allocation2 + $0x48] sm:$0xff]  ;;  %v2626_v19 = vld [vmem:[#allocation8 + $0x1f8] sm:$0xff] }
 0x282   :  { %2534 = vmatprep.subr.mxu1 %v1198_v20  ;;  %2464 = vmatpush2.msra.mxu0 %v1005_v21  ;;  %v3031_v20 = vld [vmem:[#allocation2 + $0x58] sm:$0xff]  ;;  %v2603_v11 = vld [vmem:[#allocation8 + $0x140] sm:$0xff] }
 0x283   :  { %2535 = vmatpush2.msra.mxu1 %v1197_v22  ;;  %2465 = vmatprep.subr.mxu0 %v1000_v24  ;;  %v2578_v21 = vld [vmem:[#allocation8 + $0x78] sm:$0xff] }
 0x284   :  { %2536 = vmatprep.subr.mxu1 %v1192_v25  ;;  %2466 = vmatpush2.msra.mxu0 %v999_v27  ;;  %v3032_v24 = vld [vmem:[#allocation2 + $0x40] sm:$0xff]  ;;  %v3033_v25 = vld [vmem:[#allocation2 + $0x50] sm:$0xff] }
 0x285   :  { %2537 = vmatpush2.msra.mxu1 %v1191_v29  ;;  %2467 = vmatprep.subr.mxu0 %v994_v33  ;;  %v2593_v27 = vld [vmem:[#allocation8 + $0xf0] sm:$0xff] }
 0x286   :  { %2538 = vmatprep.subr.mxu1 %v1186_v34  ;;  %2468 = vmatpush2.msra.mxu0 %v993_v35  ;;  %v2609_v33 = vld [vmem:[#allocation8 + $0x170] sm:$0xff]  ;;  %v2592_v34 = vld [vmem:[#allocation8 + $0xe8] sm:$0xff] }
 0x287   :  { %2539 = vmatpush2.msra.mxu1 %v1185_v36  ;;  %2469 = vmatprep.subr.mxu0 %v988_v40  ;;  %v2624_v36 = vld [vmem:[#allocation8 + $0x1e8] sm:$0xff]  ;;  %v1251_v40 = vsub.s32 0, %v3223_v44 }
 0x288   :  { %2540 = vmatprep.subr.mxu1 %v1180_v41  ;;  %2470 = vmatpush2.msra.mxu0 %v987_v43  ;;  %v1259_v41 = vsub.s32 2, %v3223_v44  ;;  %v2591_v43 = vld [vmem:[#allocation8 + $0xe0] sm:$0xff] }
 0x289   :  { %2541 = vmatpush2.msra.mxu1 %v1179_v46  ;;  %2471 = vmatprep.subr.mxu0 %v982_v48  ;;  %v2623_v46 = vld [vmem:[#allocation8 + $0x1e0] sm:$0xff]  ;;  %v1252_v54 = vrot.slane %v3234_v60, %v1251_v40  ;;  %v2565_v40 = vld [vmem:[#allocation8 + $0x10] sm:$0xff] }
 0x28a   :  { %2542 = vmatprep.subr.mxu1 %v1174_v49  ;;  %2472 = vmatpush2.msra.mxu0 %v981_v50  ;;  %v2607_v48 = vld [vmem:[#allocation8 + $0x160] sm:$0xff]  ;;  %v2590_v49 = vld [vmem:[#allocation8 + $0xd8] sm:$0xff] }
 0x28b   :  { %2543 = vmatpush2.msra.mxu1 %v1173_v51  ;;  %2473 = vmatprep.subr.mxu0 %v976_v55  ;;  %v2622_v51 = vld [vmem:[#allocation8 + $0x1d8] sm:$0xff]  ;;  %v1260_v55 = vrot.slane %v3234_v60, %v1259_v41  ;;  %v1346_v2 = vadd.f32 %v3217_v28, %v1252_v54  ;;  %v2597_v41 = vld [vmem:[#allocation8 + $0x110] sm:$0xff] }
 0x28c   :  { %2544 = vmatprep.subr.mxu1 %v1168_v57  ;;  %v3262_v5 = vpop.f32.mrf.mxu0  ;;  %2474 = vmatpush2.msra.mxu0 %v975_v59  ;;  %v2606_v57 = vld [vmem:[#allocation8 + $0x158] sm:$0xff]  ;;  %v2621_v59 = vld [vmem:[#allocation8 + $0x1d0] sm:$0xff] }
 0x28d   :  { %2545 = vmatpush2.msra.mxu1 %v1167_v61  ;;  %2475 = vmatprep.subr.mxu0 %v970_v0  ;;  %v2573_v61 = vld [vmem:[#allocation8 + $0x50] sm:$0xff]  ;;  %v2588_v0 = vld [vmem:[#allocation8 + $0xc8] sm:$0xff]  ;;  %v1417_v28 = vadd.f32 %v3219_v38, %v1346_v2 }
 0x28e   :  { %2546 = vmatprep.subr.mxu1 %v1162_v1  ;;  %2476 = vmatpush2.msra.mxu0 %v969_v3  ;;  %v3265_v13 = vpop.f32.mrf.mxu1  ;;  %v2057_v14 = vpop.f32.mrf.mxu0  ;;  %v2620_v1 = vld [vmem:[#allocation8 + $0x1c8] sm:$0xff]  ;;  %v1772_v3 = vadd.f32 %v3247_v18, %v1260_v55  ;;  %v2657_v55 = vld [vmem:[#allocation8 + $0x2f0] sm:$0xff] }
 0x28f   :  { %2547 = vmatpush2.msra.mxu1 %v1161_v4  ;;  %2477 = vmatprep.subr.mxu0 %v964_v7  ;;  %v2058_v22 = vadd.f32 %v2057_v14, %v1987_v15  ;;  %v2572_v4 = vld [vmem:[#allocation8 + $0x48] sm:$0xff]  ;;  %v2587_v7 = vld [vmem:[#allocation8 + $0xc0] sm:$0xff]  ;;  %v2618_v14 = vld [vmem:[#allocation8 + $0x1b8] sm:$0xff] }
 0x290   :  { %2548 = vmatprep.subr.mxu1 %v1156_v8  ;;  %2478 = vmatpush2.msra.mxu0 %v963_v9  ;;  %v2128_v29 = vpop.f32.mrf.mxu1  ;;  %v2619_v8 = vld [vmem:[#allocation8 + $0x1c0] sm:$0xff]  ;;  %v1843_v18 = vadd.f32 %v3253_v31, %v1772_v3  ;;  %v2570_v15 = vld [vmem:[#allocation8 + $0x38] sm:$0xff]  ;;  %v2584_v38 = vld [vmem:[#allocation8 + $0xa8] sm:$0xff] }
 0x291   :  { %2479 = vmatprep.mubr.f32.mxu0 %v3030_v16  ;;  %2549 = vmatpush2.msra.mxu1 %v1155_v12  ;;  %v2129_v35 = vadd.f32 %v2128_v29, %v2058_v22  ;;  %v2571_v9 = vld [vmem:[#allocation8 + $0x40] sm:$0xff]  ;;  %v2586_v12 = vld [vmem:[#allocation8 + $0xb8] sm:$0xff]  ;;  %v2569_v22 = vld [vmem:[#allocation8 + $0x30] sm:$0xff] }
 0x292   :  { %2550 = vmatprep.mubr.f32.mxu1 %v3031_v20  ;;  %2480 = vmatmul.mubr.f32.vlgmr.msra.gmra.mxu0 %v3032_v24  ;;  %v2602_v16 = vld [vmem:[#allocation8 + $0x138] sm:$0xff]  ;;  %v1488_v20 = vadd.f32 %v3225_v45, %v1417_v28  ;;  %v2616_v31 = vld [vmem:[#allocation8 + $0x1a8] sm:$0xff]  ;;  %v2567_v29 = vld [vmem:[#allocation8 + $0x20] sm:$0xff] }
 0x293   :  { %2551 = vmatmul.mubr.f32.vlgmr.msra.gmra.mxu1 %v3033_v25  ;;  %2895 = vmatprep.subr.mxu0 %v2594_v17  ;;  %v2560_v50 = vmax.f32 %v2129_v35, 0.0  ;;  %v2585_v17 = vld [vmem:[#allocation8 + $0xb0] sm:$0xff]  ;;  %v2568_v24 = vld [vmem:[#allocation8 + $0x28] sm:$0xff] }
 0x294   :  { %2930 = vmatprep.subr.mxu1 %v2626_v19  ;;  %2896 = vmatpush3.msra.mxu0 %v2578_v21  ;;  %v2617_v19 = vld [vmem:[#allocation8 + $0x1b0] sm:$0xff]  ;;  %v1914_v21 = vadd.f32 %v3256_v39, %v1843_v18  ;;  %v2600_v25 = vld [vmem:[#allocation8 + $0x128] sm:$0xff]  ;;  %v1559_v45 = vadd.f32 %v3230_v56, %v1488_v20 }
 0x295   :  { %2730 = vmatprep.mubr.f32.mxu0 %v2558_v23  ;;  %2931 = vmatpush3.msra.mxu1 %v2610_v26  ;;  %v2601_v23 = vld [vmem:[#allocation8 + $0x130] sm:$0xff]  ;;  %v2583_v26 = vld [vmem:[#allocation8 + $0xa0] sm:$0xff]  ;;  %v2648_v28 = vld [vmem:[#allocation8 + $0x2a8] sm:$0xff] }
 0x296   :  { %2897 = vmatprep.subr.mxu0 %v2593_v27  ;;  %2932 = vmatprep.subr.mxu1 %v2625_v30  ;;  %v2615_v27 = vld [vmem:[#allocation8 + $0x1a0] sm:$0xff]  ;;  %v1985_v39 = vadd.f32 %v3259_v53, %v1914_v21  ;;  %v2581_v56 = vld [vmem:[#allocation8 + $0x90] sm:$0xff]  ;;  %v2632_v18 = vld [vmem:[#allocation8 + $0x228] sm:$0xff] }
 0x297   :  { %2898 = vmatpush3.msra.mxu0 %v2577_v32  ;;  %2933 = vmatpush3.msra.mxu1 %v2609_v33  ;;  %v2599_v30 = vld [vmem:[#allocation8 + $0x120] sm:$0xff]  ;;  %v2582_v32 = vld [vmem:[#allocation8 + $0x98] sm:$0xff]  ;;  %v2613_v53 = vld [vmem:[#allocation8 + $0x190] sm:$0xff] }
 0x298   :  { %2899 = vmatprep.subr.mxu0 %v2592_v34  ;;  %2934 = vmatprep.subr.mxu1 %v2624_v36  ;;  %v2614_v33 = vld [vmem:[#allocation8 + $0x198] sm:$0xff]  ;;  %v1630_v34 = vadd.f32 %v3236_v63, %v1559_v45  ;;  %v2056_v35 = vadd.f32 %v3262_v5, %v1985_v39  ;;  %v2653_v2 = vld [vmem:[#allocation8 + $0x2d0] sm:$0xff] }
 0x299   :  { %2900 = vmatpush3.msra.mxu0 %v2576_v37  ;;  %2935 = vmatpush3.msra.mxu1 %v2608_v42  ;;  %v2566_v36 = vld [vmem:[#allocation8 + $0x18] sm:$0xff]  ;;  %v2580_v42 = vld [vmem:[#allocation8 + $0x88] sm:$0xff]  ;;  %v2637_v3 = vld [vmem:[#allocation8 + $0x250] sm:$0xff] }
 0x29a   :  { %2901 = vmatprep.subr.mxu0 %v2591_v43  ;;  %2936 = vmatprep.subr.mxu1 %v2623_v46  ;;  %v2598_v37 = vld [vmem:[#allocation8 + $0x118] sm:$0xff]  ;;  %v2612_v43 = vld [vmem:[#allocation8 + $0x188] sm:$0xff]  ;;  %v1701_v63 = vadd.f32 %v3241_v10, %v1630_v34  ;;  %v2127_v5 = vadd.f32 %v3265_v13, %v2056_v35  ;;  %v2645_v20 = vld [vmem:[#allocation8 + $0x290] sm:$0xff] }
 0x29b   :  { %2902 = vmatpush3.msra.mxu0 %v2575_v47  ;;  %2937 = vmatpush3.msra.mxu1 %v2607_v48  ;;  %v2564_v46 = vld [vmem:[#allocation8 + $0x8] sm:$0xff]  ;;  %v2579_v48 = vld [vmem:[#allocation8 + $0x80] sm:$0xff]  ;;  %v2658_v10 = vld [vmem:[#allocation8 + $0x2f8] sm:$0xff] }
 0x29c   :  { %2903 = vmatprep.subr.mxu0 %v2590_v49  ;;  %2938 = vmatprep.subr.mxu1 %v2622_v51  ;;  %v2596_v47 = vld [vmem:[#allocation8 + $0x108] sm:$0xff]  ;;  %v2611_v49 = vld [vmem:[#allocation8 + $0x180] sm:$0xff]  ;;  %v2559_v54 = vmax.f32 %v2127_v5, 0.0  ;;  %v2642_v13 = vld [vmem:[#allocation8 + $0x278] sm:$0xff] }
 0x29d   :  { %2904 = vmatpush3.msra.mxu0 %v2574_v52  ;;  %2939 = vmatpush3.msra.mxu1 %v2606_v57  ;;  %v2595_v51 = vld [vmem:[#allocation8 + $0x100] sm:$0xff]  ;;  %v2557_v52 = vmax.f32 %v1701_v63, 0.0  ;;  %v2641_v57 = vld [vmem:[#allocation8 + $0x270] sm:$0xff] }
 0x29e   :  { %2800 = vmatprep.mubr.f32.mxu1 %v2560_v50  ;;  %2905 = vmatprep.subr.mxu0 %v2589_v58  ;;  %v2563_v50 = vld [vmem:[#allocation8] sm:$0xff]  ;;  %v2656_v58 = vld [vmem:[#allocation8 + $0x2e8] sm:$0xff]  ;;  %v2629_v21 = vld [vmem:[#allocation8 + $0x210] sm:$0xff] }
 0x29f   :  { %2940 = vmatprep.subr.mxu1 %v2621_v59  ;;  %2906 = vmatpush3.msra.mxu0 %v2573_v61  ;;  %v2640_v59 = vld [vmem:[#allocation8 + $0x268] sm:$0xff]  ;;  %v2655_v61 = vld [vmem:[#allocation8 + $0x2e0] sm:$0xff] }
 0x2a0   :  { %2941 = vmatpush3.msra.mxu1 %v2605_v62  ;;  %2907 = vmatprep.subr.mxu0 %v2588_v0  ;;  %v2639_v62 = vld [vmem:[#allocation8 + $0x260] sm:$0xff]  ;;  %v2654_v0 = vld [vmem:[#allocation8 + $0x2d8] sm:$0xff] }
 0x2a1   :  { %2942 = vmatprep.subr.mxu1 %v2620_v1  ;;  %2908 = vmatpush3.msra.mxu0 %v2572_v4  ;;  %v2638_v1 = vld [vmem:[#allocation8 + $0x258] sm:$0xff]  ;;  %v2652_v4 = vld [vmem:[#allocation8 + $0x2c8] sm:$0xff] }
 0x2a2   :  { %2943 = vmatpush3.msra.mxu1 %v2604_v6  ;;  %2909 = vmatprep.subr.mxu0 %v2587_v7  ;;  %v2636_v6 = vld [vmem:[#allocation8 + $0x248] sm:$0xff]  ;;  %v2651_v7 = vld [vmem:[#allocation8 + $0x2c0] sm:$0xff] }
 0x2a3   :  { %2944 = vmatprep.subr.mxu1 %v2619_v8  ;;  %2910 = vmatpush3.msra.mxu0 %v2571_v9  ;;  %v2635_v8 = vld [vmem:[#allocation8 + $0x240] sm:$0xff]  ;;  %v2650_v9 = vld [vmem:[#allocation8 + $0x2b8] sm:$0xff] }
 0x2a4   :  { %2945 = vmatpush3.msra.mxu1 %v2603_v11  ;;  %2911 = vmatprep.subr.mxu0 %v2586_v12  ;;  %v2634_v11 = vld [vmem:[#allocation8 + $0x238] sm:$0xff]  ;;  %v2649_v12 = vld [vmem:[#allocation8 + $0x2b0] sm:$0xff] }
 0x2a5   :  { %2946 = vmatprep.subr.mxu1 %v2618_v14  ;;  %2912 = vmatpush3.msra.mxu0 %v2570_v15  ;;  %v2633_v14 = vld [vmem:[#allocation8 + $0x230] sm:$0xff]  ;;  %v2647_v15 = vld [vmem:[#allocation8 + $0x2a0] sm:$0xff] }
 0x2a6   :  { %2947 = vmatpush3.msra.mxu1 %v2602_v16  ;;  %2913 = vmatprep.subr.mxu0 %v2585_v17  ;;  %v2631_v16 = vld [vmem:[#allocation8 + $0x220] sm:$0xff]  ;;  %v2646_v17 = vld [vmem:[#allocation8 + $0x298] sm:$0xff] }
 0x2a7   :  { %2948 = vmatprep.subr.mxu1 %v2617_v19  ;;  %2914 = vmatpush3.msra.mxu0 %v2569_v22  ;;  %v2630_v19 = vld [vmem:[#allocation8 + $0x218] sm:$0xff]  ;;  %v2644_v22 = vld [vmem:[#allocation8 + $0x288] sm:$0xff] }
 0x2a8   :  { %2949 = vmatpush3.msra.mxu1 %v2601_v23  ;;  %2915 = vmatprep.subr.mxu0 %v2584_v38  ;;  %v2628_v23 = vld [vmem:[#allocation8 + $0x208] sm:$0xff]  ;;  %v2643_v38 = vld [vmem:[#allocation8 + $0x280] sm:$0xff] }
 0x2a9   :  { %2950 = vmatprep.subr.mxu1 %v2616_v31  ;;  %2916 = vmatpush3.msra.mxu0 %v2568_v24  ;;  %v2627_v31 = vld [vmem:[#allocation8 + $0x200] sm:$0xff]  ;;  %v1267_v24 = vsub.s32 4, %v3223_v44 }
 0x2aa   :  { %2951 = vmatpush3.msra.mxu1 %v2600_v25  ;;  %2917 = vmatprep.subr.mxu0 %v2583_v26  ;;  %v1271_v25 = vsub.s32 5, %v3223_v44 }
 0x2ab   :  { %2952 = vmatprep.subr.mxu1 %v2615_v27  ;;  %2918 = vmatpush3.msra.mxu0 %v2567_v29  ;;  %v1268_v27 = vrot.slane %v3234_v60, %v1267_v24 }
 0x2ac   :  { %2953 = vmatpush3.msra.mxu1 %v2599_v30  ;;  %2919 = vmatprep.subr.mxu0 %v2582_v32  ;;  %v1272_v45 = vrot.slane %v3234_v60, %v1271_v25 }
 0x2ad   :  { %2954 = vmatprep.subr.mxu1 %v2614_v33  ;;  %2920 = vmatpush3.msra.mxu0 %v2566_v36 }
 0x2ae   :  { %2955 = vmatpush3.msra.mxu1 %v2598_v37  ;;  %2921 = vmatprep.subr.mxu0 %v2581_v56 }
 0x2af   :  { %2956 = vmatprep.subr.mxu1 %v2613_v53  ;;  %2922 = vmatpush3.msra.mxu0 %v2565_v40 }
 0x2b0   :  { %2957 = vmatpush3.msra.mxu1 %v2597_v41  ;;  %2923 = vmatprep.subr.mxu0 %v2580_v42 }
 0x2b1   :  { %2958 = vmatprep.subr.mxu1 %v2612_v43  ;;  %2924 = vmatpush3.msra.mxu0 %v2564_v46 }
 0x2b2   :  { %2959 = vmatpush3.msra.mxu1 %v2596_v47  ;;  %2925 = vmatprep.subr.mxu0 %v2579_v48 }
 0x2b3   :  { %2960 = vmatprep.subr.mxu1 %v2611_v49  ;;  %2926 = vmatpush3.msra.mxu0 %v2563_v50 }
 0x2b4   :  { %2961 = vmatpush3.msra.mxu1 %v2595_v51  ;;  %2731 = vmatmul.mubr.f32.vlgmr.msra.gmra.mxu0 %v2557_v52 }
 0x2b5   :  { %2801 = vmatmul.mubr.f32.vlgmr.msra.gmra.mxu1 %v2559_v54  ;;  %2965 = vmatprep.subr.mxu0 %v2658_v10 }
 0x2b6   :  { %2966 = vmatpush3.msra.mxu0 %v2642_v13 }
 0x2b7   :  { %2967 = vmatprep.subr.mxu0 %v2657_v55  ;;  %v2894_v55 = vld [vmem:[#allocation10] ss:$0 sm:$0xff] }
 0x2b8   :  { %2968 = vmatpush3.msra.mxu0 %v2641_v57 }
 0x2b9   :  { %2969 = vmatprep.subr.mxu0 %v2656_v58 }
 0x2ba   :  { %2970 = vmatpush3.msra.mxu0 %v2640_v59 }
 0x2bb   :  { %2971 = vmatprep.subr.mxu0 %v2655_v61 }
 0x2bc   :  { %2972 = vmatpush3.msra.mxu0 %v2639_v62 }
 0x2bd   :  { %2973 = vmatprep.subr.mxu0 %v2654_v0 }
 0x2be   :  { %2974 = vmatpush3.msra.mxu0 %v2638_v1 }
 0x2bf   :  { %2975 = vmatprep.subr.mxu0 %v2653_v2 }
 0x2c0   :  { %2976 = vmatpush3.msra.mxu0 %v2637_v3 }
 0x2c1   :  { %2977 = vmatprep.subr.mxu0 %v2652_v4 }
 0x2c2   :  { %2978 = vmatpush3.msra.mxu0 %v2636_v6 }
 0x2c3   :  { %2979 = vmatprep.subr.mxu0 %v2651_v7 }
 0x2c4   :  { %2980 = vmatpush3.msra.mxu0 %v2635_v8 }
 0x2c5   :  { %2981 = vmatprep.subr.mxu0 %v2650_v9 }
 0x2c6   :  { %2982 = vmatpush3.msra.mxu0 %v2634_v11 }
 0x2c7   :  { %2983 = vmatprep.subr.mxu0 %v2649_v12 }
 0x2c8   :  { %2984 = vmatpush3.msra.mxu0 %v2633_v14 }
 0x2c9   :  { %2985 = vmatprep.subr.mxu0 %v2648_v28 }
 0x2ca   :  { %2986 = vmatpush3.msra.mxu0 %v2632_v18 }
 0x2cb   :  { %2987 = vmatprep.subr.mxu0 %v2647_v15 }
 0x2cc   :  { %2988 = vmatpush3.msra.mxu0 %v2631_v16 }
 0x2cd   :  { %2989 = vmatprep.subr.mxu0 %v2646_v17 }
 0x2ce   :  { %2990 = vmatpush3.msra.mxu0 %v2630_v19  ;;  %v2197_v26 = vpop.f32.mrf.mxu0 }
 0x2cf   :  { %2991 = vmatprep.subr.mxu0 %v2645_v20  ;;  %v2198_v30 = vadd.f32 %v2197_v26, %v1268_v27 }
 0x2d0   :  { %2992 = vmatpush3.msra.mxu0 %v2629_v21  ;;  %v2268_v39 = vpop.f32.mrf.mxu1  ;;  %v2199_v29 = vpop.f32.mrf.mxu0 }
 0x2d1   :  { %2993 = vmatprep.subr.mxu0 %v2644_v22  ;;  %v2200_v33 = vadd.f32 %v2199_v29, %v1272_v45  ;;  %v2269_v35 = vadd.f32 %v2268_v39, %v2198_v30 }
 0x2d2   :  { %2994 = vmatpush3.msra.mxu0 %v2628_v23  ;;  %v2270_v34 = vpop.f32.mrf.mxu1 }
 0x2d3   :  { %2995 = vmatprep.subr.mxu0 %v2643_v38  ;;  %v2271_v56 = vadd.f32 %v2270_v34, %v2200_v33 }
 0x2d4   :  { %2996 = vmatpush3.msra.mxu0 %v2627_v31 }
 0x310   :  { %v2339_v32 = vpop.f32.mrf.mxu0 }
 0x311   :  { %v2340_v53 = vadd.f32 %v2339_v32, %v2269_v35 }
 0x312   :  { %v2410_v36 = vpop.f32.mrf.mxu1  ;;  %v2341_v37 = vpop.f32.mrf.mxu0 }
 0x313   :  { %v2342_v40 = vadd.f32 %v2341_v37, %v2271_v56  ;;  %v2411_v42 = vadd.f32 %v2410_v36, %v2340_v53 }
 0x314   :  { %v2412_v41 = vpop.f32.mrf.mxu1 }
 0x315   :  { %v2413_v63 = vadd.f32 %v2412_v41, %v2342_v40 }
 0x352   :  { %v2481_v44 = vpop.f32.mrf.mxu0 }
 0x353   :  { %v2552_v43 = vpop.f32.mrf.mxu1  ;;  %v2482_v5 = vadd.f32 %v2481_v44, %v2411_v42 }
 0x354   :  { %v2483_v46 = vpop.f32.mrf.mxu0 }
 0x355   :  { %v2484_v60 = vadd.f32 %v2483_v46, %v2413_v63  ;;  %v2553_v47 = vadd.f32 %v2552_v43, %v2482_v5  ;;  %v2554_v48 = vpop.f32.mrf.mxu1 }
 0x357   :  { %v2555_v49 = vadd.f32 %v2554_v48, %v2484_v60  ;;  %v2561_v51 = vmax.f32 %v2553_v47, 0.0 }
 0x359   :  { %v2562_v50 = vmax.f32 %v2555_v49, 0.0 }
 0x35b   :  { %2870 = vmatprep.mubr.f32.mxu0 %v2562_v50 }
 0x35c   :  { %2871 = vmatmul.mubr.f32.vlgmr.msra.gmra.mxu0 %v2561_v51 }
 0x374   :  { %v2927_v52 = vpop.f32.mrf.mxu0 }
 0x375   :  { %v2962_v10 = vpop.f32.mrf.mxu1 }
 0x376   :  { %v2928_v54 = vpop.f32.mrf.mxu0 }
 0x377   :  { %v2929_v13 = vadd.f32 %v2928_v54, %v2927_v52  ;;  %v2963_v57 = vpop.f32.mrf.mxu1 }
 0x378   :  { %v2964_v61 = vadd.f32 %v2963_v57, %v2962_v10 }
 0x379   :  { %v2733_v58 = vadd.f32 %v2929_v13, %v2894_v55 }
 0x37b   :  { %v2803_v0 = vadd.f32 %v2964_v61, %v2733_v58 }
 0x41c   :  { %v2997_v59 = vpop.f32.mrf.mxu0 }
 0x41e   :  { %v2998_v62 = vpop.f32.mrf.mxu0 }
 0x41f   :  { %v2999_v1 = vadd.f32 %v2998_v62, %v2997_v59 }
 0x421   :  { %v2873_v2 = vadd.f32 %v2999_v1, %v2803_v0 }
 0x423   :  { %2876 = vst [vmem:[#allocation11] sm:$0xff] %v2873_v2 }
 0x424   :  { %3145 = shalt.err (!%p3142_p1)
}
 0x425   :  { %2886 = dma.vmem_to_hbm [thread:$0]  %s2884_s4, 128, %s3295_s5, [#allocation4]  }
 0x426   :  { %3160 = dma.done.wait [#allocation4], 128  }
 0x427   :  { %3161 = vsyncadd [#allocation4], 4294967168 }
 0x428   :  { %2890 = vsyncpa [#allocation3], 1 }
 0x429   :  { %2891 = vsyncpa [#allocation6], 1 }
 0x42a   :  { %2892 = vsyncpa [#allocation9], 1 }
 0x42b   :  { %2893 = vsyncpa [#allocation4], 1 }

</bundles_post_ra>
